<compile_context>
chip_gen: v5e
topology: v5e:2x2
jax: 0.10.0
libtpu: 0.0.40
codegen_flags: <defaults>
</compile_context>

<pallas_src>
import functools

import jax
import jax.numpy as jnp
from jax import lax
from jax.experimental import pallas as pl
from jax.experimental.pallas import tpu as pltpu

# 48 MiB scoped-VMEM budget: headroom under v7x's 64 MiB physical VMEM, and a
# big raise over the v5e/v6e scoped defaults (128 MiB physical on both).
VMEM_LIMIT_BYTES = 48 * 1024 * 1024


def _round_up(x, m):
    return (x + m - 1) // m * m


def _pick_block(dim, base, cap):
    """Return (padded_dim, block): block % base == 0, padded_dim % block == 0."""
    if dim <= cap:
        p = _round_up(dim, base)
        return p, p
    return _round_up(dim, cap), cap


def _maybe_pad2d(t, rows, cols):
    if t.shape == (rows, cols):
        return t
    return jnp.pad(t, ((0, rows - t.shape[0]), (0, cols - t.shape[1])))


# ----------------------------------------------------------------------------
# Tiled linear kernel: y = act(x @ W + b) [+ residual], bf16 out / f32 acc
# ----------------------------------------------------------------------------
def _linear_kernel(act, has_residual, *refs):
    if has_residual:
        x_ref, w_ref, b_ref, r_ref, o_ref, acc_ref = refs
    else:
        x_ref, w_ref, b_ref, o_ref, acc_ref = refs

    @pl.when(pl.program_id(2) == 0)
    def _():
        acc_ref[...] = jnp.zeros_like(acc_ref)

    acc_ref[...] += jnp.dot(x_ref[...], w_ref[...],
                            preferred_element_type=jnp.float32)

    @pl.when(pl.program_id(2) == pl.num_programs(2) - 1)
    def _():
        y = acc_ref[...] + b_ref[...]
        if act == "gelu":
            # TODO(synk): HF BERT default is exact erf GELU; tanh approximation used here.
            y = 0.5 * y * (1.0 + jnp.tanh(0.7978845608028654 * (y + 0.044715 * y * y * y)))
        elif act == "quick_gelu":  # CLIP quick-gelu
            y = y * (1.0 / (1.0 + jnp.exp(-1.702 * y)))
        if has_residual:
            y = y + r_ref[...]                 # bf16 residual promotes to f32
        o_ref[...] = y.astype(o_ref.dtype)     # bf16 writeback


def pallas_linear(x2d, w, b, act=None, residual=None):
    """(M, K) @ (K, N) + b (+ residual), optional fused activation. bf16 out."""
    M, K = x2d.shape
    N = w.shape[1]
    # Raised tile caps (review): fewer operand re-fetches; worst-case
    # double-buffered footprint at (512, 1024, 1024) is ~12 MiB << 48 MiB.
    Mp, tm = _pick_block(M, 8, 512)
    Kp, tk = _pick_block(K, 128, 1024)
    Np, tn = _pick_block(N, 128, 1024)

    xb = _maybe_pad2d(x2d.astype(jnp.bfloat16), Mp, Kp)
    wb = _maybe_pad2d(w.astype(jnp.bfloat16), Kp, Np)   # weights already bf16: no-op
    bb = b.astype(jnp.float32)
    if Np != N:
        bb = jnp.pad(bb, (0, Np - N))
    bb = bb.reshape(1, Np)

    args = [xb, wb, bb]
    # TODO(synk): if profiling shows exposed K-loop DMA at large K, add
    # pipeline_mode=pl.Buffered(3) to the x/w specs (budget against 48 MiB first).
    in_specs = [
        pl.BlockSpec((tm, tk), lambda i, j, k: (i, k)),
        pl.BlockSpec((tk, tn), lambda i, j, k: (k, j)),
        pl.BlockSpec((1, tn), lambda i, j, k: (0, j)),
    ]
    has_res = residual is not None
    if has_res:
        rb = _maybe_pad2d(residual.astype(jnp.bfloat16), Mp, Np)
        args.append(rb)
        in_specs.append(pl.BlockSpec((tm, tn), lambda i, j, k: (i, j)))

    cost = pl.CostEstimate(
        flops=2 * Mp * Kp * Np,
        transcendentals=(Mp * Np if act else 0),
        bytes_accessed=(Mp * Kp * 2 + Kp * Np * 2 + Mp * Np * 2 + Np * 4
                        + (Mp * Np * 2 if has_res else 0)),
    )
    out = pl.pallas_call(
        functools.partial(_linear_kernel, act, has_res),
        out_shape=jax.ShapeDtypeStruct((Mp, Np), jnp.bfloat16),
        grid=(Mp // tm, Np // tn, Kp // tk),
        in_specs=in_specs,
        out_specs=pl.BlockSpec((tm, tn), lambda i, j, k: (i, j)),
        scratch_shapes=[pltpu.VMEM((tm, tn), jnp.float32)],
        compiler_params=pltpu.CompilerParams(
            dimension_semantics=("parallel", "parallel", "arbitrary"),
            vmem_limit_bytes=VMEM_LIMIT_BYTES),
        cost_estimate=cost,
    )(*args)
    if Mp != M or Np != N:
        out = out[:M, :N]
    return out


# ----------------------------------------------------------------------------
# LayerNorm kernel (bf16 I/O, f32 stats) with optional fused residual add
# ----------------------------------------------------------------------------
def _ln_kernel(eps, has_residual, return_sum, *refs):
    if has_residual:
        x_ref, y_ref, g_ref, b_ref = refs[:4]
        outs = refs[4:]
        s = x_ref[...].astype(jnp.float32) + y_ref[...].astype(jnp.float32)
    else:
        x_ref, g_ref, b_ref = refs[:3]
        outs = refs[3:]
        s = x_ref[...].astype(jnp.float32)
    mu = jnp.mean(s, axis=-1, keepdims=True)
    xc = s - mu
    var = jnp.mean(xc * xc, axis=-1, keepdims=True)
    ln = xc * lax.rsqrt(var + eps) * g_ref[...] + b_ref[...]
    if return_sum:
        outs[0][...] = s.astype(outs[0].dtype)
        outs[1][...] = ln.astype(outs[1].dtype)
    else:
        outs[0][...] = ln.astype(outs[0].dtype)


def _ln_call(x2d, y2d, g, b, eps, return_sum):
    M, D = x2d.shape
    # tm capped at 512 (bounds the return_sum footprint on v7x's 64 MiB VMEM);
    # LN is pure HBM-bandwidth-bound so bf16 I/O + smaller tiles cost nothing.
    Mp, tm = _pick_block(M, 8, 512)
    has_res = y2d is not None

    def prep(t):
        t = t.astype(jnp.bfloat16)
        if Mp != M:
            t = jnp.pad(t, ((0, Mp - M), (0, 0)))
        return t

    args = [prep(x2d)]
    in_specs = [pl.BlockSpec((tm, D), lambda i: (i, 0))]
    if has_res:
        args.append(prep(y2d))
        in_specs.append(pl.BlockSpec((tm, D), lambda i: (i, 0)))
    args += [g.reshape(1, D).astype(jnp.float32), b.reshape(1, D).astype(jnp.float32)]
    in_specs += [pl.BlockSpec((1, D), lambda i: (0, 0))] * 2

    out_spec = pl.BlockSpec((tm, D), lambda i: (i, 0))
    if return_sum:
        out_shape = (jax.ShapeDtypeStruct((Mp, D), jnp.bfloat16),
                     jax.ShapeDtypeStruct((Mp, D), jnp.bfloat16))
        out_specs = (out_spec, out_spec)
    else:
        out_shape = jax.ShapeDtypeStruct((Mp, D), jnp.bfloat16)
        out_specs = out_spec

    n_in = 2 if has_res else 1
    n_out = 2 if return_sum else 1
    cost = pl.CostEstimate(
        flops=8 * Mp * D,
        transcendentals=Mp,
        bytes_accessed=(n_in + n_out) * Mp * D * 2 + 2 * D * 4,
    )
    res = pl.pallas_call(
        functools.partial(_ln_kernel, eps, has_res, return_sum),
        out_shape=out_shape,
        grid=(Mp // tm,),
        in_specs=in_specs,
        out_specs=out_specs,
        compiler_params=pltpu.CompilerParams(
            dimension_semantics=("parallel",),
            vmem_limit_bytes=VMEM_LIMIT_BYTES),
        cost_estimate=cost,
    )(*args)
    if return_sum:
        if Mp != M:
            return res[0][:M], res[1][:M]
        return res[0], res[1]
    return res[:M] if Mp != M else res


def pallas_layernorm(x2d, g, b, eps=1e-12):
    return _ln_call(x2d, None, g, b, eps, return_sum=False)


def pallas_add_layernorm(x2d, y2d, g, b, eps=1e-12, return_sum=False):
    return _ln_call(x2d, y2d, g, b, eps, return_sum)


# ----------------------------------------------------------------------------
# Multi-head attention kernel: grid (B, H), lane-contiguous per-head tiles
# ----------------------------------------------------------------------------
def _attn_kernel(bias_mode, *refs):
    if bias_mode is None:
        q_ref, k_ref, v_ref, o_ref = refs
    else:
        q_ref, k_ref, v_ref, b_ref, o_ref = refs
    # q/k/v are (L, dh) bf16; 1/sqrt(dh) is folded into Wq/bq at init time.
    s = lax.dot_general(q_ref[...], k_ref[...], (((1,), (1,)), ((), ())),
                        preferred_element_type=jnp.float32)          # (L, L)
    if bias_mode == "row":
        s = s + b_ref[...]      # (1, L) row bias -> free sublane broadcast
    elif bias_mode == "full":
        s = s + b_ref[...]      # (L, L) directional mask
    m = jnp.max(s, axis=-1, keepdims=True)
    p = jnp.exp(s - m)
    p = p * pl.reciprocal(jnp.sum(p, axis=-1, keepdims=True), approx=True)
    o_ref[...] = jnp.dot(p.astype(v_ref.dtype), v_ref[...],
                         preferred_element_type=jnp.float32).astype(o_ref.dtype)


def pallas_attention(q, k, v, bias, bias_mode):
    """q/k/v: (B, H, L, dh) bf16.  bias: (B,1,L) row / (B,L,L) full / None."""
    B, H, L, dh = q.shape
    qkv_spec = pl.BlockSpec((None, None, L, dh), lambda bi, hi: (bi, hi, 0, 0))
    in_specs = [qkv_spec, qkv_spec, qkv_spec]
    args = [q, k, v]
    bias_bytes = 0
    if bias_mode == "row":
        in_specs.append(pl.BlockSpec((None, 1, L), lambda bi, hi: (bi, 0, 0)))
        args.append(bias.astype(jnp.float32))
        bias_bytes = B * L * 4
    elif bias_mode == "full":
        in_specs.append(pl.BlockSpec((None, L, L), lambda bi, hi: (bi, 0, 0)))
        args.append(bias.astype(jnp.float32))
        bias_bytes = B * L * L * 4

    cost = pl.CostEstimate(
        flops=4 * B * H * L * L * dh,
        transcendentals=B * H * L * L,
        bytes_accessed=4 * B * H * L * dh * 2 + bias_bytes,
    )
    return pl.pallas_call(
        functools.partial(_attn_kernel, bias_mode),
        out_shape=jax.ShapeDtypeStruct((B, H, L, dh), jnp.bfloat16),
        grid=(B, H),
        in_specs=in_specs,
        out_specs=pl.BlockSpec((None, None, L, dh), lambda bi, hi: (bi, hi, 0, 0)),
        compiler_params=pltpu.CompilerParams(
            dimension_semantics=("parallel", "parallel"),
            vmem_limit_bytes=VMEM_LIMIT_BYTES),
        cost_estimate=cost,
    )(*args)


# ----------------------------------------------------------------------------
# Transformer building blocks
# ----------------------------------------------------------------------------
def multi_head_attention(x, bias, bias_mode, p, num_heads):
    B, L, D = x.shape
    dh = D // num_heads
    x2 = x.reshape(B * L, D)
    qkv = pallas_linear(x2, p["Wqkv"], p["bqkv"])                    # fused QKV (B*L, 3D)
    # One XLA relayout so every head's q/k/v tile is lane-contiguous in-kernel.
    qkv = qkv.reshape(B, L, 3, num_heads, dh).transpose(2, 0, 3, 1, 4)
    ctx = pallas_attention(qkv[0], qkv[1], qkv[2], bias, bias_mode)  # (B, H, L, dh)
    ctx = ctx.transpose(0, 2, 1, 3).reshape(B * L, D)
    return pallas_linear(ctx, p["Wo"], p["bo"]).reshape(B, L, D)


def post_ln_layer(x, bias, bias_mode, p, num_heads, eps=1e-12):
    """BERT / VisualBERT style layer (post-LayerNorm), residual fused into LN."""
    B, L, D = x.shape
    attn = multi_head_attention(x, bias, bias_mode, p, num_heads)
    h = pallas_add_layernorm(x.reshape(B * L, D), attn.reshape(B * L, D),
                             p["ln1_g"], p["ln1_b"], eps=eps)
    ff = pallas_linear(h, p["Wf1"], p["bf1"], act="gelu")
    ff = pallas_linear(ff, p["Wf2"], p["bf2"])
    out = pallas_add_layernorm(h, ff, p["ln2_g"], p["ln2_b"], eps=eps)
    return out.reshape(B, L, D)


def pre_ln_layer(x, bias, bias_mode, p, num_heads, eps=1e-5):
    """CLIP ViT style layer (pre-LayerNorm, quick-gelu MLP)."""
    B, L, D = x.shape
    x2 = x.reshape(B * L, D)
    h = pallas_layernorm(x2, p["ln1_g"], p["ln1_b"], eps=eps).reshape(B, L, D)
    attn = multi_head_attention(h, bias, bias_mode, p, num_heads).reshape(B * L, D)
    # fused: (x + attn) and LN(x + attn) in one kernel
    x_new, h2 = pallas_add_layernorm(x2, attn, p["ln2_g"], p["ln2_b"],
                                     eps=eps, return_sum=True)
    ff = pallas_linear(h2, p["Wf1"], p["bf1"], act="quick_gelu")
    out = pallas_linear(ff, p["Wf2"], p["bf2"], residual=x_new)  # fused residual
    return out.reshape(B, L, D)


# ----------------------------------------------------------------------------
# Sub-models
# ----------------------------------------------------------------------------
def get_extended_attention_mask(attention_mask):
    if attention_mask.ndim == 3:
        ext = attention_mask[:, None, :, :]
    elif attention_mask.ndim == 2:
        ext = attention_mask[:, None, None, :]
    else:
        raise ValueError(f"Wrong shape for attention_mask (shape {attention_mask.shape})")
    return (1.0 - ext) * -10000.0


def bert_forward(p, input_ids, attention_mask, num_heads):
    B, L = input_ids.shape
    D = p["word_emb"].shape[1]
    x = (p["word_emb"][input_ids]
         + p["pos_emb"][:L][None, :, :]
         + p["type_emb"][0][None, None, :])
    x = pallas_layernorm(x.reshape(B * L, D), p["emb_ln_g"], p["emb_ln_b"]).reshape(B, L, D)
    ext = get_extended_attention_mask(attention_mask.astype(jnp.float32))  # (B,1,1,L)
    bias_row = ext[:, 0]          # (B, 1, L): broadcast over query rows in-kernel
    for lp in p["layers"]:
        x = post_ln_layer(x, bias_row, "row", lp, num_heads)
    return x


def patchify(img, patch):
    # img: (B, C, H, W) NCHW -> (B, num_patches, C*patch*patch) im2col
    # TODO(synk): at realistic image sizes fuse the im2col into the patch matmul
    # (pl.Element row gather) to avoid materializing the transposed copy.
    B, C, H, W = img.shape
    gh, gw = H // patch, W // patch
    x = img.reshape(B, C, gh, patch, gw, patch)
    x = x.transpose(0, 2, 4, 1, 3, 5).reshape(B, gh * gw, C * patch * patch)
    return x


def vit_forward(p, pixel_values, aux_values, rcnn_values, num_heads, patch):
    # TODO(synk): the repo's custom CLIPVisionTransformer(pixel, aux, rcnn) internals
    # are not provided; approximated by patch-embedding each image input with the
    # shared CLIP patch projection and concatenating all tokens after the CLS token.
    B = pixel_values.shape[0]
    D = p["cls"].shape[0]
    patches = jnp.concatenate(
        [patchify(img, patch) for img in (pixel_values, aux_values, rcnn_values)],
        axis=1)                                                  # (B, 3*Np, C*P*P)
    Npt, K = patches.shape[1], patches.shape[2]
    zero_bias = jnp.zeros((D,), jnp.float32)                     # CLIP patch conv: no bias
    emb = pallas_linear(patches.reshape(B * Npt, K), p["W_patch"], zero_bias)
    cls = jnp.broadcast_to(p["cls"][None, None, :], (B, 1, D)).astype(emb.dtype)
    x = jnp.concatenate([cls, emb.reshape(B, Npt, D)], axis=1)
    L = x.shape[1]
    x = x + p["pos_emb"][:L][None, :, :]
    x = pallas_layernorm(x.reshape(B * L, D), p["pre_ln_g"], p["pre_ln_b"],
                         eps=1e-5).reshape(B, L, D)
    for lp in p["layers"]:
        x = pre_ln_layer(x, None, None, lp, num_heads)   # ViT: no mask -> no bias
    return x


@functools.partial(jax.jit, static_argnames=("num_heads", "patch", "directional"))
def visual_encoder_forward(params, main_input_ids, main_attention_mask,
                           aux_input_ids, aux_attention_mask,
                           attention_with_image, pixel_values, aux_values,
                           rcnn_values, *, num_heads, patch, directional=True):
    # 1) text encoder (aux_bert is never called in the PyTorch forward either)
    main_text_embeds = bert_forward(params["main_bert"], main_input_ids,
                                    main_attention_mask, num_heads)
    # 2) vision encoder
    visual_embeds = vit_forward(params["vit"], pixel_values, aux_values,
                                rcnn_values, num_heads, patch)
    # 3) fuse
    fusion_embeds = jnp.concatenate([main_text_embeds, visual_embeds], axis=1)
    awi = attention_with_image.astype(jnp.float32)
    if directional:
        ext = get_extended_attention_mask(awi)       # (B, 1, Lf, Lf)
        bias, bias_mode = ext[:, 0], "full"          # genuinely 2-D mask
    else:
        s = awi.sum(-1)
        mask = jnp.where(s > 0, jnp.ones_like(s), jnp.zeros_like(s))
        ext = get_extended_attention_mask(mask)      # (B, 1, 1, Lf)
        bias, bias_mode = ext[:, 0], "row"           # (B, 1, Lf) row bias
    x = fusion_embeds
    for lp in params["transformer"]["layers"]:
        x = post_ln_layer(x, bias, bias_mode, lp, num_heads)
    return x


# ----------------------------------------------------------------------------
# Deterministic synthetic parameters (weights bf16, biases / LN params f32)
# ----------------------------------------------------------------------------
def _w(k, shape):
    return 0.02 * jax.random.normal(k, shape, jnp.float32)


def init_layer(key, D, F, num_heads):
    ks = jax.random.split(key, 6)
    dh = D // num_heads
    scale = 1.0 / float(dh) ** 0.5
    # 1/sqrt(dh) attention scale folded into BOTH Wq and bq at init time
    # (scaling the bias too keeps the fold correct for nonzero pretrained biases).
    Wq = _w(ks[0], (D, D)) * scale
    bq = jnp.zeros((D,), jnp.float32) * scale
    Wk = _w(ks[1], (D, D))
    bk = jnp.zeros((D,), jnp.float32)
    Wv = _w(ks[2], (D, D))
    bv = jnp.zeros((D,), jnp.float32)
    bf16 = jnp.bfloat16
    return dict(
        # Weights pre-cast to bf16 once here -> no per-forward pad/cast HBM pass.
        Wqkv=jnp.concatenate([Wq, Wk, Wv], axis=1).astype(bf16),   # (D, 3D) fused
        bqkv=jnp.concatenate([bq, bk, bv], axis=0),
        Wo=_w(ks[3], (D, D)).astype(bf16), bo=jnp.zeros((D,), jnp.float32),
        ln1_g=jnp.ones((D,), jnp.float32), ln1_b=jnp.zeros((D,), jnp.float32),
        Wf1=_w(ks[4], (D, F)).astype(bf16), bf1=jnp.zeros((F,), jnp.float32),
        Wf2=_w(ks[5], (F, D)).astype(bf16), bf2=jnp.zeros((D,), jnp.float32),
        ln2_g=jnp.ones((D,), jnp.float32), ln2_b=jnp.zeros((D,), jnp.float32),
    )


def init_bert_params(key, vocab, max_pos, D, F, n_layers, num_heads):
    ks = jax.random.split(key, 3 + n_layers)
    bf16 = jnp.bfloat16
    return dict(
        word_emb=_w(ks[0], (vocab, D)).astype(bf16),
        pos_emb=_w(ks[1], (max_pos, D)).astype(bf16),
        type_emb=_w(ks[2], (2, D)).astype(bf16),
        emb_ln_g=jnp.ones((D,), jnp.float32),
        emb_ln_b=jnp.zeros((D,), jnp.float32),
        layers=[init_layer(k, D, F, num_heads) for k in ks[3:]],
    )


def init_vit_params(key, D, F, patch, n_tokens, n_layers, num_heads):
    ks = jax.random.split(key, 3 + n_layers)
    bf16 = jnp.bfloat16
    return dict(
        W_patch=_w(ks[0], (3 * patch * patch, D)).astype(bf16),
        cls=_w(ks[1], (D,)).astype(bf16),
        pos_emb=_w(ks[2], (n_tokens, D)).astype(bf16),
        pre_ln_g=jnp.ones((D,), jnp.float32),
        pre_ln_b=jnp.zeros((D,), jnp.float32),
        layers=[init_layer(k, D, F, num_heads) for k in ks[3:]],
    )


# ----------------------------------------------------------------------------
# Demo
# ----------------------------------------------------------------------------
if __name__ == "__main__":
    B, Lt = 2, 8                 # batch, text sequence length
    D, F, HEADS = 128, 256, 4    # hidden, FFN intermediate, attention heads
    VOCAB = 100
    IMG, PATCH = 32, 16
    NUM_PATCHES = (IMG // PATCH) ** 2          # 4
    Lv = 1 + 3 * NUM_PATCHES                   # cls + pixel + aux + rcnn tokens = 13
    Lf = Lt + Lv                               # fusion length = 21

    key = jax.random.PRNGKey(0)
    k_params, k_inputs = jax.random.split(key)
    kp = jax.random.split(k_params, 3)
    params = dict(
        main_bert=init_bert_params(kp[0], VOCAB, 64, D, F, 2, HEADS),
        vit=init_vit_params(kp[1], D, F, PATCH, Lv, 2, HEADS),
        transformer=dict(layers=[init_layer(k, D, F, HEADS)
                                 for k in jax.random.split(kp[2], 2)]),
    )

    ki = jax.random.split(k_inputs, 5)
    main_input_ids = jax.random.randint(ki[0], (B, Lt), 0, VOCAB, dtype=jnp.int32)
    main_attention_mask = jnp.ones((B, Lt), jnp.int32)
    aux_input_ids = jax.random.randint(ki[1], (B, Lt), 0, VOCAB, dtype=jnp.int32)
    aux_attention_mask = jnp.ones((B, Lt), jnp.int32)
    attention_with_image = jnp.ones((B, Lf, Lf), jnp.int32)
    pixel_values = jax.random.normal(ki[2], (B, 3, IMG, IMG), jnp.float32)
    aux_values = jax.random.normal(ki[3], (B, 3, IMG, IMG), jnp.float32)
    rcnn_values = jax.random.normal(ki[4], (B, 3, IMG, IMG), jnp.float32)

    out = visual_encoder_forward(params, main_input_ids, main_attention_mask,
                                 aux_input_ids, aux_attention_mask,
                                 attention_with_image, pixel_values, aux_values,
                                 rcnn_values, num_heads=HEADS, patch=PATCH,
                                 directional=True)
    jax.block_until_ready(out)
    assert out.shape == (B, Lf, D) and out.dtype == jnp.bfloat16
    assert bool(jnp.all(jnp.isfinite(out.astype(jnp.float32))))
    print("KERNEL_OK")
</pallas_src>

<mosaic_0001>
module attributes {stable_mosaic.version = 11 : i64} {
  func.func @_linear_kernel(%arg0: i32, %arg1: i32, %arg2: i32, %arg3: memref<24x768xbf16, #tpu.memory_space<vmem>>, %arg4: memref<768x128xbf16, #tpu.memory_space<vmem>>, %arg5: memref<1x128xf32, #tpu.memory_space<vmem>>, %arg6: memref<24x128xbf16, #tpu.memory_space<vmem>>, %arg7: memref<24x128xf32, #tpu.memory_space<vmem>>) attributes {dimension_semantics = [#tpu.dimension_semantics<parallel>, #tpu.dimension_semantics<parallel>, #tpu.dimension_semantics<arbitrary>], iteration_bounds = array<i64: 1, 1, 1>, scalar_prefetch = 0 : i64, scratch_operands = 1 : i64, tpu.core_type = #tpu.core_type<tc>, window_params = [{transform_indices = @transform_0, window_bounds = array<i64: 24, 768>}, {transform_indices = @transform_1, window_bounds = array<i64: 768, 128>}, {transform_indices = @transform_2, window_bounds = array<i64: 1, 128>}, {transform_indices = @transform_3, window_bounds = array<i64: 24, 128>}]} {
    %c0_i32 = arith.constant 0 : i32
    %0 = arith.cmpi eq, %arg2, %c0_i32 : i32
    %1 = arith.extui %0 : i1 to i32
    %c0_i32_0 = arith.constant 0 : i32
    %2 = arith.cmpi ne, %1, %c0_i32_0 : i32
    scf.if %2 {
      %cst_10 = arith.constant 0.000000e+00 : f32
      %12 = vector.broadcast %cst_10 : f32 to vector<24x128xf32>
      %c0_11 = arith.constant 0 : index
      %c0_12 = arith.constant 0 : index
      %13 = vector.load %arg7[%c0_11, %c0_12] : memref<24x128xf32, #tpu.memory_space<vmem>>, vector<24x128xf32>
      tpu.vector_store %arg7[%c0_11, %c0_12], %12 {strides = array<i32>} : memref<24x128xf32, #tpu.memory_space<vmem>>, vector<24x128xf32>,
    } else {
    }
    %c0 = arith.constant 0 : index
    %c0_1 = arith.constant 0 : index
    %3 = vector.load %arg7[%c0, %c0_1] : memref<24x128xf32, #tpu.memory_space<vmem>>, vector<24x128xf32>
    %c0_2 = arith.constant 0 : index
    %c0_3 = arith.constant 0 : index
    %4 = vector.load %arg3[%c0_2, %c0_3] : memref<24x768xbf16, #tpu.memory_space<vmem>>, vector<24x768xbf16>
    %c0_4 = arith.constant 0 : index
    %c0_5 = arith.constant 0 : index
    %5 = vector.load %arg4[%c0_4, %c0_5] : memref<768x128xbf16, #tpu.memory_space<vmem>>, vector<768x128xbf16>
    %cst = arith.constant dense<0.000000e+00> : vector<24x128xf32>
    %6 = tpu.matmul %4, %5, %cst {dimension_numbers = #tpu.dot_dimension_numbers<[1], [0], [0], [1], [0, 0, 1, 1], [], []>} : vector<24x768xbf16>, vector<768x128xbf16>, vector<24x128xf32> -> vector<24x128xf32>
    %7 = arith.addf %3, %6 : vector<24x128xf32>
    %c0_6 = arith.constant 0 : index
    %c0_7 = arith.constant 0 : index
    %8 = vector.load %arg7[%c0_6, %c0_7] : memref<24x128xf32, #tpu.memory_space<vmem>>, vector<24x128xf32>
    tpu.vector_store %arg7[%c0_6, %c0_7], %7 {strides = array<i32>} : memref<24x128xf32, #tpu.memory_space<vmem>>, vector<24x128xf32>,
    %c0_i32_8 = arith.constant 0 : i32
    %9 = arith.cmpi eq, %arg2, %c0_i32_8 : i32
    %10 = arith.extui %9 : i1 to i32
    %c0_i32_9 = arith.constant 0 : i32
    %11 = arith.cmpi ne, %10, %c0_i32_9 : i32
    scf.if %11 {
      %c0_10 = arith.constant 0 : index
      %c0_11 = arith.constant 0 : index
      %12 = vector.load %arg7[%c0_10, %c0_11] : memref<24x128xf32, #tpu.memory_space<vmem>>, vector<24x128xf32>
      %c0_12 = arith.constant 0 : index
      %c0_13 = arith.constant 0 : index
      %13 = vector.load %arg5[%c0_12, %c0_13] : memref<1x128xf32, #tpu.memory_space<vmem>>, vector<1x128xf32>
      %14 = vector.broadcast %13 : vector<1x128xf32> to vector<24x128xf32>
      %15 = arith.addf %12, %14 : vector<24x128xf32>
      %16 = arith.truncf %15 : vector<24x128xf32> to vector<24x128xbf16>
      %c0_14 = arith.constant 0 : index
      %c0_15 = arith.constant 0 : index
      %17 = vector.load %arg6[%c0_14, %c0_15] : memref<24x128xbf16, #tpu.memory_space<vmem>>, vector<24x128xbf16>
      tpu.vector_store %arg6[%c0_14, %c0_15], %16 {strides = array<i32>} : memref<24x128xbf16, #tpu.memory_space<vmem>>, vector<24x128xbf16>,
    } else {
    }
    return
  }
  func.func @transform_0(%arg0: i32, %arg1: i32, %arg2: i32) -> (i32, i32) {
    %c0_i32 = arith.constant 0 : i32
    return %arg0, %arg2 : i32, i32
  }
  func.func @transform_1(%arg0: i32, %arg1: i32, %arg2: i32) -> (i32, i32) {
    %c0_i32 = arith.constant 0 : i32
    return %arg2, %arg1 : i32, i32
  }
  func.func @transform_2(%arg0: i32, %arg1: i32, %arg2: i32) -> (i32, i32) {
    %c0_i32 = arith.constant 0 : i32
    %c0_i32_0 = arith.constant 0 : i32
    return %c0_i32, %arg1 : i32, i32
  }
  func.func @transform_3(%arg0: i32, %arg1: i32, %arg2: i32) -> (i32, i32) {
    %c0_i32 = arith.constant 0 : i32
    return %arg0, %arg1 : i32, i32
  }
}

module attributes {stable_mosaic.version = 11 : i64} {
  func.func @_ln_kernel(%arg0: i32, %arg1: memref<32x128xbf16, #tpu.memory_space<vmem>>, %arg2: memref<1x128xf32, #tpu.memory_space<vmem>>, %arg3: memref<1x128xf32, #tpu.memory_space<vmem>>, %arg4: memref<32x128xbf16, #tpu.memory_space<vmem>>) attributes {dimension_semantics = [#tpu.dimension_semantics<parallel>], iteration_bounds = array<i64: 1>, scalar_prefetch = 0 : i64, scratch_operands = 0 : i64, tpu.core_type = #tpu.core_type<tc>, window_params = [{transform_indices = @transform_0, window_bounds = array<i64: 32, 128>}, {pipeline_mode = #tpu.pipeline_mode<synchronous>, transform_indices = @transform_1, window_bounds = array<i64: 1, 128>}, {pipeline_mode = #tpu.pipeline_mode<synchronous>, transform_indices = @transform_2, window_bounds = array<i64: 1, 128>}, {transform_indices = @transform_3, window_bounds = array<i64: 32, 128>}]} {
    %c0 = arith.constant 0 : index
    %c0_0 = arith.constant 0 : index
    %0 = vector.load %arg1[%c0, %c0_0] : memref<32x128xbf16, #tpu.memory_space<vmem>>, vector<32x128xbf16>
    %1 = arith.extf %0 : vector<32x128xbf16> to vector<32x128xf32>
    %cst = arith.constant dense<0.000000e+00> : vector<32xf32>
    %2 = vector.multi_reduction <add>, %1, %cst [1] : vector<32x128xf32> to vector<32xf32>
    %3 = vector.shape_cast %2 : vector<32xf32> to vector<32x1xf32>
    %cst_1 = arith.constant 1.280000e+02 : f32
    %4 = vector.broadcast %cst_1 : f32 to vector<32x1xf32>
    %5 = arith.divf %3, %4 : vector<32x1xf32>
    %6 = vector.broadcast %5 : vector<32x1xf32> to vector<32x128xf32>
    %7 = arith.subf %1, %6 : vector<32x128xf32>
    %8 = arith.mulf %7, %7 : vector<32x128xf32>
    %cst_2 = arith.constant dense<0.000000e+00> : vector<32xf32>
    %9 = vector.multi_reduction <add>, %8, %cst_2 [1] : vector<32x128xf32> to vector<32xf32>
    %10 = vector.shape_cast %9 : vector<32xf32> to vector<32x1xf32>
    %cst_3 = arith.constant 1.280000e+02 : f32
    %11 = vector.broadcast %cst_3 : f32 to vector<32x1xf32>
    %12 = arith.divf %10, %11 : vector<32x1xf32>
    %cst_4 = arith.constant 9.99999974E-6 : f32
    %13 = vector.broadcast %cst_4 : f32 to vector<32x1xf32>
    %14 = arith.addf %12, %13 : vector<32x1xf32>
    %15 = math.rsqrt %14 : vector<32x1xf32>
    %16 = vector.broadcast %15 : vector<32x1xf32> to vector<32x128xf32>
    %17 = arith.mulf %7, %16 : vector<32x128xf32>
    %c0_5 = arith.constant 0 : index
    %c0_6 = arith.constant 0 : index
    %18 = vector.load %arg2[%c0_5, %c0_6] : memref<1x128xf32, #tpu.memory_space<vmem>>, vector<1x128xf32>
    %19 = vector.broadcast %18 : vector<1x128xf32> to vector<32x128xf32>
    %20 = arith.mulf %17, %19 : vector<32x128xf32>
    %c0_7 = arith.constant 0 : index
    %c0_8 = arith.constant 0 : index
    %21 = vector.load %arg3[%c0_7, %c0_8] : memref<1x128xf32, #tpu.memory_space<vmem>>, vector<1x128xf32>
    %22 = vector.broadcast %21 : vector<1x128xf32> to vector<32x128xf32>
    %23 = arith.addf %20, %22 : vector<32x128xf32>
    %24 = arith.truncf %23 : vector<32x128xf32> to vector<32x128xbf16>
    %c0_9 = arith.constant 0 : index
    %c0_10 = arith.constant 0 : index
    %25 = vector.load %arg4[%c0_9, %c0_10] : memref<32x128xbf16, #tpu.memory_space<vmem>>, vector<32x128xbf16>
    tpu.vector_store %arg4[%c0_9, %c0_10], %24 {strides = array<i32>} : memref<32x128xbf16, #tpu.memory_space<vmem>>, vector<32x128xbf16>,
    return
  }
  func.func @transform_0(%arg0: i32) -> (i32, i32) {
    %c0_i32 = arith.constant 0 : i32
    %c0_i32_0 = arith.constant 0 : i32
    return %arg0, %c0_i32 : i32, i32
  }
  func.func @transform_1(%arg0: i32) -> (i32, i32) {
    %c0_i32 = arith.constant 0 : i32
    %c0_i32_0 = arith.constant 0 : i32
    %c0_i32_1 = arith.constant 0 : i32
    return %c0_i32, %c0_i32_0 : i32, i32
  }
  func.func @transform_2(%arg0: i32) -> (i32, i32) {
    %c0_i32 = arith.constant 0 : i32
    %c0_i32_0 = arith.constant 0 : i32
    %c0_i32_1 = arith.constant 0 : i32
    return %c0_i32, %c0_i32_0 : i32, i32
  }
  func.func @transform_3(%arg0: i32) -> (i32, i32) {
    %c0_i32 = arith.constant 0 : i32
    %c0_i32_0 = arith.constant 0 : i32
    return %arg0, %c0_i32 : i32, i32
  }
}

module attributes {stable_mosaic.version = 11 : i64} {
  func.func @_linear_kernel(%arg0: i32, %arg1: i32, %arg2: i32, %arg3: memref<32x128xbf16, #tpu.memory_space<vmem>>, %arg4: memref<128x384xbf16, #tpu.memory_space<vmem>>, %arg5: memref<1x384xf32, #tpu.memory_space<vmem>>, %arg6: memref<32x384xbf16, #tpu.memory_space<vmem>>, %arg7: memref<32x384xf32, #tpu.memory_space<vmem>>) attributes {dimension_semantics = [#tpu.dimension_semantics<parallel>, #tpu.dimension_semantics<parallel>, #tpu.dimension_semantics<arbitrary>], iteration_bounds = array<i64: 1, 1, 1>, scalar_prefetch = 0 : i64, scratch_operands = 1 : i64, tpu.core_type = #tpu.core_type<tc>, window_params = [{transform_indices = @transform_0, window_bounds = array<i64: 32, 128>}, {transform_indices = @transform_1, window_bounds = array<i64: 128, 384>}, {transform_indices = @transform_2, window_bounds = array<i64: 1, 384>}, {transform_indices = @transform_3, window_bounds = array<i64: 32, 384>}]} {
    %c0_i32 = arith.constant 0 : i32
    %0 = arith.cmpi eq, %arg2, %c0_i32 : i32
    %1 = arith.extui %0 : i1 to i32
    %c0_i32_0 = arith.constant 0 : i32
    %2 = arith.cmpi ne, %1, %c0_i32_0 : i32
    scf.if %2 {
      %cst_10 = arith.constant 0.000000e+00 : f32
      %12 = vector.broadcast %cst_10 : f32 to vector<32x384xf32>
      %c0_11 = arith.constant 0 : index
      %c0_12 = arith.constant 0 : index
      %13 = vector.load %arg7[%c0_11, %c0_12] : memref<32x384xf32, #tpu.memory_space<vmem>>, vector<32x384xf32>
      tpu.vector_store %arg7[%c0_11, %c0_12], %12 {strides = array<i32>} : memref<32x384xf32, #tpu.memory_space<vmem>>, vector<32x384xf32>,
    } else {
    }
    %c0 = arith.constant 0 : index
    %c0_1 = arith.constant 0 : index
    %3 = vector.load %arg7[%c0, %c0_1] : memref<32x384xf32, #tpu.memory_space<vmem>>, vector<32x384xf32>
    %c0_2 = arith.constant 0 : index
    %c0_3 = arith.constant 0 : index
    %4 = vector.load %arg3[%c0_2, %c0_3] : memref<32x128xbf16, #tpu.memory_space<vmem>>, vector<32x128xbf16>
    %c0_4 = arith.constant 0 : index
    %c0_5 = arith.constant 0 : index
    %5 = vector.load %arg4[%c0_4, %c0_5] : memref<128x384xbf16, #tpu.memory_space<vmem>>, vector<128x384xbf16>
    %cst = arith.constant dense<0.000000e+00> : vector<32x384xf32>
    %6 = tpu.matmul %4, %5, %cst {dimension_numbers = #tpu.dot_dimension_numbers<[1], [0], [0], [1], [0, 0, 1, 1], [], []>} : vector<32x128xbf16>, vector<128x384xbf16>, vector<32x384xf32> -> vector<32x384xf32>
    %7 = arith.addf %3, %6 : vector<32x384xf32>
    %c0_6 = arith.constant 0 : index
    %c0_7 = arith.constant 0 : index
    %8 = vector.load %arg7[%c0_6, %c0_7] : memref<32x384xf32, #tpu.memory_space<vmem>>, vector<32x384xf32>
    tpu.vector_store %arg7[%c0_6, %c0_7], %7 {strides = array<i32>} : memref<32x384xf32, #tpu.memory_space<vmem>>, vector<32x384xf32>,
    %c0_i32_8 = arith.constant 0 : i32
    %9 = arith.cmpi eq, %arg2, %c0_i32_8 : i32
    %10 = arith.extui %9 : i1 to i32
    %c0_i32_9 = arith.constant 0 : i32
    %11 = arith.cmpi ne, %10, %c0_i32_9 : i32
    scf.if %11 {
      %c0_10 = arith.constant 0 : index
      %c0_11 = arith.constant 0 : index
      %12 = vector.load %arg7[%c0_10, %c0_11] : memref<32x384xf32, #tpu.memory_space<vmem>>, vector<32x384xf32>
      %c0_12 = arith.constant 0 : index
      %c0_13 = arith.constant 0 : index
      %13 = vector.load %arg5[%c0_12, %c0_13] : memref<1x384xf32, #tpu.memory_space<vmem>>, vector<1x384xf32>
      %14 = vector.broadcast %13 : vector<1x384xf32> to vector<32x384xf32>
      %15 = arith.addf %12, %14 : vector<32x384xf32>
      %16 = arith.truncf %15 : vector<32x384xf32> to vector<32x384xbf16>
      %c0_14 = arith.constant 0 : index
      %c0_15 = arith.constant 0 : index
      %17 = vector.load %arg6[%c0_14, %c0_15] : memref<32x384xbf16, #tpu.memory_space<vmem>>, vector<32x384xbf16>
      tpu.vector_store %arg6[%c0_14, %c0_15], %16 {strides = array<i32>} : memref<32x384xbf16, #tpu.memory_space<vmem>>, vector<32x384xbf16>,
    } else {
    }
    return
  }
  func.func @transform_0(%arg0: i32, %arg1: i32, %arg2: i32) -> (i32, i32) {
    %c0_i32 = arith.constant 0 : i32
    return %arg0, %arg2 : i32, i32
  }
  func.func @transform_1(%arg0: i32, %arg1: i32, %arg2: i32) -> (i32, i32) {
    %c0_i32 = arith.constant 0 : i32
    return %arg2, %arg1 : i32, i32
  }
  func.func @transform_2(%arg0: i32, %arg1: i32, %arg2: i32) -> (i32, i32) {
    %c0_i32 = arith.constant 0 : i32
    %c0_i32_0 = arith.constant 0 : i32
    return %c0_i32, %arg1 : i32, i32
  }
  func.func @transform_3(%arg0: i32, %arg1: i32, %arg2: i32) -> (i32, i32) {
    %c0_i32 = arith.constant 0 : i32
    return %arg0, %arg1 : i32, i32
  }
}

module attributes {stable_mosaic.version = 11 : i64} {
  func.func @_attn_kernel(%arg0: i32, %arg1: i32, %arg2: memref<1x1x13x32xbf16, #tpu.memory_space<vmem>>, %arg3: memref<1x1x13x32xbf16, #tpu.memory_space<vmem>>, %arg4: memref<1x1x13x32xbf16, #tpu.memory_space<vmem>>, %arg5: memref<1x1x13x32xbf16, #tpu.memory_space<vmem>>) attributes {dimension_semantics = [#tpu.dimension_semantics<parallel>, #tpu.dimension_semantics<parallel>], iteration_bounds = array<i64: 2, 4>, scalar_prefetch = 0 : i64, scratch_operands = 0 : i64, tpu.core_type = #tpu.core_type<tc>, window_params = [{transform_indices = @transform_0, window_bounds = array<i64: 1, 1, 13, 32>}, {transform_indices = @transform_1, window_bounds = array<i64: 1, 1, 13, 32>}, {transform_indices = @transform_2, window_bounds = array<i64: 1, 1, 13, 32>}, {transform_indices = @transform_3, window_bounds = array<i64: 1, 1, 13, 32>}]} {
    %c0 = arith.constant 0 : index
    %c0_0 = arith.constant 0 : index
    %c0_1 = arith.constant 0 : index
    %c0_2 = arith.constant 0 : index
    %0 = vector.load %arg2[%c0, %c0_0, %c0_1, %c0_2] : memref<1x1x13x32xbf16, #tpu.memory_space<vmem>>, vector<1x1x13x32xbf16>
    %1 = vector.shape_cast %0 : vector<1x1x13x32xbf16> to vector<13x32xbf16>
    %c0_3 = arith.constant 0 : index
    %c0_4 = arith.constant 0 : index
    %c0_5 = arith.constant 0 : index
    %c0_6 = arith.constant 0 : index
    %2 = vector.load %arg3[%c0_3, %c0_4, %c0_5, %c0_6] : memref<1x1x13x32xbf16, #tpu.memory_space<vmem>>, vector<1x1x13x32xbf16>
    %3 = vector.shape_cast %2 : vector<1x1x13x32xbf16> to vector<13x32xbf16>
    %cst = arith.constant dense<0.000000e+00> : vector<13x13xf32>
    %4 = tpu.matmul %1, %3, %cst {dimension_numbers = #tpu.dot_dimension_numbers<[1], [1], [0], [0], [0, 0, 1, 0], [], []>} : vector<13x32xbf16>, vector<13x32xbf16>, vector<13x13xf32> -> vector<13x13xf32>
    %cst_7 = arith.constant dense<0xFF800000> : vector<13xf32>
    %5 = vector.multi_reduction <maximumf>, %4, %cst_7 [1] : vector<13x13xf32> to vector<13xf32>
    %6 = vector.shape_cast %5 : vector<13xf32> to vector<13x1xf32>
    %7 = vector.broadcast %6 : vector<13x1xf32> to vector<13x13xf32>
    %8 = arith.subf %4, %7 : vector<13x13xf32>
    %9 = math.exp %8 : vector<13x13xf32>
    %cst_8 = arith.constant dense<0.000000e+00> : vector<13xf32>
    %10 = vector.multi_reduction <add>, %9, %cst_8 [1] : vector<13x13xf32> to vector<13xf32>
    %11 = vector.shape_cast %10 : vector<13xf32> to vector<13x1xf32>
    %12 = tpu.reciprocal %11 {approx = true} : vector<13x1xf32> -> vector<13x1xf32>
    %13 = vector.broadcast %12 : vector<13x1xf32> to vector<13x13xf32>
    %14 = arith.mulf %9, %13 : vector<13x13xf32>
    %15 = arith.truncf %14 : vector<13x13xf32> to vector<13x13xbf16>
    %c0_9 = arith.constant 0 : index
    %c0_10 = arith.constant 0 : index
    %c0_11 = arith.constant 0 : index
    %c0_12 = arith.constant 0 : index
    %16 = vector.load %arg4[%c0_9, %c0_10, %c0_11, %c0_12] : memref<1x1x13x32xbf16, #tpu.memory_space<vmem>>, vector<1x1x13x32xbf16>
    %17 = vector.shape_cast %16 : vector<1x1x13x32xbf16> to vector<13x32xbf16>
    %cst_13 = arith.constant dense<0.000000e+00> : vector<13x32xf32>
    %18 = tpu.matmul %15, %17, %cst_13 {dimension_numbers = #tpu.dot_dimension_numbers<[1], [0], [0], [1], [0, 0, 1, 1], [], []>} : vector<13x13xbf16>, vector<13x32xbf16>, vector<13x32xf32> -> vector<13x32xf32>
    %19 = arith.truncf %18 : vector<13x32xf32> to vector<13x32xbf16>
    %c0_14 = arith.constant 0 : index
    %c0_15 = arith.constant 0 : index
    %c0_16 = arith.constant 0 : index
    %c0_17 = arith.constant 0 : index
    %20 = vector.load %arg5[%c0_14, %c0_15, %c0_16, %c0_17] : memref<1x1x13x32xbf16, #tpu.memory_space<vmem>>, vector<1x1x13x32xbf16>
    %21 = vector.shape_cast %20 : vector<1x1x13x32xbf16> to vector<13x32xbf16>
    %22 = vector.shape_cast %19 : vector<13x32xbf16> to vector<1x1x13x32xbf16>
    tpu.vector_store %arg5[%c0_14, %c0_15, %c0_16, %c0_17], %22 {strides = array<i32>} : memref<1x1x13x32xbf16, #tpu.memory_space<vmem>>, vector<1x1x13x32xbf16>,
    return
  }
  func.func @transform_0(%arg0: i32, %arg1: i32) -> (i32, i32, i32, i32) {
    %c0_i32 = arith.constant 0 : i32
    %c0_i32_0 = arith.constant 0 : i32
    %c0_i32_1 = arith.constant 0 : i32
    return %arg0, %arg1, %c0_i32, %c0_i32_0 : i32, i32, i32, i32
  }
  func.func @transform_1(%arg0: i32, %arg1: i32) -> (i32, i32, i32, i32) {
    %c0_i32 = arith.constant 0 : i32
    %c0_i32_0 = arith.constant 0 : i32
    %c0_i32_1 = arith.constant 0 : i32
    return %arg0, %arg1, %c0_i32, %c0_i32_0 : i32, i32, i32, i32
  }
  func.func @transform_2(%arg0: i32, %arg1: i32) -> (i32, i32, i32, i32) {
    %c0_i32 = arith.constant 0 : i32
    %c0_i32_0 = arith.constant 0 : i32
    %c0_i32_1 = arith.constant 0 : i32
    return %arg0, %arg1, %c0_i32, %c0_i32_0 : i32, i32, i32, i32
  }
  func.func @transform_3(%arg0: i32, %arg1: i32) -> (i32, i32, i32, i32) {
    %c0_i32 = arith.constant 0 : i32
    %c0_i32_0 = arith.constant 0 : i32
    %c0_i32_1 = arith.constant 0 : i32
    return %arg0, %arg1, %c0_i32, %c0_i32_0 : i32, i32, i32, i32
  }
}

module attributes {stable_mosaic.version = 11 : i64} {
  func.func @_linear_kernel(%arg0: i32, %arg1: i32, %arg2: i32, %arg3: memref<32x128xbf16, #tpu.memory_space<vmem>>, %arg4: memref<128x128xbf16, #tpu.memory_space<vmem>>, %arg5: memref<1x128xf32, #tpu.memory_space<vmem>>, %arg6: memref<32x128xbf16, #tpu.memory_space<vmem>>, %arg7: memref<32x128xf32, #tpu.memory_space<vmem>>) attributes {dimension_semantics = [#tpu.dimension_semantics<parallel>, #tpu.dimension_semantics<parallel>, #tpu.dimension_semantics<arbitrary>], iteration_bounds = array<i64: 1, 1, 1>, scalar_prefetch = 0 : i64, scratch_operands = 1 : i64, tpu.core_type = #tpu.core_type<tc>, window_params = [{transform_indices = @transform_0, window_bounds = array<i64: 32, 128>}, {transform_indices = @transform_1, window_bounds = array<i64: 128, 128>}, {transform_indices = @transform_2, window_bounds = array<i64: 1, 128>}, {transform_indices = @transform_3, window_bounds = array<i64: 32, 128>}]} {
    %c0_i32 = arith.constant 0 : i32
    %0 = arith.cmpi eq, %arg2, %c0_i32 : i32
    %1 = arith.extui %0 : i1 to i32
    %c0_i32_0 = arith.constant 0 : i32
    %2 = arith.cmpi ne, %1, %c0_i32_0 : i32
    scf.if %2 {
      %cst_10 = arith.constant 0.000000e+00 : f32
      %12 = vector.broadcast %cst_10 : f32 to vector<32x128xf32>
      %c0_11 = arith.constant 0 : index
      %c0_12 = arith.constant 0 : index
      %13 = vector.load %arg7[%c0_11, %c0_12] : memref<32x128xf32, #tpu.memory_space<vmem>>, vector<32x128xf32>
      tpu.vector_store %arg7[%c0_11, %c0_12], %12 {strides = array<i32>} : memref<32x128xf32, #tpu.memory_space<vmem>>, vector<32x128xf32>,
    } else {
    }
    %c0 = arith.constant 0 : index
    %c0_1 = arith.constant 0 : index
    %3 = vector.load %arg7[%c0, %c0_1] : memref<32x128xf32, #tpu.memory_space<vmem>>, vector<32x128xf32>
    %c0_2 = arith.constant 0 : index
    %c0_3 = arith.constant 0 : index
    %4 = vector.load %arg3[%c0_2, %c0_3] : memref<32x128xbf16, #tpu.memory_space<vmem>>, vector<32x128xbf16>
    %c0_4 = arith.constant 0 : index
    %c0_5 = arith.constant 0 : index
    %5 = vector.load %arg4[%c0_4, %c0_5] : memref<128x128xbf16, #tpu.memory_space<vmem>>, vector<128x128xbf16>
    %cst = arith.constant dense<0.000000e+00> : vector<32x128xf32>
    %6 = tpu.matmul %4, %5, %cst {dimension_numbers = #tpu.dot_dimension_numbers<[1], [0], [0], [1], [0, 0, 1, 1], [], []>} : vector<32x128xbf16>, vector<128x128xbf16>, vector<32x128xf32> -> vector<32x128xf32>
    %7 = arith.addf %3, %6 : vector<32x128xf32>
    %c0_6 = arith.constant 0 : index
    %c0_7 = arith.constant 0 : index
    %8 = vector.load %arg7[%c0_6, %c0_7] : memref<32x128xf32, #tpu.memory_space<vmem>>, vector<32x128xf32>
    tpu.vector_store %arg7[%c0_6, %c0_7], %7 {strides = array<i32>} : memref<32x128xf32, #tpu.memory_space<vmem>>, vector<32x128xf32>,
    %c0_i32_8 = arith.constant 0 : i32
    %9 = arith.cmpi eq, %arg2, %c0_i32_8 : i32
    %10 = arith.extui %9 : i1 to i32
    %c0_i32_9 = arith.constant 0 : i32
    %11 = arith.cmpi ne, %10, %c0_i32_9 : i32
    scf.if %11 {
      %c0_10 = arith.constant 0 : index
      %c0_11 = arith.constant 0 : index
      %12 = vector.load %arg7[%c0_10, %c0_11] : memref<32x128xf32, #tpu.memory_space<vmem>>, vector<32x128xf32>
      %c0_12 = arith.constant 0 : index
      %c0_13 = arith.constant 0 : index
      %13 = vector.load %arg5[%c0_12, %c0_13] : memref<1x128xf32, #tpu.memory_space<vmem>>, vector<1x128xf32>
      %14 = vector.broadcast %13 : vector<1x128xf32> to vector<32x128xf32>
      %15 = arith.addf %12, %14 : vector<32x128xf32>
      %16 = arith.truncf %15 : vector<32x128xf32> to vector<32x128xbf16>
      %c0_14 = arith.constant 0 : index
      %c0_15 = arith.constant 0 : index
      %17 = vector.load %arg6[%c0_14, %c0_15] : memref<32x128xbf16, #tpu.memory_space<vmem>>, vector<32x128xbf16>
      tpu.vector_store %arg6[%c0_14, %c0_15], %16 {strides = array<i32>} : memref<32x128xbf16, #tpu.memory_space<vmem>>, vector<32x128xbf16>,
    } else {
    }
    return
  }
  func.func @transform_0(%arg0: i32, %arg1: i32, %arg2: i32) -> (i32, i32) {
    %c0_i32 = arith.constant 0 : i32
    return %arg0, %arg2 : i32, i32
  }
  func.func @transform_1(%arg0: i32, %arg1: i32, %arg2: i32) -> (i32, i32) {
    %c0_i32 = arith.constant 0 : i32
    return %arg2, %arg1 : i32, i32
  }
  func.func @transform_2(%arg0: i32, %arg1: i32, %arg2: i32) -> (i32, i32) {
    %c0_i32 = arith.constant 0 : i32
    %c0_i32_0 = arith.constant 0 : i32
    return %c0_i32, %arg1 : i32, i32
  }
  func.func @transform_3(%arg0: i32, %arg1: i32, %arg2: i32) -> (i32, i32) {
    %c0_i32 = arith.constant 0 : i32
    return %arg0, %arg1 : i32, i32
  }
}

module attributes {stable_mosaic.version = 11 : i64} {
  func.func @_linear_kernel(%arg0: i32, %arg1: i32, %arg2: i32, %arg3: memref<32x128xbf16, #tpu.memory_space<vmem>>, %arg4: memref<128x256xbf16, #tpu.memory_space<vmem>>, %arg5: memref<1x256xf32, #tpu.memory_space<vmem>>, %arg6: memref<32x256xbf16, #tpu.memory_space<vmem>>, %arg7: memref<32x256xf32, #tpu.memory_space<vmem>>) attributes {dimension_semantics = [#tpu.dimension_semantics<parallel>, #tpu.dimension_semantics<parallel>, #tpu.dimension_semantics<arbitrary>], iteration_bounds = array<i64: 1, 1, 1>, scalar_prefetch = 0 : i64, scratch_operands = 1 : i64, tpu.core_type = #tpu.core_type<tc>, window_params = [{transform_indices = @transform_0, window_bounds = array<i64: 32, 128>}, {transform_indices = @transform_1, window_bounds = array<i64: 128, 256>}, {transform_indices = @transform_2, window_bounds = array<i64: 1, 256>}, {transform_indices = @transform_3, window_bounds = array<i64: 32, 256>}]} {
    %c0_i32 = arith.constant 0 : i32
    %0 = arith.cmpi eq, %arg2, %c0_i32 : i32
    %1 = arith.extui %0 : i1 to i32
    %c0_i32_0 = arith.constant 0 : i32
    %2 = arith.cmpi ne, %1, %c0_i32_0 : i32
    scf.if %2 {
      %cst_10 = arith.constant 0.000000e+00 : f32
      %12 = vector.broadcast %cst_10 : f32 to vector<32x256xf32>
      %c0_11 = arith.constant 0 : index
      %c0_12 = arith.constant 0 : index
      %13 = vector.load %arg7[%c0_11, %c0_12] : memref<32x256xf32, #tpu.memory_space<vmem>>, vector<32x256xf32>
      tpu.vector_store %arg7[%c0_11, %c0_12], %12 {strides = array<i32>} : memref<32x256xf32, #tpu.memory_space<vmem>>, vector<32x256xf32>,
    } else {
    }
    %c0 = arith.constant 0 : index
    %c0_1 = arith.constant 0 : index
    %3 = vector.load %arg7[%c0, %c0_1] : memref<32x256xf32, #tpu.memory_space<vmem>>, vector<32x256xf32>
    %c0_2 = arith.constant 0 : index
    %c0_3 = arith.constant 0 : index
    %4 = vector.load %arg3[%c0_2, %c0_3] : memref<32x128xbf16, #tpu.memory_space<vmem>>, vector<32x128xbf16>
    %c0_4 = arith.constant 0 : index
    %c0_5 = arith.constant 0 : index
    %5 = vector.load %arg4[%c0_4, %c0_5] : memref<128x256xbf16, #tpu.memory_space<vmem>>, vector<128x256xbf16>
    %cst = arith.constant dense<0.000000e+00> : vector<32x256xf32>
    %6 = tpu.matmul %4, %5, %cst {dimension_numbers = #tpu.dot_dimension_numbers<[1], [0], [0], [1], [0, 0, 1, 1], [], []>} : vector<32x128xbf16>, vector<128x256xbf16>, vector<32x256xf32> -> vector<32x256xf32>
    %7 = arith.addf %3, %6 : vector<32x256xf32>
    %c0_6 = arith.constant 0 : index
    %c0_7 = arith.constant 0 : index
    %8 = vector.load %arg7[%c0_6, %c0_7] : memref<32x256xf32, #tpu.memory_space<vmem>>, vector<32x256xf32>
    tpu.vector_store %arg7[%c0_6, %c0_7], %7 {strides = array<i32>} : memref<32x256xf32, #tpu.memory_space<vmem>>, vector<32x256xf32>,
    %c0_i32_8 = arith.constant 0 : i32
    %9 = arith.cmpi eq, %arg2, %c0_i32_8 : i32
    %10 = arith.extui %9 : i1 to i32
    %c0_i32_9 = arith.constant 0 : i32
    %11 = arith.cmpi ne, %10, %c0_i32_9 : i32
    scf.if %11 {
      %c0_10 = arith.constant 0 : index
      %c0_11 = arith.constant 0 : index
      %12 = vector.load %arg7[%c0_10, %c0_11] : memref<32x256xf32, #tpu.memory_space<vmem>>, vector<32x256xf32>
      %c0_12 = arith.constant 0 : index
      %c0_13 = arith.constant 0 : index
      %13 = vector.load %arg5[%c0_12, %c0_13] : memref<1x256xf32, #tpu.memory_space<vmem>>, vector<1x256xf32>
      %14 = vector.broadcast %13 : vector<1x256xf32> to vector<32x256xf32>
      %15 = arith.addf %12, %14 : vector<32x256xf32>
      %cst_14 = arith.constant -1.702000e+00 : f32
      %16 = vector.broadcast %cst_14 : f32 to vector<32x256xf32>
      %17 = arith.mulf %16, %15 : vector<32x256xf32>
      %18 = math.exp %17 : vector<32x256xf32>
      %cst_15 = arith.constant 1.000000e+00 : f32
      %19 = vector.broadcast %cst_15 : f32 to vector<32x256xf32>
      %20 = arith.addf %19, %18 : vector<32x256xf32>
      %cst_16 = arith.constant 1.000000e+00 : f32
      %21 = vector.broadcast %cst_16 : f32 to vector<32x256xf32>
      %22 = arith.divf %21, %20 : vector<32x256xf32>
      %23 = arith.mulf %15, %22 : vector<32x256xf32>
      %24 = arith.truncf %23 : vector<32x256xf32> to vector<32x256xbf16>
      %c0_17 = arith.constant 0 : index
      %c0_18 = arith.constant 0 : index
      %25 = vector.load %arg6[%c0_17, %c0_18] : memref<32x256xbf16, #tpu.memory_space<vmem>>, vector<32x256xbf16>
      tpu.vector_store %arg6[%c0_17, %c0_18], %24 {strides = array<i32>} : memref<32x256xbf16, #tpu.memory_space<vmem>>, vector<32x256xbf16>,
    } else {
    }
    return
  }
  func.func @transform_0(%arg0: i32, %arg1: i32, %arg2: i32) -> (i32, i32) {
    %c0_i32 = arith.constant 0 : i32
    return %arg0, %arg2 : i32, i32
  }
  func.func @transform_1(%arg0: i32, %arg1: i32, %arg2: i32) -> (i32, i32) {
    %c0_i32 = arith.constant 0 : i32
    return %arg2, %arg1 : i32, i32
  }
  func.func @transform_2(%arg0: i32, %arg1: i32, %arg2: i32) -> (i32, i32) {
    %c0_i32 = arith.constant 0 : i32
    %c0_i32_0 = arith.constant 0 : i32
    return %c0_i32, %arg1 : i32, i32
  }
  func.func @transform_3(%arg0: i32, %arg1: i32, %arg2: i32) -> (i32, i32) {
    %c0_i32 = arith.constant 0 : i32
    return %arg0, %arg1 : i32, i32
  }
}

module attributes {stable_mosaic.version = 11 : i64} {
  func.func @_ln_kernel(%arg0: i32, %arg1: memref<32x128xbf16, #tpu.memory_space<vmem>>, %arg2: memref<32x128xbf16, #tpu.memory_space<vmem>>, %arg3: memref<1x128xf32, #tpu.memory_space<vmem>>, %arg4: memref<1x128xf32, #tpu.memory_space<vmem>>, %arg5: memref<32x128xbf16, #tpu.memory_space<vmem>>, %arg6: memref<32x128xbf16, #tpu.memory_space<vmem>>) attributes {dimension_semantics = [#tpu.dimension_semantics<parallel>], iteration_bounds = array<i64: 1>, scalar_prefetch = 0 : i64, scratch_operands = 0 : i64, tpu.core_type = #tpu.core_type<tc>, window_params = [{transform_indices = @transform_0, window_bounds = array<i64: 32, 128>}, {transform_indices = @transform_1, window_bounds = array<i64: 32, 128>}, {pipeline_mode = #tpu.pipeline_mode<synchronous>, transform_indices = @transform_2, window_bounds = array<i64: 1, 128>}, {pipeline_mode = #tpu.pipeline_mode<synchronous>, transform_indices = @transform_3, window_bounds = array<i64: 1, 128>}, {transform_indices = @transform_4, window_bounds = array<i64: 32, 128>}, {transform_indices = @transform_5, window_bounds = array<i64: 32, 128>}]} {
    %c0 = arith.constant 0 : index
    %c0_0 = arith.constant 0 : index
    %0 = vector.load %arg1[%c0, %c0_0] : memref<32x128xbf16, #tpu.memory_space<vmem>>, vector<32x128xbf16>
    %1 = arith.extf %0 : vector<32x128xbf16> to vector<32x128xf32>
    %c0_1 = arith.constant 0 : index
    %c0_2 = arith.constant 0 : index
    %2 = vector.load %arg2[%c0_1, %c0_2] : memref<32x128xbf16, #tpu.memory_space<vmem>>, vector<32x128xbf16>
    %3 = arith.extf %2 : vector<32x128xbf16> to vector<32x128xf32>
    %4 = arith.addf %1, %3 : vector<32x128xf32>
    %cst = arith.constant dense<0.000000e+00> : vector<32xf32>
    %5 = vector.multi_reduction <add>, %4, %cst [1] : vector<32x128xf32> to vector<32xf32>
    %6 = vector.shape_cast %5 : vector<32xf32> to vector<32x1xf32>
    %cst_3 = arith.constant 1.280000e+02 : f32
    %7 = vector.broadcast %cst_3 : f32 to vector<32x1xf32>
    %8 = arith.divf %6, %7 : vector<32x1xf32>
    %9 = vector.broadcast %8 : vector<32x1xf32> to vector<32x128xf32>
    %10 = arith.subf %4, %9 : vector<32x128xf32>
    %11 = arith.mulf %10, %10 : vector<32x128xf32>
    %cst_4 = arith.constant dense<0.000000e+00> : vector<32xf32>
    %12 = vector.multi_reduction <add>, %11, %cst_4 [1] : vector<32x128xf32> to vector<32xf32>
    %13 = vector.shape_cast %12 : vector<32xf32> to vector<32x1xf32>
    %cst_5 = arith.constant 1.280000e+02 : f32
    %14 = vector.broadcast %cst_5 : f32 to vector<32x1xf32>
    %15 = arith.divf %13, %14 : vector<32x1xf32>
    %cst_6 = arith.constant 9.99999974E-6 : f32
    %16 = vector.broadcast %cst_6 : f32 to vector<32x1xf32>
    %17 = arith.addf %15, %16 : vector<32x1xf32>
    %18 = math.rsqrt %17 : vector<32x1xf32>
    %19 = vector.broadcast %18 : vector<32x1xf32> to vector<32x128xf32>
    %20 = arith.mulf %10, %19 : vector<32x128xf32>
    %c0_7 = arith.constant 0 : index
    %c0_8 = arith.constant 0 : index
    %21 = vector.load %arg3[%c0_7, %c0_8] : memref<1x128xf32, #tpu.memory_space<vmem>>, vector<1x128xf32>
    %22 = vector.broadcast %21 : vector<1x128xf32> to vector<32x128xf32>
    %23 = arith.mulf %20, %22 : vector<32x128xf32>
    %c0_9 = arith.constant 0 : index
    %c0_10 = arith.constant 0 : index
    %24 = vector.load %arg4[%c0_9, %c0_10] : memref<1x128xf32, #tpu.memory_space<vmem>>, vector<1x128xf32>
    %25 = vector.broadcast %24 : vector<1x128xf32> to vector<32x128xf32>
    %26 = arith.addf %23, %25 : vector<32x128xf32>
    %27 = arith.truncf %4 : vector<32x128xf32> to vector<32x128xbf16>
    %c0_11 = arith.constant 0 : index
    %c0_12 = arith.constant 0 : index
    %28 = vector.load %arg5[%c0_11, %c0_12] : memref<32x128xbf16, #tpu.memory_space<vmem>>, vector<32x128xbf16>
    tpu.vector_store %arg5[%c0_11, %c0_12], %27 {strides = array<i32>} : memref<32x128xbf16, #tpu.memory_space<vmem>>, vector<32x128xbf16>,
    %29 = arith.truncf %26 : vector<32x128xf32> to vector<32x128xbf16>
    %c0_13 = arith.constant 0 : index
    %c0_14 = arith.constant 0 : index
    %30 = vector.load %arg6[%c0_13, %c0_14] : memref<32x128xbf16, #tpu.memory_space<vmem>>, vector<32x128xbf16>
    tpu.vector_store %arg6[%c0_13, %c0_14], %29 {strides = array<i32>} : memref<32x128xbf16, #tpu.memory_space<vmem>>, vector<32x128xbf16>,
    return
  }
  func.func @transform_0(%arg0: i32) -> (i32, i32) {
    %c0_i32 = arith.constant 0 : i32
    %c0_i32_0 = arith.constant 0 : i32
    return %arg0, %c0_i32 : i32, i32
  }
  func.func @transform_1(%arg0: i32) -> (i32, i32) {
    %c0_i32 = arith.constant 0 : i32
    %c0_i32_0 = arith.constant 0 : i32
    return %arg0, %c0_i32 : i32, i32
  }
  func.func @transform_2(%arg0: i32) -> (i32, i32) {
    %c0_i32 = arith.constant 0 : i32
    %c0_i32_0 = arith.constant 0 : i32
    %c0_i32_1 = arith.constant 0 : i32
    return %c0_i32, %c0_i32_0 : i32, i32
  }
  func.func @transform_3(%arg0: i32) -> (i32, i32) {
    %c0_i32 = arith.constant 0 : i32
    %c0_i32_0 = arith.constant 0 : i32
    %c0_i32_1 = arith.constant 0 : i32
    return %c0_i32, %c0_i32_0 : i32, i32
  }
  func.func @transform_4(%arg0: i32) -> (i32, i32) {
    %c0_i32 = arith.constant 0 : i32
    %c0_i32_0 = arith.constant 0 : i32
    return %arg0, %c0_i32 : i32, i32
  }
  func.func @transform_5(%arg0: i32) -> (i32, i32) {
    %c0_i32 = arith.constant 0 : i32
    %c0_i32_0 = arith.constant 0 : i32
    return %arg0, %c0_i32 : i32, i32
  }
}

module attributes {stable_mosaic.version = 11 : i64} {
  func.func @_linear_kernel(%arg0: i32, %arg1: i32, %arg2: i32, %arg3: memref<32x256xbf16, #tpu.memory_space<vmem>>, %arg4: memref<256x128xbf16, #tpu.memory_space<vmem>>, %arg5: memref<1x128xf32, #tpu.memory_space<vmem>>, %arg6: memref<32x128xbf16, #tpu.memory_space<vmem>>, %arg7: memref<32x128xbf16, #tpu.memory_space<vmem>>, %arg8: memref<32x128xf32, #tpu.memory_space<vmem>>) attributes {dimension_semantics = [#tpu.dimension_semantics<parallel>, #tpu.dimension_semantics<parallel>, #tpu.dimension_semantics<arbitrary>], iteration_bounds = array<i64: 1, 1, 1>, scalar_prefetch = 0 : i64, scratch_operands = 1 : i64, tpu.core_type = #tpu.core_type<tc>, window_params = [{transform_indices = @transform_0, window_bounds = array<i64: 32, 256>}, {transform_indices = @transform_1, window_bounds = array<i64: 256, 128>}, {transform_indices = @transform_2, window_bounds = array<i64: 1, 128>}, {transform_indices = @transform_3, window_bounds = array<i64: 32, 128>}, {transform_indices = @transform_4, window_bounds = array<i64: 32, 128>}]} {
    %c0_i32 = arith.constant 0 : i32
    %0 = arith.cmpi eq, %arg2, %c0_i32 : i32
    %1 = arith.extui %0 : i1 to i32
    %c0_i32_0 = arith.constant 0 : i32
    %2 = arith.cmpi ne, %1, %c0_i32_0 : i32
    scf.if %2 {
      %cst_10 = arith.constant 0.000000e+00 : f32
      %12 = vector.broadcast %cst_10 : f32 to vector<32x128xf32>
      %c0_11 = arith.constant 0 : index
      %c0_12 = arith.constant 0 : index
      %13 = vector.load %arg8[%c0_11, %c0_12] : memref<32x128xf32, #tpu.memory_space<vmem>>, vector<32x128xf32>
      tpu.vector_store %arg8[%c0_11, %c0_12], %12 {strides = array<i32>} : memref<32x128xf32, #tpu.memory_space<vmem>>, vector<32x128xf32>,
    } else {
    }
    %c0 = arith.constant 0 : index
    %c0_1 = arith.constant 0 : index
    %3 = vector.load %arg8[%c0, %c0_1] : memref<32x128xf32, #tpu.memory_space<vmem>>, vector<32x128xf32>
    %c0_2 = arith.constant 0 : index
    %c0_3 = arith.constant 0 : index
    %4 = vector.load %arg3[%c0_2, %c0_3] : memref<32x256xbf16, #tpu.memory_space<vmem>>, vector<32x256xbf16>
    %c0_4 = arith.constant 0 : index
    %c0_5 = arith.constant 0 : index
    %5 = vector.load %arg4[%c0_4, %c0_5] : memref<256x128xbf16, #tpu.memory_space<vmem>>, vector<256x128xbf16>
    %cst = arith.constant dense<0.000000e+00> : vector<32x128xf32>
    %6 = tpu.matmul %4, %5, %cst {dimension_numbers = #tpu.dot_dimension_numbers<[1], [0], [0], [1], [0, 0, 1, 1], [], []>} : vector<32x256xbf16>, vector<256x128xbf16>, vector<32x128xf32> -> vector<32x128xf32>
    %7 = arith.addf %3, %6 : vector<32x128xf32>
    %c0_6 = arith.constant 0 : index
    %c0_7 = arith.constant 0 : index
    %8 = vector.load %arg8[%c0_6, %c0_7] : memref<32x128xf32, #tpu.memory_space<vmem>>, vector<32x128xf32>
    tpu.vector_store %arg8[%c0_6, %c0_7], %7 {strides = array<i32>} : memref<32x128xf32, #tpu.memory_space<vmem>>, vector<32x128xf32>,
    %c0_i32_8 = arith.constant 0 : i32
    %9 = arith.cmpi eq, %arg2, %c0_i32_8 : i32
    %10 = arith.extui %9 : i1 to i32
    %c0_i32_9 = arith.constant 0 : i32
    %11 = arith.cmpi ne, %10, %c0_i32_9 : i32
    scf.if %11 {
      %c0_10 = arith.constant 0 : index
      %c0_11 = arith.constant 0 : index
      %12 = vector.load %arg8[%c0_10, %c0_11] : memref<32x128xf32, #tpu.memory_space<vmem>>, vector<32x128xf32>
      %c0_12 = arith.constant 0 : index
      %c0_13 = arith.constant 0 : index
      %13 = vector.load %arg5[%c0_12, %c0_13] : memref<1x128xf32, #tpu.memory_space<vmem>>, vector<1x128xf32>
      %14 = vector.broadcast %13 : vector<1x128xf32> to vector<32x128xf32>
      %15 = arith.addf %12, %14 : vector<32x128xf32>
      %c0_14 = arith.constant 0 : index
      %c0_15 = arith.constant 0 : index
      %16 = vector.load %arg6[%c0_14, %c0_15] : memref<32x128xbf16, #tpu.memory_space<vmem>>, vector<32x128xbf16>
      %17 = arith.extf %16 : vector<32x128xbf16> to vector<32x128xf32>
      %18 = arith.addf %15, %17 : vector<32x128xf32>
      %19 = arith.truncf %18 : vector<32x128xf32> to vector<32x128xbf16>
      %c0_16 = arith.constant 0 : index
      %c0_17 = arith.constant 0 : index
      %20 = vector.load %arg7[%c0_16, %c0_17] : memref<32x128xbf16, #tpu.memory_space<vmem>>, vector<32x128xbf16>
      tpu.vector_store %arg7[%c0_16, %c0_17], %19 {strides = array<i32>} : memref<32x128xbf16, #tpu.memory_space<vmem>>, vector<32x128xbf16>,
    } else {
    }
    return
  }
  func.func @transform_0(%arg0: i32, %arg1: i32, %arg2: i32) -> (i32, i32) {
    %c0_i32 = arith.constant 0 : i32
    return %arg0, %arg2 : i32, i32
  }
  func.func @transform_1(%arg0: i32, %arg1: i32, %arg2: i32) -> (i32, i32) {
    %c0_i32 = arith.constant 0 : i32
    return %arg2, %arg1 : i32, i32
  }
  func.func @transform_2(%arg0: i32, %arg1: i32, %arg2: i32) -> (i32, i32) {
    %c0_i32 = arith.constant 0 : i32
    %c0_i32_0 = arith.constant 0 : i32
    return %c0_i32, %arg1 : i32, i32
  }
  func.func @transform_3(%arg0: i32, %arg1: i32, %arg2: i32) -> (i32, i32) {
    %c0_i32 = arith.constant 0 : i32
    return %arg0, %arg1 : i32, i32
  }
  func.func @transform_4(%arg0: i32, %arg1: i32, %arg2: i32) -> (i32, i32) {
    %c0_i32 = arith.constant 0 : i32
    return %arg0, %arg1 : i32, i32
  }
}

module attributes {stable_mosaic.version = 11 : i64} {
  func.func @_linear_kernel(%arg0: i32, %arg1: i32, %arg2: i32, %arg3: memref<16x128xbf16, #tpu.memory_space<vmem>>, %arg4: memref<128x384xbf16, #tpu.memory_space<vmem>>, %arg5: memref<1x384xf32, #tpu.memory_space<vmem>>, %arg6: memref<16x384xbf16, #tpu.memory_space<vmem>>, %arg7: memref<16x384xf32, #tpu.memory_space<vmem>>) attributes {dimension_semantics = [#tpu.dimension_semantics<parallel>, #tpu.dimension_semantics<parallel>, #tpu.dimension_semantics<arbitrary>], iteration_bounds = array<i64: 1, 1, 1>, scalar_prefetch = 0 : i64, scratch_operands = 1 : i64, tpu.core_type = #tpu.core_type<tc>, window_params = [{transform_indices = @transform_0, window_bounds = array<i64: 16, 128>}, {transform_indices = @transform_1, window_bounds = array<i64: 128, 384>}, {transform_indices = @transform_2, window_bounds = array<i64: 1, 384>}, {transform_indices = @transform_3, window_bounds = array<i64: 16, 384>}]} {
    %c0_i32 = arith.constant 0 : i32
    %0 = arith.cmpi eq, %arg2, %c0_i32 : i32
    %1 = arith.extui %0 : i1 to i32
    %c0_i32_0 = arith.constant 0 : i32
    %2 = arith.cmpi ne, %1, %c0_i32_0 : i32
    scf.if %2 {
      %cst_10 = arith.constant 0.000000e+00 : f32
      %12 = vector.broadcast %cst_10 : f32 to vector<16x384xf32>
      %c0_11 = arith.constant 0 : index
      %c0_12 = arith.constant 0 : index
      %13 = vector.load %arg7[%c0_11, %c0_12] : memref<16x384xf32, #tpu.memory_space<vmem>>, vector<16x384xf32>
      tpu.vector_store %arg7[%c0_11, %c0_12], %12 {strides = array<i32>} : memref<16x384xf32, #tpu.memory_space<vmem>>, vector<16x384xf32>,
    } else {
    }
    %c0 = arith.constant 0 : index
    %c0_1 = arith.constant 0 : index
    %3 = vector.load %arg7[%c0, %c0_1] : memref<16x384xf32, #tpu.memory_space<vmem>>, vector<16x384xf32>
    %c0_2 = arith.constant 0 : index
    %c0_3 = arith.constant 0 : index
    %4 = vector.load %arg3[%c0_2, %c0_3] : memref<16x128xbf16, #tpu.memory_space<vmem>>, vector<16x128xbf16>
    %c0_4 = arith.constant 0 : index
    %c0_5 = arith.constant 0 : index
    %5 = vector.load %arg4[%c0_4, %c0_5] : memref<128x384xbf16, #tpu.memory_space<vmem>>, vector<128x384xbf16>
    %cst = arith.constant dense<0.000000e+00> : vector<16x384xf32>
    %6 = tpu.matmul %4, %5, %cst {dimension_numbers = #tpu.dot_dimension_numbers<[1], [0], [0], [1], [0, 0, 1, 1], [], []>} : vector<16x128xbf16>, vector<128x384xbf16>, vector<16x384xf32> -> vector<16x384xf32>
    %7 = arith.addf %3, %6 : vector<16x384xf32>
    %c0_6 = arith.constant 0 : index
    %c0_7 = arith.constant 0 : index
    %8 = vector.load %arg7[%c0_6, %c0_7] : memref<16x384xf32, #tpu.memory_space<vmem>>, vector<16x384xf32>
    tpu.vector_store %arg7[%c0_6, %c0_7], %7 {strides = array<i32>} : memref<16x384xf32, #tpu.memory_space<vmem>>, vector<16x384xf32>,
    %c0_i32_8 = arith.constant 0 : i32
    %9 = arith.cmpi eq, %arg2, %c0_i32_8 : i32
    %10 = arith.extui %9 : i1 to i32
    %c0_i32_9 = arith.constant 0 : i32
    %11 = arith.cmpi ne, %10, %c0_i32_9 : i32
    scf.if %11 {
      %c0_10 = arith.constant 0 : index
      %c0_11 = arith.constant 0 : index
      %12 = vector.load %arg7[%c0_10, %c0_11] : memref<16x384xf32, #tpu.memory_space<vmem>>, vector<16x384xf32>
      %c0_12 = arith.constant 0 : index
      %c0_13 = arith.constant 0 : index
      %13 = vector.load %arg5[%c0_12, %c0_13] : memref<1x384xf32, #tpu.memory_space<vmem>>, vector<1x384xf32>
      %14 = vector.broadcast %13 : vector<1x384xf32> to vector<16x384xf32>
      %15 = arith.addf %12, %14 : vector<16x384xf32>
      %16 = arith.truncf %15 : vector<16x384xf32> to vector<16x384xbf16>
      %c0_14 = arith.constant 0 : index
      %c0_15 = arith.constant 0 : index
      %17 = vector.load %arg6[%c0_14, %c0_15] : memref<16x384xbf16, #tpu.memory_space<vmem>>, vector<16x384xbf16>
      tpu.vector_store %arg6[%c0_14, %c0_15], %16 {strides = array<i32>} : memref<16x384xbf16, #tpu.memory_space<vmem>>, vector<16x384xbf16>,
    } else {
    }
    return
  }
  func.func @transform_0(%arg0: i32, %arg1: i32, %arg2: i32) -> (i32, i32) {
    %c0_i32 = arith.constant 0 : i32
    return %arg0, %arg2 : i32, i32
  }
  func.func @transform_1(%arg0: i32, %arg1: i32, %arg2: i32) -> (i32, i32) {
    %c0_i32 = arith.constant 0 : i32
    return %arg2, %arg1 : i32, i32
  }
  func.func @transform_2(%arg0: i32, %arg1: i32, %arg2: i32) -> (i32, i32) {
    %c0_i32 = arith.constant 0 : i32
    %c0_i32_0 = arith.constant 0 : i32
    return %c0_i32, %arg1 : i32, i32
  }
  func.func @transform_3(%arg0: i32, %arg1: i32, %arg2: i32) -> (i32, i32) {
    %c0_i32 = arith.constant 0 : i32
    return %arg0, %arg1 : i32, i32
  }
}

module attributes {stable_mosaic.version = 11 : i64} {
  func.func @_ln_kernel(%arg0: i32, %arg1: memref<16x128xbf16, #tpu.memory_space<vmem>>, %arg2: memref<1x128xf32, #tpu.memory_space<vmem>>, %arg3: memref<1x128xf32, #tpu.memory_space<vmem>>, %arg4: memref<16x128xbf16, #tpu.memory_space<vmem>>) attributes {dimension_semantics = [#tpu.dimension_semantics<parallel>], iteration_bounds = array<i64: 1>, scalar_prefetch = 0 : i64, scratch_operands = 0 : i64, tpu.core_type = #tpu.core_type<tc>, window_params = [{transform_indices = @transform_0, window_bounds = array<i64: 16, 128>}, {pipeline_mode = #tpu.pipeline_mode<synchronous>, transform_indices = @transform_1, window_bounds = array<i64: 1, 128>}, {pipeline_mode = #tpu.pipeline_mode<synchronous>, transform_indices = @transform_2, window_bounds = array<i64: 1, 128>}, {transform_indices = @transform_3, window_bounds = array<i64: 16, 128>}]} {
    %c0 = arith.constant 0 : index
    %c0_0 = arith.constant 0 : index
    %0 = vector.load %arg1[%c0, %c0_0] : memref<16x128xbf16, #tpu.memory_space<vmem>>, vector<16x128xbf16>
    %1 = arith.extf %0 : vector<16x128xbf16> to vector<16x128xf32>
    %cst = arith.constant dense<0.000000e+00> : vector<16xf32>
    %2 = vector.multi_reduction <add>, %1, %cst [1] : vector<16x128xf32> to vector<16xf32>
    %3 = vector.shape_cast %2 : vector<16xf32> to vector<16x1xf32>
    %cst_1 = arith.constant 1.280000e+02 : f32
    %4 = vector.broadcast %cst_1 : f32 to vector<16x1xf32>
    %5 = arith.divf %3, %4 : vector<16x1xf32>
    %6 = vector.broadcast %5 : vector<16x1xf32> to vector<16x128xf32>
    %7 = arith.subf %1, %6 : vector<16x128xf32>
    %8 = arith.mulf %7, %7 : vector<16x128xf32>
    %cst_2 = arith.constant dense<0.000000e+00> : vector<16xf32>
    %9 = vector.multi_reduction <add>, %8, %cst_2 [1] : vector<16x128xf32> to vector<16xf32>
    %10 = vector.shape_cast %9 : vector<16xf32> to vector<16x1xf32>
    %cst_3 = arith.constant 1.280000e+02 : f32
    %11 = vector.broadcast %cst_3 : f32 to vector<16x1xf32>
    %12 = arith.divf %10, %11 : vector<16x1xf32>
    %cst_4 = arith.constant 9.99999996E-13 : f32
    %13 = vector.broadcast %cst_4 : f32 to vector<16x1xf32>
    %14 = arith.addf %12, %13 : vector<16x1xf32>
    %15 = math.rsqrt %14 : vector<16x1xf32>
    %16 = vector.broadcast %15 : vector<16x1xf32> to vector<16x128xf32>
    %17 = arith.mulf %7, %16 : vector<16x128xf32>
    %c0_5 = arith.constant 0 : index
    %c0_6 = arith.constant 0 : index
    %18 = vector.load %arg2[%c0_5, %c0_6] : memref<1x128xf32, #tpu.memory_space<vmem>>, vector<1x128xf32>
    %19 = vector.broadcast %18 : vector<1x128xf32> to vector<16x128xf32>
    %20 = arith.mulf %17, %19 : vector<16x128xf32>
    %c0_7 = arith.constant 0 : index
    %c0_8 = arith.constant 0 : index
    %21 = vector.load %arg3[%c0_7, %c0_8] : memref<1x128xf32, #tpu.memory_space<vmem>>, vector<1x128xf32>
    %22 = vector.broadcast %21 : vector<1x128xf32> to vector<16x128xf32>
    %23 = arith.addf %20, %22 : vector<16x128xf32>
    %24 = arith.truncf %23 : vector<16x128xf32> to vector<16x128xbf16>
    %c0_9 = arith.constant 0 : index
    %c0_10 = arith.constant 0 : index
    %25 = vector.load %arg4[%c0_9, %c0_10] : memref<16x128xbf16, #tpu.memory_space<vmem>>, vector<16x128xbf16>
    tpu.vector_store %arg4[%c0_9, %c0_10], %24 {strides = array<i32>} : memref<16x128xbf16, #tpu.memory_space<vmem>>, vector<16x128xbf16>,
    return
  }
  func.func @transform_0(%arg0: i32) -> (i32, i32) {
    %c0_i32 = arith.constant 0 : i32
    %c0_i32_0 = arith.constant 0 : i32
    return %arg0, %c0_i32 : i32, i32
  }
  func.func @transform_1(%arg0: i32) -> (i32, i32) {
    %c0_i32 = arith.constant 0 : i32
    %c0_i32_0 = arith.constant 0 : i32
    %c0_i32_1 = arith.constant 0 : i32
    return %c0_i32, %c0_i32_0 : i32, i32
  }
  func.func @transform_2(%arg0: i32) -> (i32, i32) {
    %c0_i32 = arith.constant 0 : i32
    %c0_i32_0 = arith.constant 0 : i32
    %c0_i32_1 = arith.constant 0 : i32
    return %c0_i32, %c0_i32_0 : i32, i32
  }
  func.func @transform_3(%arg0: i32) -> (i32, i32) {
    %c0_i32 = arith.constant 0 : i32
    %c0_i32_0 = arith.constant 0 : i32
    return %arg0, %c0_i32 : i32, i32
  }
}

module attributes {stable_mosaic.version = 11 : i64} {
  func.func @_attn_kernel(%arg0: i32, %arg1: i32, %arg2: memref<1x1x8x32xbf16, #tpu.memory_space<vmem>>, %arg3: memref<1x1x8x32xbf16, #tpu.memory_space<vmem>>, %arg4: memref<1x1x8x32xbf16, #tpu.memory_space<vmem>>, %arg5: memref<1x1x8xf32, #tpu.memory_space<vmem>>, %arg6: memref<1x1x8x32xbf16, #tpu.memory_space<vmem>>) attributes {dimension_semantics = [#tpu.dimension_semantics<parallel>, #tpu.dimension_semantics<parallel>], iteration_bounds = array<i64: 2, 4>, scalar_prefetch = 0 : i64, scratch_operands = 0 : i64, tpu.core_type = #tpu.core_type<tc>, window_params = [{transform_indices = @transform_0, window_bounds = array<i64: 1, 1, 8, 32>}, {transform_indices = @transform_1, window_bounds = array<i64: 1, 1, 8, 32>}, {transform_indices = @transform_2, window_bounds = array<i64: 1, 1, 8, 32>}, {transform_indices = @transform_3, window_bounds = array<i64: 1, 1, 8>}, {transform_indices = @transform_4, window_bounds = array<i64: 1, 1, 8, 32>}]} {
    %c0 = arith.constant 0 : index
    %c0_0 = arith.constant 0 : index
    %c0_1 = arith.constant 0 : index
    %c0_2 = arith.constant 0 : index
    %0 = vector.load %arg2[%c0, %c0_0, %c0_1, %c0_2] : memref<1x1x8x32xbf16, #tpu.memory_space<vmem>>, vector<1x1x8x32xbf16>
    %1 = vector.shape_cast %0 : vector<1x1x8x32xbf16> to vector<8x32xbf16>
    %c0_3 = arith.constant 0 : index
    %c0_4 = arith.constant 0 : index
    %c0_5 = arith.constant 0 : index
    %c0_6 = arith.constant 0 : index
    %2 = vector.load %arg3[%c0_3, %c0_4, %c0_5, %c0_6] : memref<1x1x8x32xbf16, #tpu.memory_space<vmem>>, vector<1x1x8x32xbf16>
    %3 = vector.shape_cast %2 : vector<1x1x8x32xbf16> to vector<8x32xbf16>
    %cst = arith.constant dense<0.000000e+00> : vector<8x8xf32>
    %4 = tpu.matmul %1, %3, %cst {dimension_numbers = #tpu.dot_dimension_numbers<[1], [1], [0], [0], [0, 0, 1, 0], [], []>} : vector<8x32xbf16>, vector<8x32xbf16>, vector<8x8xf32> -> vector<8x8xf32>
    %c0_7 = arith.constant 0 : index
    %c0_8 = arith.constant 0 : index
    %c0_9 = arith.constant 0 : index
    %5 = vector.load %arg5[%c0_7, %c0_8, %c0_9] : memref<1x1x8xf32, #tpu.memory_space<vmem>>, vector<1x1x8xf32>
    %6 = vector.shape_cast %5 : vector<1x1x8xf32> to vector<1x8xf32>
    %7 = vector.broadcast %6 : vector<1x8xf32> to vector<8x8xf32>
    %8 = arith.addf %4, %7 : vector<8x8xf32>
    %cst_10 = arith.constant dense<0xFF800000> : vector<8xf32>
    %9 = vector.multi_reduction <maximumf>, %8, %cst_10 [1] : vector<8x8xf32> to vector<8xf32>
    %10 = vector.shape_cast %9 : vector<8xf32> to vector<8x1xf32>
    %11 = vector.broadcast %10 : vector<8x1xf32> to vector<8x8xf32>
    %12 = arith.subf %8, %11 : vector<8x8xf32>
    %13 = math.exp %12 : vector<8x8xf32>
    %cst_11 = arith.constant dense<0.000000e+00> : vector<8xf32>
    %14 = vector.multi_reduction <add>, %13, %cst_11 [1] : vector<8x8xf32> to vector<8xf32>
    %15 = vector.shape_cast %14 : vector<8xf32> to vector<8x1xf32>
    %16 = tpu.reciprocal %15 {approx = true} : vector<8x1xf32> -> vector<8x1xf32>
    %17 = vector.broadcast %16 : vector<8x1xf32> to vector<8x8xf32>
    %18 = arith.mulf %13, %17 : vector<8x8xf32>
    %19 = arith.truncf %18 : vector<8x8xf32> to vector<8x8xbf16>
    %c0_12 = arith.constant 0 : index
    %c0_13 = arith.constant 0 : index
    %c0_14 = arith.constant 0 : index
    %c0_15 = arith.constant 0 : index
    %20 = vector.load %arg4[%c0_12, %c0_13, %c0_14, %c0_15] : memref<1x1x8x32xbf16, #tpu.memory_space<vmem>>, vector<1x1x8x32xbf16>
    %21 = vector.shape_cast %20 : vector<1x1x8x32xbf16> to vector<8x32xbf16>
    %cst_16 = arith.constant dense<0.000000e+00> : vector<8x32xf32>
    %22 = tpu.matmul %19, %21, %cst_16 {dimension_numbers = #tpu.dot_dimension_numbers<[1], [0], [0], [1], [0, 0, 1, 1], [], []>} : vector<8x8xbf16>, vector<8x32xbf16>, vector<8x32xf32> -> vector<8x32xf32>
    %23 = arith.truncf %22 : vector<8x32xf32> to vector<8x32xbf16>
    %c0_17 = arith.constant 0 : index
    %c0_18 = arith.constant 0 : index
    %c0_19 = arith.constant 0 : index
    %c0_20 = arith.constant 0 : index
    %24 = vector.load %arg6[%c0_17, %c0_18, %c0_19, %c0_20] : memref<1x1x8x32xbf16, #tpu.memory_space<vmem>>, vector<1x1x8x32xbf16>
    %25 = vector.shape_cast %24 : vector<1x1x8x32xbf16> to vector<8x32xbf16>
    %26 = vector.shape_cast %23 : vector<8x32xbf16> to vector<1x1x8x32xbf16>
    tpu.vector_store %arg6[%c0_17, %c0_18, %c0_19, %c0_20], %26 {strides = array<i32>} : memref<1x1x8x32xbf16, #tpu.memory_space<vmem>>, vector<1x1x8x32xbf16>,
    return
  }
  func.func @transform_0(%arg0: i32, %arg1: i32) -> (i32, i32, i32, i32) {
    %c0_i32 = arith.constant 0 : i32
    %c0_i32_0 = arith.constant 0 : i32
    %c0_i32_1 = arith.constant 0 : i32
    return %arg0, %arg1, %c0_i32, %c0_i32_0 : i32, i32, i32, i32
  }
  func.func @transform_1(%arg0: i32, %arg1: i32) -> (i32, i32, i32, i32) {
    %c0_i32 = arith.constant 0 : i32
    %c0_i32_0 = arith.constant 0 : i32
    %c0_i32_1 = arith.constant 0 : i32
    return %arg0, %arg1, %c0_i32, %c0_i32_0 : i32, i32, i32, i32
  }
  func.func @transform_2(%arg0: i32, %arg1: i32) -> (i32, i32, i32, i32) {
    %c0_i32 = arith.constant 0 : i32
    %c0_i32_0 = arith.constant 0 : i32
    %c0_i32_1 = arith.constant 0 : i32
    return %arg0, %arg1, %c0_i32, %c0_i32_0 : i32, i32, i32, i32
  }
  func.func @transform_3(%arg0: i32, %arg1: i32) -> (i32, i32, i32) {
    %c0_i32 = arith.constant 0 : i32
    %c0_i32_0 = arith.constant 0 : i32
    %c0_i32_1 = arith.constant 0 : i32
    return %arg0, %c0_i32, %c0_i32_0 : i32, i32, i32
  }
  func.func @transform_4(%arg0: i32, %arg1: i32) -> (i32, i32, i32, i32) {
    %c0_i32 = arith.constant 0 : i32
    %c0_i32_0 = arith.constant 0 : i32
    %c0_i32_1 = arith.constant 0 : i32
    return %arg0, %arg1, %c0_i32, %c0_i32_0 : i32, i32, i32, i32
  }
}

module attributes {stable_mosaic.version = 11 : i64} {
  func.func @_linear_kernel(%arg0: i32, %arg1: i32, %arg2: i32, %arg3: memref<16x128xbf16, #tpu.memory_space<vmem>>, %arg4: memref<128x128xbf16, #tpu.memory_space<vmem>>, %arg5: memref<1x128xf32, #tpu.memory_space<vmem>>, %arg6: memref<16x128xbf16, #tpu.memory_space<vmem>>, %arg7: memref<16x128xf32, #tpu.memory_space<vmem>>) attributes {dimension_semantics = [#tpu.dimension_semantics<parallel>, #tpu.dimension_semantics<parallel>, #tpu.dimension_semantics<arbitrary>], iteration_bounds = array<i64: 1, 1, 1>, scalar_prefetch = 0 : i64, scratch_operands = 1 : i64, tpu.core_type = #tpu.core_type<tc>, window_params = [{transform_indices = @transform_0, window_bounds = array<i64: 16, 128>}, {transform_indices = @transform_1, window_bounds = array<i64: 128, 128>}, {transform_indices = @transform_2, window_bounds = array<i64: 1, 128>}, {transform_indices = @transform_3, window_bounds = array<i64: 16, 128>}]} {
    %c0_i32 = arith.constant 0 : i32
    %0 = arith.cmpi eq, %arg2, %c0_i32 : i32
    %1 = arith.extui %0 : i1 to i32
    %c0_i32_0 = arith.constant 0 : i32
    %2 = arith.cmpi ne, %1, %c0_i32_0 : i32
    scf.if %2 {
      %cst_10 = arith.constant 0.000000e+00 : f32
      %12 = vector.broadcast %cst_10 : f32 to vector<16x128xf32>
      %c0_11 = arith.constant 0 : index
      %c0_12 = arith.constant 0 : index
      %13 = vector.load %arg7[%c0_11, %c0_12] : memref<16x128xf32, #tpu.memory_space<vmem>>, vector<16x128xf32>
      tpu.vector_store %arg7[%c0_11, %c0_12], %12 {strides = array<i32>} : memref<16x128xf32, #tpu.memory_space<vmem>>, vector<16x128xf32>,
    } else {
    }
    %c0 = arith.constant 0 : index
    %c0_1 = arith.constant 0 : index
    %3 = vector.load %arg7[%c0, %c0_1] : memref<16x128xf32, #tpu.memory_space<vmem>>, vector<16x128xf32>
    %c0_2 = arith.constant 0 : index
    %c0_3 = arith.constant 0 : index
    %4 = vector.load %arg3[%c0_2, %c0_3] : memref<16x128xbf16, #tpu.memory_space<vmem>>, vector<16x128xbf16>
    %c0_4 = arith.constant 0 : index
    %c0_5 = arith.constant 0 : index
    %5 = vector.load %arg4[%c0_4, %c0_5] : memref<128x128xbf16, #tpu.memory_space<vmem>>, vector<128x128xbf16>
    %cst = arith.constant dense<0.000000e+00> : vector<16x128xf32>
    %6 = tpu.matmul %4, %5, %cst {dimension_numbers = #tpu.dot_dimension_numbers<[1], [0], [0], [1], [0, 0, 1, 1], [], []>} : vector<16x128xbf16>, vector<128x128xbf16>, vector<16x128xf32> -> vector<16x128xf32>
    %7 = arith.addf %3, %6 : vector<16x128xf32>
    %c0_6 = arith.constant 0 : index
    %c0_7 = arith.constant 0 : index
    %8 = vector.load %arg7[%c0_6, %c0_7] : memref<16x128xf32, #tpu.memory_space<vmem>>, vector<16x128xf32>
    tpu.vector_store %arg7[%c0_6, %c0_7], %7 {strides = array<i32>} : memref<16x128xf32, #tpu.memory_space<vmem>>, vector<16x128xf32>,
    %c0_i32_8 = arith.constant 0 : i32
    %9 = arith.cmpi eq, %arg2, %c0_i32_8 : i32
    %10 = arith.extui %9 : i1 to i32
    %c0_i32_9 = arith.constant 0 : i32
    %11 = arith.cmpi ne, %10, %c0_i32_9 : i32
    scf.if %11 {
      %c0_10 = arith.constant 0 : index
      %c0_11 = arith.constant 0 : index
      %12 = vector.load %arg7[%c0_10, %c0_11] : memref<16x128xf32, #tpu.memory_space<vmem>>, vector<16x128xf32>
      %c0_12 = arith.constant 0 : index
      %c0_13 = arith.constant 0 : index
      %13 = vector.load %arg5[%c0_12, %c0_13] : memref<1x128xf32, #tpu.memory_space<vmem>>, vector<1x128xf32>
      %14 = vector.broadcast %13 : vector<1x128xf32> to vector<16x128xf32>
      %15 = arith.addf %12, %14 : vector<16x128xf32>
      %16 = arith.truncf %15 : vector<16x128xf32> to vector<16x128xbf16>
      %c0_14 = arith.constant 0 : index
      %c0_15 = arith.constant 0 : index
      %17 = vector.load %arg6[%c0_14, %c0_15] : memref<16x128xbf16, #tpu.memory_space<vmem>>, vector<16x128xbf16>
      tpu.vector_store %arg6[%c0_14, %c0_15], %16 {strides = array<i32>} : memref<16x128xbf16, #tpu.memory_space<vmem>>, vector<16x128xbf16>,
    } else {
    }
    return
  }
  func.func @transform_0(%arg0: i32, %arg1: i32, %arg2: i32) -> (i32, i32) {
    %c0_i32 = arith.constant 0 : i32
    return %arg0, %arg2 : i32, i32
  }
  func.func @transform_1(%arg0: i32, %arg1: i32, %arg2: i32) -> (i32, i32) {
    %c0_i32 = arith.constant 0 : i32
    return %arg2, %arg1 : i32, i32
  }
  func.func @transform_2(%arg0: i32, %arg1: i32, %arg2: i32) -> (i32, i32) {
    %c0_i32 = arith.constant 0 : i32
    %c0_i32_0 = arith.constant 0 : i32
    return %c0_i32, %arg1 : i32, i32
  }
  func.func @transform_3(%arg0: i32, %arg1: i32, %arg2: i32) -> (i32, i32) {
    %c0_i32 = arith.constant 0 : i32
    return %arg0, %arg1 : i32, i32
  }
}

module attributes {stable_mosaic.version = 11 : i64} {
  func.func @_ln_kernel(%arg0: i32, %arg1: memref<16x128xbf16, #tpu.memory_space<vmem>>, %arg2: memref<16x128xbf16, #tpu.memory_space<vmem>>, %arg3: memref<1x128xf32, #tpu.memory_space<vmem>>, %arg4: memref<1x128xf32, #tpu.memory_space<vmem>>, %arg5: memref<16x128xbf16, #tpu.memory_space<vmem>>) attributes {dimension_semantics = [#tpu.dimension_semantics<parallel>], iteration_bounds = array<i64: 1>, scalar_prefetch = 0 : i64, scratch_operands = 0 : i64, tpu.core_type = #tpu.core_type<tc>, window_params = [{transform_indices = @transform_0, window_bounds = array<i64: 16, 128>}, {transform_indices = @transform_1, window_bounds = array<i64: 16, 128>}, {pipeline_mode = #tpu.pipeline_mode<synchronous>, transform_indices = @transform_2, window_bounds = array<i64: 1, 128>}, {pipeline_mode = #tpu.pipeline_mode<synchronous>, transform_indices = @transform_3, window_bounds = array<i64: 1, 128>}, {transform_indices = @transform_4, window_bounds = array<i64: 16, 128>}]} {
    %c0 = arith.constant 0 : index
    %c0_0 = arith.constant 0 : index
    %0 = vector.load %arg1[%c0, %c0_0] : memref<16x128xbf16, #tpu.memory_space<vmem>>, vector<16x128xbf16>
    %1 = arith.extf %0 : vector<16x128xbf16> to vector<16x128xf32>
    %c0_1 = arith.constant 0 : index
    %c0_2 = arith.constant 0 : index
    %2 = vector.load %arg2[%c0_1, %c0_2] : memref<16x128xbf16, #tpu.memory_space<vmem>>, vector<16x128xbf16>
    %3 = arith.extf %2 : vector<16x128xbf16> to vector<16x128xf32>
    %4 = arith.addf %1, %3 : vector<16x128xf32>
    %cst = arith.constant dense<0.000000e+00> : vector<16xf32>
    %5 = vector.multi_reduction <add>, %4, %cst [1] : vector<16x128xf32> to vector<16xf32>
    %6 = vector.shape_cast %5 : vector<16xf32> to vector<16x1xf32>
    %cst_3 = arith.constant 1.280000e+02 : f32
    %7 = vector.broadcast %cst_3 : f32 to vector<16x1xf32>
    %8 = arith.divf %6, %7 : vector<16x1xf32>
    %9 = vector.broadcast %8 : vector<16x1xf32> to vector<16x128xf32>
    %10 = arith.subf %4, %9 : vector<16x128xf32>
    %11 = arith.mulf %10, %10 : vector<16x128xf32>
    %cst_4 = arith.constant dense<0.000000e+00> : vector<16xf32>
    %12 = vector.multi_reduction <add>, %11, %cst_4 [1] : vector<16x128xf32> to vector<16xf32>
    %13 = vector.shape_cast %12 : vector<16xf32> to vector<16x1xf32>
    %cst_5 = arith.constant 1.280000e+02 : f32
    %14 = vector.broadcast %cst_5 : f32 to vector<16x1xf32>
    %15 = arith.divf %13, %14 : vector<16x1xf32>
    %cst_6 = arith.constant 9.99999996E-13 : f32
    %16 = vector.broadcast %cst_6 : f32 to vector<16x1xf32>
    %17 = arith.addf %15, %16 : vector<16x1xf32>
    %18 = math.rsqrt %17 : vector<16x1xf32>
    %19 = vector.broadcast %18 : vector<16x1xf32> to vector<16x128xf32>
    %20 = arith.mulf %10, %19 : vector<16x128xf32>
    %c0_7 = arith.constant 0 : index
    %c0_8 = arith.constant 0 : index
    %21 = vector.load %arg3[%c0_7, %c0_8] : memref<1x128xf32, #tpu.memory_space<vmem>>, vector<1x128xf32>
    %22 = vector.broadcast %21 : vector<1x128xf32> to vector<16x128xf32>
    %23 = arith.mulf %20, %22 : vector<16x128xf32>
    %c0_9 = arith.constant 0 : index
    %c0_10 = arith.constant 0 : index
    %24 = vector.load %arg4[%c0_9, %c0_10] : memref<1x128xf32, #tpu.memory_space<vmem>>, vector<1x128xf32>
    %25 = vector.broadcast %24 : vector<1x128xf32> to vector<16x128xf32>
    %26 = arith.addf %23, %25 : vector<16x128xf32>
    %27 = arith.truncf %26 : vector<16x128xf32> to vector<16x128xbf16>
    %c0_11 = arith.constant 0 : index
    %c0_12 = arith.constant 0 : index
    %28 = vector.load %arg5[%c0_11, %c0_12] : memref<16x128xbf16, #tpu.memory_space<vmem>>, vector<16x128xbf16>
    tpu.vector_store %arg5[%c0_11, %c0_12], %27 {strides = array<i32>} : memref<16x128xbf16, #tpu.memory_space<vmem>>, vector<16x128xbf16>,
    return
  }
  func.func @transform_0(%arg0: i32) -> (i32, i32) {
    %c0_i32 = arith.constant 0 : i32
    %c0_i32_0 = arith.constant 0 : i32
    return %arg0, %c0_i32 : i32, i32
  }
  func.func @transform_1(%arg0: i32) -> (i32, i32) {
    %c0_i32 = arith.constant 0 : i32
    %c0_i32_0 = arith.constant 0 : i32
    return %arg0, %c0_i32 : i32, i32
  }
  func.func @transform_2(%arg0: i32) -> (i32, i32) {
    %c0_i32 = arith.constant 0 : i32
    %c0_i32_0 = arith.constant 0 : i32
    %c0_i32_1 = arith.constant 0 : i32
    return %c0_i32, %c0_i32_0 : i32, i32
  }
  func.func @transform_3(%arg0: i32) -> (i32, i32) {
    %c0_i32 = arith.constant 0 : i32
    %c0_i32_0 = arith.constant 0 : i32
    %c0_i32_1 = arith.constant 0 : i32
    return %c0_i32, %c0_i32_0 : i32, i32
  }
  func.func @transform_4(%arg0: i32) -> (i32, i32) {
    %c0_i32 = arith.constant 0 : i32
    %c0_i32_0 = arith.constant 0 : i32
    return %arg0, %c0_i32 : i32, i32
  }
}

module attributes {stable_mosaic.version = 11 : i64} {
  func.func @_linear_kernel(%arg0: i32, %arg1: i32, %arg2: i32, %arg3: memref<16x128xbf16, #tpu.memory_space<vmem>>, %arg4: memref<128x256xbf16, #tpu.memory_space<vmem>>, %arg5: memref<1x256xf32, #tpu.memory_space<vmem>>, %arg6: memref<16x256xbf16, #tpu.memory_space<vmem>>, %arg7: memref<16x256xf32, #tpu.memory_space<vmem>>) attributes {dimension_semantics = [#tpu.dimension_semantics<parallel>, #tpu.dimension_semantics<parallel>, #tpu.dimension_semantics<arbitrary>], iteration_bounds = array<i64: 1, 1, 1>, scalar_prefetch = 0 : i64, scratch_operands = 1 : i64, tpu.core_type = #tpu.core_type<tc>, window_params = [{transform_indices = @transform_0, window_bounds = array<i64: 16, 128>}, {transform_indices = @transform_1, window_bounds = array<i64: 128, 256>}, {transform_indices = @transform_2, window_bounds = array<i64: 1, 256>}, {transform_indices = @transform_3, window_bounds = array<i64: 16, 256>}]} {
    %c0_i32 = arith.constant 0 : i32
    %0 = arith.cmpi eq, %arg2, %c0_i32 : i32
    %1 = arith.extui %0 : i1 to i32
    %c0_i32_0 = arith.constant 0 : i32
    %2 = arith.cmpi ne, %1, %c0_i32_0 : i32
    scf.if %2 {
      %cst_10 = arith.constant 0.000000e+00 : f32
      %12 = vector.broadcast %cst_10 : f32 to vector<16x256xf32>
      %c0_11 = arith.constant 0 : index
      %c0_12 = arith.constant 0 : index
      %13 = vector.load %arg7[%c0_11, %c0_12] : memref<16x256xf32, #tpu.memory_space<vmem>>, vector<16x256xf32>
      tpu.vector_store %arg7[%c0_11, %c0_12], %12 {strides = array<i32>} : memref<16x256xf32, #tpu.memory_space<vmem>>, vector<16x256xf32>,
    } else {
    }
    %c0 = arith.constant 0 : index
    %c0_1 = arith.constant 0 : index
    %3 = vector.load %arg7[%c0, %c0_1] : memref<16x256xf32, #tpu.memory_space<vmem>>, vector<16x256xf32>
    %c0_2 = arith.constant 0 : index
    %c0_3 = arith.constant 0 : index
    %4 = vector.load %arg3[%c0_2, %c0_3] : memref<16x128xbf16, #tpu.memory_space<vmem>>, vector<16x128xbf16>
    %c0_4 = arith.constant 0 : index
    %c0_5 = arith.constant 0 : index
    %5 = vector.load %arg4[%c0_4, %c0_5] : memref<128x256xbf16, #tpu.memory_space<vmem>>, vector<128x256xbf16>
    %cst = arith.constant dense<0.000000e+00> : vector<16x256xf32>
    %6 = tpu.matmul %4, %5, %cst {dimension_numbers = #tpu.dot_dimension_numbers<[1], [0], [0], [1], [0, 0, 1, 1], [], []>} : vector<16x128xbf16>, vector<128x256xbf16>, vector<16x256xf32> -> vector<16x256xf32>
    %7 = arith.addf %3, %6 : vector<16x256xf32>
    %c0_6 = arith.constant 0 : index
    %c0_7 = arith.constant 0 : index
    %8 = vector.load %arg7[%c0_6, %c0_7] : memref<16x256xf32, #tpu.memory_space<vmem>>, vector<16x256xf32>
    tpu.vector_store %arg7[%c0_6, %c0_7], %7 {strides = array<i32>} : memref<16x256xf32, #tpu.memory_space<vmem>>, vector<16x256xf32>,
    %c0_i32_8 = arith.constant 0 : i32
    %9 = arith.cmpi eq, %arg2, %c0_i32_8 : i32
    %10 = arith.extui %9 : i1 to i32
    %c0_i32_9 = arith.constant 0 : i32
    %11 = arith.cmpi ne, %10, %c0_i32_9 : i32
    scf.if %11 {
      %c0_10 = arith.constant 0 : index
      %c0_11 = arith.constant 0 : index
      %12 = vector.load %arg7[%c0_10, %c0_11] : memref<16x256xf32, #tpu.memory_space<vmem>>, vector<16x256xf32>
      %c0_12 = arith.constant 0 : index
      %c0_13 = arith.constant 0 : index
      %13 = vector.load %arg5[%c0_12, %c0_13] : memref<1x256xf32, #tpu.memory_space<vmem>>, vector<1x256xf32>
      %14 = vector.broadcast %13 : vector<1x256xf32> to vector<16x256xf32>
      %15 = arith.addf %12, %14 : vector<16x256xf32>
      %cst_14 = arith.constant 5.000000e-01 : f32
      %16 = vector.broadcast %cst_14 : f32 to vector<16x256xf32>
      %17 = arith.mulf %16, %15 : vector<16x256xf32>
      %cst_15 = arith.constant 4.471500e-02 : f32
      %18 = vector.broadcast %cst_15 : f32 to vector<16x256xf32>
      %19 = arith.mulf %18, %15 : vector<16x256xf32>
      %20 = arith.mulf %19, %15 : vector<16x256xf32>
      %21 = arith.mulf %20, %15 : vector<16x256xf32>
      %22 = arith.addf %15, %21 : vector<16x256xf32>
      %cst_16 = arith.constant 0.797884583 : f32
      %23 = vector.broadcast %cst_16 : f32 to vector<16x256xf32>
      %24 = arith.mulf %23, %22 : vector<16x256xf32>
      %25 = math.tanh %24 : vector<16x256xf32>
      %cst_17 = arith.constant 1.000000e+00 : f32
      %26 = vector.broadcast %cst_17 : f32 to vector<16x256xf32>
      %27 = arith.addf %26, %25 : vector<16x256xf32>
      %28 = arith.mulf %17, %27 : vector<16x256xf32>
      %29 = arith.truncf %28 : vector<16x256xf32> to vector<16x256xbf16>
      %c0_18 = arith.constant 0 : index
      %c0_19 = arith.constant 0 : index
      %30 = vector.load %arg6[%c0_18, %c0_19] : memref<16x256xbf16, #tpu.memory_space<vmem>>, vector<16x256xbf16>
      tpu.vector_store %arg6[%c0_18, %c0_19], %29 {strides = array<i32>} : memref<16x256xbf16, #tpu.memory_space<vmem>>, vector<16x256xbf16>,
    } else {
    }
    return
  }
  func.func @transform_0(%arg0: i32, %arg1: i32, %arg2: i32) -> (i32, i32) {
    %c0_i32 = arith.constant 0 : i32
    return %arg0, %arg2 : i32, i32
  }
  func.func @transform_1(%arg0: i32, %arg1: i32, %arg2: i32) -> (i32, i32) {
    %c0_i32 = arith.constant 0 : i32
    return %arg2, %arg1 : i32, i32
  }
  func.func @transform_2(%arg0: i32, %arg1: i32, %arg2: i32) -> (i32, i32) {
    %c0_i32 = arith.constant 0 : i32
    %c0_i32_0 = arith.constant 0 : i32
    return %c0_i32, %arg1 : i32, i32
  }
  func.func @transform_3(%arg0: i32, %arg1: i32, %arg2: i32) -> (i32, i32) {
    %c0_i32 = arith.constant 0 : i32
    return %arg0, %arg1 : i32, i32
  }
}

module attributes {stable_mosaic.version = 11 : i64} {
  func.func @_linear_kernel(%arg0: i32, %arg1: i32, %arg2: i32, %arg3: memref<16x256xbf16, #tpu.memory_space<vmem>>, %arg4: memref<256x128xbf16, #tpu.memory_space<vmem>>, %arg5: memref<1x128xf32, #tpu.memory_space<vmem>>, %arg6: memref<16x128xbf16, #tpu.memory_space<vmem>>, %arg7: memref<16x128xf32, #tpu.memory_space<vmem>>) attributes {dimension_semantics = [#tpu.dimension_semantics<parallel>, #tpu.dimension_semantics<parallel>, #tpu.dimension_semantics<arbitrary>], iteration_bounds = array<i64: 1, 1, 1>, scalar_prefetch = 0 : i64, scratch_operands = 1 : i64, tpu.core_type = #tpu.core_type<tc>, window_params = [{transform_indices = @transform_0, window_bounds = array<i64: 16, 256>}, {transform_indices = @transform_1, window_bounds = array<i64: 256, 128>}, {transform_indices = @transform_2, window_bounds = array<i64: 1, 128>}, {transform_indices = @transform_3, window_bounds = array<i64: 16, 128>}]} {
    %c0_i32 = arith.constant 0 : i32
    %0 = arith.cmpi eq, %arg2, %c0_i32 : i32
    %1 = arith.extui %0 : i1 to i32
    %c0_i32_0 = arith.constant 0 : i32
    %2 = arith.cmpi ne, %1, %c0_i32_0 : i32
    scf.if %2 {
      %cst_10 = arith.constant 0.000000e+00 : f32
      %12 = vector.broadcast %cst_10 : f32 to vector<16x128xf32>
      %c0_11 = arith.constant 0 : index
      %c0_12 = arith.constant 0 : index
      %13 = vector.load %arg7[%c0_11, %c0_12] : memref<16x128xf32, #tpu.memory_space<vmem>>, vector<16x128xf32>
      tpu.vector_store %arg7[%c0_11, %c0_12], %12 {strides = array<i32>} : memref<16x128xf32, #tpu.memory_space<vmem>>, vector<16x128xf32>,
    } else {
    }
    %c0 = arith.constant 0 : index
    %c0_1 = arith.constant 0 : index
    %3 = vector.load %arg7[%c0, %c0_1] : memref<16x128xf32, #tpu.memory_space<vmem>>, vector<16x128xf32>
    %c0_2 = arith.constant 0 : index
    %c0_3 = arith.constant 0 : index
    %4 = vector.load %arg3[%c0_2, %c0_3] : memref<16x256xbf16, #tpu.memory_space<vmem>>, vector<16x256xbf16>
    %c0_4 = arith.constant 0 : index
    %c0_5 = arith.constant 0 : index
    %5 = vector.load %arg4[%c0_4, %c0_5] : memref<256x128xbf16, #tpu.memory_space<vmem>>, vector<256x128xbf16>
    %cst = arith.constant dense<0.000000e+00> : vector<16x128xf32>
    %6 = tpu.matmul %4, %5, %cst {dimension_numbers = #tpu.dot_dimension_numbers<[1], [0], [0], [1], [0, 0, 1, 1], [], []>} : vector<16x256xbf16>, vector<256x128xbf16>, vector<16x128xf32> -> vector<16x128xf32>
    %7 = arith.addf %3, %6 : vector<16x128xf32>
    %c0_6 = arith.constant 0 : index
    %c0_7 = arith.constant 0 : index
    %8 = vector.load %arg7[%c0_6, %c0_7] : memref<16x128xf32, #tpu.memory_space<vmem>>, vector<16x128xf32>
    tpu.vector_store %arg7[%c0_6, %c0_7], %7 {strides = array<i32>} : memref<16x128xf32, #tpu.memory_space<vmem>>, vector<16x128xf32>,
    %c0_i32_8 = arith.constant 0 : i32
    %9 = arith.cmpi eq, %arg2, %c0_i32_8 : i32
    %10 = arith.extui %9 : i1 to i32
    %c0_i32_9 = arith.constant 0 : i32
    %11 = arith.cmpi ne, %10, %c0_i32_9 : i32
    scf.if %11 {
      %c0_10 = arith.constant 0 : index
      %c0_11 = arith.constant 0 : index
      %12 = vector.load %arg7[%c0_10, %c0_11] : memref<16x128xf32, #tpu.memory_space<vmem>>, vector<16x128xf32>
      %c0_12 = arith.constant 0 : index
      %c0_13 = arith.constant 0 : index
      %13 = vector.load %arg5[%c0_12, %c0_13] : memref<1x128xf32, #tpu.memory_space<vmem>>, vector<1x128xf32>
      %14 = vector.broadcast %13 : vector<1x128xf32> to vector<16x128xf32>
      %15 = arith.addf %12, %14 : vector<16x128xf32>
      %16 = arith.truncf %15 : vector<16x128xf32> to vector<16x128xbf16>
      %c0_14 = arith.constant 0 : index
      %c0_15 = arith.constant 0 : index
      %17 = vector.load %arg6[%c0_14, %c0_15] : memref<16x128xbf16, #tpu.memory_space<vmem>>, vector<16x128xbf16>
      tpu.vector_store %arg6[%c0_14, %c0_15], %16 {strides = array<i32>} : memref<16x128xbf16, #tpu.memory_space<vmem>>, vector<16x128xbf16>,
    } else {
    }
    return
  }
  func.func @transform_0(%arg0: i32, %arg1: i32, %arg2: i32) -> (i32, i32) {
    %c0_i32 = arith.constant 0 : i32
    return %arg0, %arg2 : i32, i32
  }
  func.func @transform_1(%arg0: i32, %arg1: i32, %arg2: i32) -> (i32, i32) {
    %c0_i32 = arith.constant 0 : i32
    return %arg2, %arg1 : i32, i32
  }
  func.func @transform_2(%arg0: i32, %arg1: i32, %arg2: i32) -> (i32, i32) {
    %c0_i32 = arith.constant 0 : i32
    %c0_i32_0 = arith.constant 0 : i32
    return %c0_i32, %arg1 : i32, i32
  }
  func.func @transform_3(%arg0: i32, %arg1: i32, %arg2: i32) -> (i32, i32) {
    %c0_i32 = arith.constant 0 : i32
    return %arg0, %arg1 : i32, i32
  }
}

module attributes {stable_mosaic.version = 11 : i64} {
  func.func @_linear_kernel(%arg0: i32, %arg1: i32, %arg2: i32, %arg3: memref<48x128xbf16, #tpu.memory_space<vmem>>, %arg4: memref<128x384xbf16, #tpu.memory_space<vmem>>, %arg5: memref<1x384xf32, #tpu.memory_space<vmem>>, %arg6: memref<48x384xbf16, #tpu.memory_space<vmem>>, %arg7: memref<48x384xf32, #tpu.memory_space<vmem>>) attributes {dimension_semantics = [#tpu.dimension_semantics<parallel>, #tpu.dimension_semantics<parallel>, #tpu.dimension_semantics<arbitrary>], iteration_bounds = array<i64: 1, 1, 1>, scalar_prefetch = 0 : i64, scratch_operands = 1 : i64, tpu.core_type = #tpu.core_type<tc>, window_params = [{transform_indices = @transform_0, window_bounds = array<i64: 48, 128>}, {transform_indices = @transform_1, window_bounds = array<i64: 128, 384>}, {transform_indices = @transform_2, window_bounds = array<i64: 1, 384>}, {transform_indices = @transform_3, window_bounds = array<i64: 48, 384>}]} {
    %c0_i32 = arith.constant 0 : i32
    %0 = arith.cmpi eq, %arg2, %c0_i32 : i32
    %1 = arith.extui %0 : i1 to i32
    %c0_i32_0 = arith.constant 0 : i32
    %2 = arith.cmpi ne, %1, %c0_i32_0 : i32
    scf.if %2 {
      %cst_10 = arith.constant 0.000000e+00 : f32
      %12 = vector.broadcast %cst_10 : f32 to vector<48x384xf32>
      %c0_11 = arith.constant 0 : index
      %c0_12 = arith.constant 0 : index
      %13 = vector.load %arg7[%c0_11, %c0_12] : memref<48x384xf32, #tpu.memory_space<vmem>>, vector<48x384xf32>
      tpu.vector_store %arg7[%c0_11, %c0_12], %12 {strides = array<i32>} : memref<48x384xf32, #tpu.memory_space<vmem>>, vector<48x384xf32>,
    } else {
    }
    %c0 = arith.constant 0 : index
    %c0_1 = arith.constant 0 : index
    %3 = vector.load %arg7[%c0, %c0_1] : memref<48x384xf32, #tpu.memory_space<vmem>>, vector<48x384xf32>
    %c0_2 = arith.constant 0 : index
    %c0_3 = arith.constant 0 : index
    %4 = vector.load %arg3[%c0_2, %c0_3] : memref<48x128xbf16, #tpu.memory_space<vmem>>, vector<48x128xbf16>
    %c0_4 = arith.constant 0 : index
    %c0_5 = arith.constant 0 : index
    %5 = vector.load %arg4[%c0_4, %c0_5] : memref<128x384xbf16, #tpu.memory_space<vmem>>, vector<128x384xbf16>
    %cst = arith.constant dense<0.000000e+00> : vector<48x384xf32>
    %6 = tpu.matmul %4, %5, %cst {dimension_numbers = #tpu.dot_dimension_numbers<[1], [0], [0], [1], [0, 0, 1, 1], [], []>} : vector<48x128xbf16>, vector<128x384xbf16>, vector<48x384xf32> -> vector<48x384xf32>
    %7 = arith.addf %3, %6 : vector<48x384xf32>
    %c0_6 = arith.constant 0 : index
    %c0_7 = arith.constant 0 : index
    %8 = vector.load %arg7[%c0_6, %c0_7] : memref<48x384xf32, #tpu.memory_space<vmem>>, vector<48x384xf32>
    tpu.vector_store %arg7[%c0_6, %c0_7], %7 {strides = array<i32>} : memref<48x384xf32, #tpu.memory_space<vmem>>, vector<48x384xf32>,
    %c0_i32_8 = arith.constant 0 : i32
    %9 = arith.cmpi eq, %arg2, %c0_i32_8 : i32
    %10 = arith.extui %9 : i1 to i32
    %c0_i32_9 = arith.constant 0 : i32
    %11 = arith.cmpi ne, %10, %c0_i32_9 : i32
    scf.if %11 {
      %c0_10 = arith.constant 0 : index
      %c0_11 = arith.constant 0 : index
      %12 = vector.load %arg7[%c0_10, %c0_11] : memref<48x384xf32, #tpu.memory_space<vmem>>, vector<48x384xf32>
      %c0_12 = arith.constant 0 : index
      %c0_13 = arith.constant 0 : index
      %13 = vector.load %arg5[%c0_12, %c0_13] : memref<1x384xf32, #tpu.memory_space<vmem>>, vector<1x384xf32>
      %14 = vector.broadcast %13 : vector<1x384xf32> to vector<48x384xf32>
      %15 = arith.addf %12, %14 : vector<48x384xf32>
      %16 = arith.truncf %15 : vector<48x384xf32> to vector<48x384xbf16>
      %c0_14 = arith.constant 0 : index
      %c0_15 = arith.constant 0 : index
      %17 = vector.load %arg6[%c0_14, %c0_15] : memref<48x384xbf16, #tpu.memory_space<vmem>>, vector<48x384xbf16>
      tpu.vector_store %arg6[%c0_14, %c0_15], %16 {strides = array<i32>} : memref<48x384xbf16, #tpu.memory_space<vmem>>, vector<48x384xbf16>,
    } else {
    }
    return
  }
  func.func @transform_0(%arg0: i32, %arg1: i32, %arg2: i32) -> (i32, i32) {
    %c0_i32 = arith.constant 0 : i32
    return %arg0, %arg2 : i32, i32
  }
  func.func @transform_1(%arg0: i32, %arg1: i32, %arg2: i32) -> (i32, i32) {
    %c0_i32 = arith.constant 0 : i32
    return %arg2, %arg1 : i32, i32
  }
  func.func @transform_2(%arg0: i32, %arg1: i32, %arg2: i32) -> (i32, i32) {
    %c0_i32 = arith.constant 0 : i32
    %c0_i32_0 = arith.constant 0 : i32
    return %c0_i32, %arg1 : i32, i32
  }
  func.func @transform_3(%arg0: i32, %arg1: i32, %arg2: i32) -> (i32, i32) {
    %c0_i32 = arith.constant 0 : i32
    return %arg0, %arg1 : i32, i32
  }
}

module attributes {stable_mosaic.version = 11 : i64} {
  func.func @_attn_kernel(%arg0: i32, %arg1: i32, %arg2: memref<1x1x21x32xbf16, #tpu.memory_space<vmem>>, %arg3: memref<1x1x21x32xbf16, #tpu.memory_space<vmem>>, %arg4: memref<1x1x21x32xbf16, #tpu.memory_space<vmem>>, %arg5: memref<1x21x21xf32, #tpu.memory_space<vmem>>, %arg6: memref<1x1x21x32xbf16, #tpu.memory_space<vmem>>) attributes {dimension_semantics = [#tpu.dimension_semantics<parallel>, #tpu.dimension_semantics<parallel>], iteration_bounds = array<i64: 2, 4>, scalar_prefetch = 0 : i64, scratch_operands = 0 : i64, tpu.core_type = #tpu.core_type<tc>, window_params = [{transform_indices = @transform_0, window_bounds = array<i64: 1, 1, 21, 32>}, {transform_indices = @transform_1, window_bounds = array<i64: 1, 1, 21, 32>}, {transform_indices = @transform_2, window_bounds = array<i64: 1, 1, 21, 32>}, {transform_indices = @transform_3, window_bounds = array<i64: 1, 21, 21>}, {transform_indices = @transform_4, window_bounds = array<i64: 1, 1, 21, 32>}]} {
    %c0 = arith.constant 0 : index
    %c0_0 = arith.constant 0 : index
    %c0_1 = arith.constant 0 : index
    %c0_2 = arith.constant 0 : index
    %0 = vector.load %arg2[%c0, %c0_0, %c0_1, %c0_2] : memref<1x1x21x32xbf16, #tpu.memory_space<vmem>>, vector<1x1x21x32xbf16>
    %1 = vector.shape_cast %0 : vector<1x1x21x32xbf16> to vector<21x32xbf16>
    %c0_3 = arith.constant 0 : index
    %c0_4 = arith.constant 0 : index
    %c0_5 = arith.constant 0 : index
    %c0_6 = arith.constant 0 : index
    %2 = vector.load %arg3[%c0_3, %c0_4, %c0_5, %c0_6] : memref<1x1x21x32xbf16, #tpu.memory_space<vmem>>, vector<1x1x21x32xbf16>
    %3 = vector.shape_cast %2 : vector<1x1x21x32xbf16> to vector<21x32xbf16>
    %cst = arith.constant dense<0.000000e+00> : vector<21x21xf32>
    %4 = tpu.matmul %1, %3, %cst {dimension_numbers = #tpu.dot_dimension_numbers<[1], [1], [0], [0], [0, 0, 1, 0], [], []>} : vector<21x32xbf16>, vector<21x32xbf16>, vector<21x21xf32> -> vector<21x21xf32>
    %c0_7 = arith.constant 0 : index
    %c0_8 = arith.constant 0 : index
    %c0_9 = arith.constant 0 : index
    %5 = vector.load %arg5[%c0_7, %c0_8, %c0_9] : memref<1x21x21xf32, #tpu.memory_space<vmem>>, vector<1x21x21xf32>
    %6 = vector.shape_cast %5 : vector<1x21x21xf32> to vector<21x21xf32>
    %7 = arith.addf %4, %6 : vector<21x21xf32>
    %cst_10 = arith.constant dense<0xFF800000> : vector<21xf32>
    %8 = vector.multi_reduction <maximumf>, %7, %cst_10 [1] : vector<21x21xf32> to vector<21xf32>
    %9 = vector.shape_cast %8 : vector<21xf32> to vector<21x1xf32>
    %10 = vector.broadcast %9 : vector<21x1xf32> to vector<21x21xf32>
    %11 = arith.subf %7, %10 : vector<21x21xf32>
    %12 = math.exp %11 : vector<21x21xf32>
    %cst_11 = arith.constant dense<0.000000e+00> : vector<21xf32>
    %13 = vector.multi_reduction <add>, %12, %cst_11 [1] : vector<21x21xf32> to vector<21xf32>
    %14 = vector.shape_cast %13 : vector<21xf32> to vector<21x1xf32>
    %15 = tpu.reciprocal %14 {approx = true} : vector<21x1xf32> -> vector<21x1xf32>
    %16 = vector.broadcast %15 : vector<21x1xf32> to vector<21x21xf32>
    %17 = arith.mulf %12, %16 : vector<21x21xf32>
    %18 = arith.truncf %17 : vector<21x21xf32> to vector<21x21xbf16>
    %c0_12 = arith.constant 0 : index
    %c0_13 = arith.constant 0 : index
    %c0_14 = arith.constant 0 : index
    %c0_15 = arith.constant 0 : index
    %19 = vector.load %arg4[%c0_12, %c0_13, %c0_14, %c0_15] : memref<1x1x21x32xbf16, #tpu.memory_space<vmem>>, vector<1x1x21x32xbf16>
    %20 = vector.shape_cast %19 : vector<1x1x21x32xbf16> to vector<21x32xbf16>
    %cst_16 = arith.constant dense<0.000000e+00> : vector<21x32xf32>
    %21 = tpu.matmul %18, %20, %cst_16 {dimension_numbers = #tpu.dot_dimension_numbers<[1], [0], [0], [1], [0, 0, 1, 1], [], []>} : vector<21x21xbf16>, vector<21x32xbf16>, vector<21x32xf32> -> vector<21x32xf32>
    %22 = arith.truncf %21 : vector<21x32xf32> to vector<21x32xbf16>
    %c0_17 = arith.constant 0 : index
    %c0_18 = arith.constant 0 : index
    %c0_19 = arith.constant 0 : index
    %c0_20 = arith.constant 0 : index
    %23 = vector.load %arg6[%c0_17, %c0_18, %c0_19, %c0_20] : memref<1x1x21x32xbf16, #tpu.memory_space<vmem>>, vector<1x1x21x32xbf16>
    %24 = vector.shape_cast %23 : vector<1x1x21x32xbf16> to vector<21x32xbf16>
    %25 = vector.shape_cast %22 : vector<21x32xbf16> to vector<1x1x21x32xbf16>
    tpu.vector_store %arg6[%c0_17, %c0_18, %c0_19, %c0_20], %25 {strides = array<i32>} : memref<1x1x21x32xbf16, #tpu.memory_space<vmem>>, vector<1x1x21x32xbf16>,
    return
  }
  func.func @transform_0(%arg0: i32, %arg1: i32) -> (i32, i32, i32, i32) {
    %c0_i32 = arith.constant 0 : i32
    %c0_i32_0 = arith.constant 0 : i32
    %c0_i32_1 = arith.constant 0 : i32
    return %arg0, %arg1, %c0_i32, %c0_i32_0 : i32, i32, i32, i32
  }
  func.func @transform_1(%arg0: i32, %arg1: i32) -> (i32, i32, i32, i32) {
    %c0_i32 = arith.constant 0 : i32
    %c0_i32_0 = arith.constant 0 : i32
    %c0_i32_1 = arith.constant 0 : i32
    return %arg0, %arg1, %c0_i32, %c0_i32_0 : i32, i32, i32, i32
  }
  func.func @transform_2(%arg0: i32, %arg1: i32) -> (i32, i32, i32, i32) {
    %c0_i32 = arith.constant 0 : i32
    %c0_i32_0 = arith.constant 0 : i32
    %c0_i32_1 = arith.constant 0 : i32
    return %arg0, %arg1, %c0_i32, %c0_i32_0 : i32, i32, i32, i32
  }
  func.func @transform_3(%arg0: i32, %arg1: i32) -> (i32, i32, i32) {
    %c0_i32 = arith.constant 0 : i32
    %c0_i32_0 = arith.constant 0 : i32
    %c0_i32_1 = arith.constant 0 : i32
    return %arg0, %c0_i32, %c0_i32_0 : i32, i32, i32
  }
  func.func @transform_4(%arg0: i32, %arg1: i32) -> (i32, i32, i32, i32) {
    %c0_i32 = arith.constant 0 : i32
    %c0_i32_0 = arith.constant 0 : i32
    %c0_i32_1 = arith.constant 0 : i32
    return %arg0, %arg1, %c0_i32, %c0_i32_0 : i32, i32, i32, i32
  }
}

module attributes {stable_mosaic.version = 11 : i64} {
  func.func @_linear_kernel(%arg0: i32, %arg1: i32, %arg2: i32, %arg3: memref<48x128xbf16, #tpu.memory_space<vmem>>, %arg4: memref<128x128xbf16, #tpu.memory_space<vmem>>, %arg5: memref<1x128xf32, #tpu.memory_space<vmem>>, %arg6: memref<48x128xbf16, #tpu.memory_space<vmem>>, %arg7: memref<48x128xf32, #tpu.memory_space<vmem>>) attributes {dimension_semantics = [#tpu.dimension_semantics<parallel>, #tpu.dimension_semantics<parallel>, #tpu.dimension_semantics<arbitrary>], iteration_bounds = array<i64: 1, 1, 1>, scalar_prefetch = 0 : i64, scratch_operands = 1 : i64, tpu.core_type = #tpu.core_type<tc>, window_params = [{transform_indices = @transform_0, window_bounds = array<i64: 48, 128>}, {transform_indices = @transform_1, window_bounds = array<i64: 128, 128>}, {transform_indices = @transform_2, window_bounds = array<i64: 1, 128>}, {transform_indices = @transform_3, window_bounds = array<i64: 48, 128>}]} {
    %c0_i32 = arith.constant 0 : i32
    %0 = arith.cmpi eq, %arg2, %c0_i32 : i32
    %1 = arith.extui %0 : i1 to i32
    %c0_i32_0 = arith.constant 0 : i32
    %2 = arith.cmpi ne, %1, %c0_i32_0 : i32
    scf.if %2 {
      %cst_10 = arith.constant 0.000000e+00 : f32
      %12 = vector.broadcast %cst_10 : f32 to vector<48x128xf32>
      %c0_11 = arith.constant 0 : index
      %c0_12 = arith.constant 0 : index
      %13 = vector.load %arg7[%c0_11, %c0_12] : memref<48x128xf32, #tpu.memory_space<vmem>>, vector<48x128xf32>
      tpu.vector_store %arg7[%c0_11, %c0_12], %12 {strides = array<i32>} : memref<48x128xf32, #tpu.memory_space<vmem>>, vector<48x128xf32>,
    } else {
    }
    %c0 = arith.constant 0 : index
    %c0_1 = arith.constant 0 : index
    %3 = vector.load %arg7[%c0, %c0_1] : memref<48x128xf32, #tpu.memory_space<vmem>>, vector<48x128xf32>
    %c0_2 = arith.constant 0 : index
    %c0_3 = arith.constant 0 : index
    %4 = vector.load %arg3[%c0_2, %c0_3] : memref<48x128xbf16, #tpu.memory_space<vmem>>, vector<48x128xbf16>
    %c0_4 = arith.constant 0 : index
    %c0_5 = arith.constant 0 : index
    %5 = vector.load %arg4[%c0_4, %c0_5] : memref<128x128xbf16, #tpu.memory_space<vmem>>, vector<128x128xbf16>
    %cst = arith.constant dense<0.000000e+00> : vector<48x128xf32>
    %6 = tpu.matmul %4, %5, %cst {dimension_numbers = #tpu.dot_dimension_numbers<[1], [0], [0], [1], [0, 0, 1, 1], [], []>} : vector<48x128xbf16>, vector<128x128xbf16>, vector<48x128xf32> -> vector<48x128xf32>
    %7 = arith.addf %3, %6 : vector<48x128xf32>
    %c0_6 = arith.constant 0 : index
    %c0_7 = arith.constant 0 : index
    %8 = vector.load %arg7[%c0_6, %c0_7] : memref<48x128xf32, #tpu.memory_space<vmem>>, vector<48x128xf32>
    tpu.vector_store %arg7[%c0_6, %c0_7], %7 {strides = array<i32>} : memref<48x128xf32, #tpu.memory_space<vmem>>, vector<48x128xf32>,
    %c0_i32_8 = arith.constant 0 : i32
    %9 = arith.cmpi eq, %arg2, %c0_i32_8 : i32
    %10 = arith.extui %9 : i1 to i32
    %c0_i32_9 = arith.constant 0 : i32
    %11 = arith.cmpi ne, %10, %c0_i32_9 : i32
    scf.if %11 {
      %c0_10 = arith.constant 0 : index
      %c0_11 = arith.constant 0 : index
      %12 = vector.load %arg7[%c0_10, %c0_11] : memref<48x128xf32, #tpu.memory_space<vmem>>, vector<48x128xf32>
      %c0_12 = arith.constant 0 : index
      %c0_13 = arith.constant 0 : index
      %13 = vector.load %arg5[%c0_12, %c0_13] : memref<1x128xf32, #tpu.memory_space<vmem>>, vector<1x128xf32>
      %14 = vector.broadcast %13 : vector<1x128xf32> to vector<48x128xf32>
      %15 = arith.addf %12, %14 : vector<48x128xf32>
      %16 = arith.truncf %15 : vector<48x128xf32> to vector<48x128xbf16>
      %c0_14 = arith.constant 0 : index
      %c0_15 = arith.constant 0 : index
      %17 = vector.load %arg6[%c0_14, %c0_15] : memref<48x128xbf16, #tpu.memory_space<vmem>>, vector<48x128xbf16>
      tpu.vector_store %arg6[%c0_14, %c0_15], %16 {strides = array<i32>} : memref<48x128xbf16, #tpu.memory_space<vmem>>, vector<48x128xbf16>,
    } else {
    }
    return
  }
  func.func @transform_0(%arg0: i32, %arg1: i32, %arg2: i32) -> (i32, i32) {
    %c0_i32 = arith.constant 0 : i32
    return %arg0, %arg2 : i32, i32
  }
  func.func @transform_1(%arg0: i32, %arg1: i32, %arg2: i32) -> (i32, i32) {
    %c0_i32 = arith.constant 0 : i32
    return %arg2, %arg1 : i32, i32
  }
  func.func @transform_2(%arg0: i32, %arg1: i32, %arg2: i32) -> (i32, i32) {
    %c0_i32 = arith.constant 0 : i32
    %c0_i32_0 = arith.constant 0 : i32
    return %c0_i32, %arg1 : i32, i32
  }
  func.func @transform_3(%arg0: i32, %arg1: i32, %arg2: i32) -> (i32, i32) {
    %c0_i32 = arith.constant 0 : i32
    return %arg0, %arg1 : i32, i32
  }
}

module attributes {stable_mosaic.version = 11 : i64} {
  func.func @_linear_kernel(%arg0: i32, %arg1: i32, %arg2: i32, %arg3: memref<48x128xbf16, #tpu.memory_space<vmem>>, %arg4: memref<128x256xbf16, #tpu.memory_space<vmem>>, %arg5: memref<1x256xf32, #tpu.memory_space<vmem>>, %arg6: memref<48x256xbf16, #tpu.memory_space<vmem>>, %arg7: memref<48x256xf32, #tpu.memory_space<vmem>>) attributes {dimension_semantics = [#tpu.dimension_semantics<parallel>, #tpu.dimension_semantics<parallel>, #tpu.dimension_semantics<arbitrary>], iteration_bounds = array<i64: 1, 1, 1>, scalar_prefetch = 0 : i64, scratch_operands = 1 : i64, tpu.core_type = #tpu.core_type<tc>, window_params = [{transform_indices = @transform_0, window_bounds = array<i64: 48, 128>}, {transform_indices = @transform_1, window_bounds = array<i64: 128, 256>}, {transform_indices = @transform_2, window_bounds = array<i64: 1, 256>}, {transform_indices = @transform_3, window_bounds = array<i64: 48, 256>}]} {
    %c0_i32 = arith.constant 0 : i32
    %0 = arith.cmpi eq, %arg2, %c0_i32 : i32
    %1 = arith.extui %0 : i1 to i32
    %c0_i32_0 = arith.constant 0 : i32
    %2 = arith.cmpi ne, %1, %c0_i32_0 : i32
    scf.if %2 {
      %cst_10 = arith.constant 0.000000e+00 : f32
      %12 = vector.broadcast %cst_10 : f32 to vector<48x256xf32>
      %c0_11 = arith.constant 0 : index
      %c0_12 = arith.constant 0 : index
      %13 = vector.load %arg7[%c0_11, %c0_12] : memref<48x256xf32, #tpu.memory_space<vmem>>, vector<48x256xf32>
      tpu.vector_store %arg7[%c0_11, %c0_12], %12 {strides = array<i32>} : memref<48x256xf32, #tpu.memory_space<vmem>>, vector<48x256xf32>,
    } else {
    }
    %c0 = arith.constant 0 : index
    %c0_1 = arith.constant 0 : index
    %3 = vector.load %arg7[%c0, %c0_1] : memref<48x256xf32, #tpu.memory_space<vmem>>, vector<48x256xf32>
    %c0_2 = arith.constant 0 : index
    %c0_3 = arith.constant 0 : index
    %4 = vector.load %arg3[%c0_2, %c0_3] : memref<48x128xbf16, #tpu.memory_space<vmem>>, vector<48x128xbf16>
    %c0_4 = arith.constant 0 : index
    %c0_5 = arith.constant 0 : index
    %5 = vector.load %arg4[%c0_4, %c0_5] : memref<128x256xbf16, #tpu.memory_space<vmem>>, vector<128x256xbf16>
    %cst = arith.constant dense<0.000000e+00> : vector<48x256xf32>
    %6 = tpu.matmul %4, %5, %cst {dimension_numbers = #tpu.dot_dimension_numbers<[1], [0], [0], [1], [0, 0, 1, 1], [], []>} : vector<48x128xbf16>, vector<128x256xbf16>, vector<48x256xf32> -> vector<48x256xf32>
    %7 = arith.addf %3, %6 : vector<48x256xf32>
    %c0_6 = arith.constant 0 : index
    %c0_7 = arith.constant 0 : index
    %8 = vector.load %arg7[%c0_6, %c0_7] : memref<48x256xf32, #tpu.memory_space<vmem>>, vector<48x256xf32>
    tpu.vector_store %arg7[%c0_6, %c0_7], %7 {strides = array<i32>} : memref<48x256xf32, #tpu.memory_space<vmem>>, vector<48x256xf32>,
    %c0_i32_8 = arith.constant 0 : i32
    %9 = arith.cmpi eq, %arg2, %c0_i32_8 : i32
    %10 = arith.extui %9 : i1 to i32
    %c0_i32_9 = arith.constant 0 : i32
    %11 = arith.cmpi ne, %10, %c0_i32_9 : i32
    scf.if %11 {
      %c0_10 = arith.constant 0 : index
      %c0_11 = arith.constant 0 : index
      %12 = vector.load %arg7[%c0_10, %c0_11] : memref<48x256xf32, #tpu.memory_space<vmem>>, vector<48x256xf32>
      %c0_12 = arith.constant 0 : index
      %c0_13 = arith.constant 0 : index
      %13 = vector.load %arg5[%c0_12, %c0_13] : memref<1x256xf32, #tpu.memory_space<vmem>>, vector<1x256xf32>
      %14 = vector.broadcast %13 : vector<1x256xf32> to vector<48x256xf32>
      %15 = arith.addf %12, %14 : vector<48x256xf32>
      %cst_14 = arith.constant 5.000000e-01 : f32
      %16 = vector.broadcast %cst_14 : f32 to vector<48x256xf32>
      %17 = arith.mulf %16, %15 : vector<48x256xf32>
      %cst_15 = arith.constant 4.471500e-02 : f32
      %18 = vector.broadcast %cst_15 : f32 to vector<48x256xf32>
      %19 = arith.mulf %18, %15 : vector<48x256xf32>
      %20 = arith.mulf %19, %15 : vector<48x256xf32>
      %21 = arith.mulf %20, %15 : vector<48x256xf32>
      %22 = arith.addf %15, %21 : vector<48x256xf32>
      %cst_16 = arith.constant 0.797884583 : f32
      %23 = vector.broadcast %cst_16 : f32 to vector<48x256xf32>
      %24 = arith.mulf %23, %22 : vector<48x256xf32>
      %25 = math.tanh %24 : vector<48x256xf32>
      %cst_17 = arith.constant 1.000000e+00 : f32
      %26 = vector.broadcast %cst_17 : f32 to vector<48x256xf32>
      %27 = arith.addf %26, %25 : vector<48x256xf32>
      %28 = arith.mulf %17, %27 : vector<48x256xf32>
      %29 = arith.truncf %28 : vector<48x256xf32> to vector<48x256xbf16>
      %c0_18 = arith.constant 0 : index
      %c0_19 = arith.constant 0 : index
      %30 = vector.load %arg6[%c0_18, %c0_19] : memref<48x256xbf16, #tpu.memory_space<vmem>>, vector<48x256xbf16>
      tpu.vector_store %arg6[%c0_18, %c0_19], %29 {strides = array<i32>} : memref<48x256xbf16, #tpu.memory_space<vmem>>, vector<48x256xbf16>,
    } else {
    }
    return
  }
  func.func @transform_0(%arg0: i32, %arg1: i32, %arg2: i32) -> (i32, i32) {
    %c0_i32 = arith.constant 0 : i32
    return %arg0, %arg2 : i32, i32
  }
  func.func @transform_1(%arg0: i32, %arg1: i32, %arg2: i32) -> (i32, i32) {
    %c0_i32 = arith.constant 0 : i32
    return %arg2, %arg1 : i32, i32
  }
  func.func @transform_2(%arg0: i32, %arg1: i32, %arg2: i32) -> (i32, i32) {
    %c0_i32 = arith.constant 0 : i32
    %c0_i32_0 = arith.constant 0 : i32
    return %c0_i32, %arg1 : i32, i32
  }
  func.func @transform_3(%arg0: i32, %arg1: i32, %arg2: i32) -> (i32, i32) {
    %c0_i32 = arith.constant 0 : i32
    return %arg0, %arg1 : i32, i32
  }
}

module attributes {stable_mosaic.version = 11 : i64} {
  func.func @_linear_kernel(%arg0: i32, %arg1: i32, %arg2: i32, %arg3: memref<48x256xbf16, #tpu.memory_space<vmem>>, %arg4: memref<256x128xbf16, #tpu.memory_space<vmem>>, %arg5: memref<1x128xf32, #tpu.memory_space<vmem>>, %arg6: memref<48x128xbf16, #tpu.memory_space<vmem>>, %arg7: memref<48x128xf32, #tpu.memory_space<vmem>>) attributes {dimension_semantics = [#tpu.dimension_semantics<parallel>, #tpu.dimension_semantics<parallel>, #tpu.dimension_semantics<arbitrary>], iteration_bounds = array<i64: 1, 1, 1>, scalar_prefetch = 0 : i64, scratch_operands = 1 : i64, tpu.core_type = #tpu.core_type<tc>, window_params = [{transform_indices = @transform_0, window_bounds = array<i64: 48, 256>}, {transform_indices = @transform_1, window_bounds = array<i64: 256, 128>}, {transform_indices = @transform_2, window_bounds = array<i64: 1, 128>}, {transform_indices = @transform_3, window_bounds = array<i64: 48, 128>}]} {
    %c0_i32 = arith.constant 0 : i32
    %0 = arith.cmpi eq, %arg2, %c0_i32 : i32
    %1 = arith.extui %0 : i1 to i32
    %c0_i32_0 = arith.constant 0 : i32
    %2 = arith.cmpi ne, %1, %c0_i32_0 : i32
    scf.if %2 {
      %cst_10 = arith.constant 0.000000e+00 : f32
      %12 = vector.broadcast %cst_10 : f32 to vector<48x128xf32>
      %c0_11 = arith.constant 0 : index
      %c0_12 = arith.constant 0 : index
      %13 = vector.load %arg7[%c0_11, %c0_12] : memref<48x128xf32, #tpu.memory_space<vmem>>, vector<48x128xf32>
      tpu.vector_store %arg7[%c0_11, %c0_12], %12 {strides = array<i32>} : memref<48x128xf32, #tpu.memory_space<vmem>>, vector<48x128xf32>,
    } else {
    }
    %c0 = arith.constant 0 : index
    %c0_1 = arith.constant 0 : index
    %3 = vector.load %arg7[%c0, %c0_1] : memref<48x128xf32, #tpu.memory_space<vmem>>, vector<48x128xf32>
    %c0_2 = arith.constant 0 : index
    %c0_3 = arith.constant 0 : index
    %4 = vector.load %arg3[%c0_2, %c0_3] : memref<48x256xbf16, #tpu.memory_space<vmem>>, vector<48x256xbf16>
    %c0_4 = arith.constant 0 : index
    %c0_5 = arith.constant 0 : index
    %5 = vector.load %arg4[%c0_4, %c0_5] : memref<256x128xbf16, #tpu.memory_space<vmem>>, vector<256x128xbf16>
    %cst = arith.constant dense<0.000000e+00> : vector<48x128xf32>
    %6 = tpu.matmul %4, %5, %cst {dimension_numbers = #tpu.dot_dimension_numbers<[1], [0], [0], [1], [0, 0, 1, 1], [], []>} : vector<48x256xbf16>, vector<256x128xbf16>, vector<48x128xf32> -> vector<48x128xf32>
    %7 = arith.addf %3, %6 : vector<48x128xf32>
    %c0_6 = arith.constant 0 : index
    %c0_7 = arith.constant 0 : index
    %8 = vector.load %arg7[%c0_6, %c0_7] : memref<48x128xf32, #tpu.memory_space<vmem>>, vector<48x128xf32>
    tpu.vector_store %arg7[%c0_6, %c0_7], %7 {strides = array<i32>} : memref<48x128xf32, #tpu.memory_space<vmem>>, vector<48x128xf32>,
    %c0_i32_8 = arith.constant 0 : i32
    %9 = arith.cmpi eq, %arg2, %c0_i32_8 : i32
    %10 = arith.extui %9 : i1 to i32
    %c0_i32_9 = arith.constant 0 : i32
    %11 = arith.cmpi ne, %10, %c0_i32_9 : i32
    scf.if %11 {
      %c0_10 = arith.constant 0 : index
      %c0_11 = arith.constant 0 : index
      %12 = vector.load %arg7[%c0_10, %c0_11] : memref<48x128xf32, #tpu.memory_space<vmem>>, vector<48x128xf32>
      %c0_12 = arith.constant 0 : index
      %c0_13 = arith.constant 0 : index
      %13 = vector.load %arg5[%c0_12, %c0_13] : memref<1x128xf32, #tpu.memory_space<vmem>>, vector<1x128xf32>
      %14 = vector.broadcast %13 : vector<1x128xf32> to vector<48x128xf32>
      %15 = arith.addf %12, %14 : vector<48x128xf32>
      %16 = arith.truncf %15 : vector<48x128xf32> to vector<48x128xbf16>
      %c0_14 = arith.constant 0 : index
      %c0_15 = arith.constant 0 : index
      %17 = vector.load %arg6[%c0_14, %c0_15] : memref<48x128xbf16, #tpu.memory_space<vmem>>, vector<48x128xbf16>
      tpu.vector_store %arg6[%c0_14, %c0_15], %16 {strides = array<i32>} : memref<48x128xbf16, #tpu.memory_space<vmem>>, vector<48x128xbf16>,
    } else {
    }
    return
  }
  func.func @transform_0(%arg0: i32, %arg1: i32, %arg2: i32) -> (i32, i32) {
    %c0_i32 = arith.constant 0 : i32
    return %arg0, %arg2 : i32, i32
  }
  func.func @transform_1(%arg0: i32, %arg1: i32, %arg2: i32) -> (i32, i32) {
    %c0_i32 = arith.constant 0 : i32
    return %arg2, %arg1 : i32, i32
  }
  func.func @transform_2(%arg0: i32, %arg1: i32, %arg2: i32) -> (i32, i32) {
    %c0_i32 = arith.constant 0 : i32
    %c0_i32_0 = arith.constant 0 : i32
    return %c0_i32, %arg1 : i32, i32
  }
  func.func @transform_3(%arg0: i32, %arg1: i32, %arg2: i32) -> (i32, i32) {
    %c0_i32 = arith.constant 0 : i32
    return %arg0, %arg1 : i32, i32
  }
}

module attributes {stable_mosaic.version = 11 : i64} {
  func.func @_ln_kernel(%arg0: i32, %arg1: memref<48x128xbf16, #tpu.memory_space<vmem>>, %arg2: memref<48x128xbf16, #tpu.memory_space<vmem>>, %arg3: memref<1x128xf32, #tpu.memory_space<vmem>>, %arg4: memref<1x128xf32, #tpu.memory_space<vmem>>, %arg5: memref<48x128xbf16, #tpu.memory_space<vmem>>) attributes {dimension_semantics = [#tpu.dimension_semantics<parallel>], iteration_bounds = array<i64: 1>, scalar_prefetch = 0 : i64, scratch_operands = 0 : i64, tpu.core_type = #tpu.core_type<tc>, window_params = [{transform_indices = @transform_0, window_bounds = array<i64: 48, 128>}, {transform_indices = @transform_1, window_bounds = array<i64: 48, 128>}, {pipeline_mode = #tpu.pipeline_mode<synchronous>, transform_indices = @transform_2, window_bounds = array<i64: 1, 128>}, {pipeline_mode = #tpu.pipeline_mode<synchronous>, transform_indices = @transform_3, window_bounds = array<i64: 1, 128>}, {transform_indices = @transform_4, window_bounds = array<i64: 48, 128>}]} {
    %c0 = arith.constant 0 : index
    %c0_0 = arith.constant 0 : index
    %0 = vector.load %arg1[%c0, %c0_0] : memref<48x128xbf16, #tpu.memory_space<vmem>>, vector<48x128xbf16>
    %1 = arith.extf %0 : vector<48x128xbf16> to vector<48x128xf32>
    %c0_1 = arith.constant 0 : index
    %c0_2 = arith.constant 0 : index
    %2 = vector.load %arg2[%c0_1, %c0_2] : memref<48x128xbf16, #tpu.memory_space<vmem>>, vector<48x128xbf16>
    %3 = arith.extf %2 : vector<48x128xbf16> to vector<48x128xf32>
    %4 = arith.addf %1, %3 : vector<48x128xf32>
    %cst = arith.constant dense<0.000000e+00> : vector<48xf32>
    %5 = vector.multi_reduction <add>, %4, %cst [1] : vector<48x128xf32> to vector<48xf32>
    %6 = vector.shape_cast %5 : vector<48xf32> to vector<48x1xf32>
    %cst_3 = arith.constant 1.280000e+02 : f32
    %7 = vector.broadcast %cst_3 : f32 to vector<48x1xf32>
    %8 = arith.divf %6, %7 : vector<48x1xf32>
    %9 = vector.broadcast %8 : vector<48x1xf32> to vector<48x128xf32>
    %10 = arith.subf %4, %9 : vector<48x128xf32>
    %11 = arith.mulf %10, %10 : vector<48x128xf32>
    %cst_4 = arith.constant dense<0.000000e+00> : vector<48xf32>
    %12 = vector.multi_reduction <add>, %11, %cst_4 [1] : vector<48x128xf32> to vector<48xf32>
    %13 = vector.shape_cast %12 : vector<48xf32> to vector<48x1xf32>
    %cst_5 = arith.constant 1.280000e+02 : f32
    %14 = vector.broadcast %cst_5 : f32 to vector<48x1xf32>
    %15 = arith.divf %13, %14 : vector<48x1xf32>
    %cst_6 = arith.constant 9.99999996E-13 : f32
    %16 = vector.broadcast %cst_6 : f32 to vector<48x1xf32>
    %17 = arith.addf %15, %16 : vector<48x1xf32>
    %18 = math.rsqrt %17 : vector<48x1xf32>
    %19 = vector.broadcast %18 : vector<48x1xf32> to vector<48x128xf32>
    %20 = arith.mulf %10, %19 : vector<48x128xf32>
    %c0_7 = arith.constant 0 : index
    %c0_8 = arith.constant 0 : index
    %21 = vector.load %arg3[%c0_7, %c0_8] : memref<1x128xf32, #tpu.memory_space<vmem>>, vector<1x128xf32>
    %22 = vector.broadcast %21 : vector<1x128xf32> to vector<48x128xf32>
    %23 = arith.mulf %20, %22 : vector<48x128xf32>
    %c0_9 = arith.constant 0 : index
    %c0_10 = arith.constant 0 : index
    %24 = vector.load %arg4[%c0_9, %c0_10] : memref<1x128xf32, #tpu.memory_space<vmem>>, vector<1x128xf32>
    %25 = vector.broadcast %24 : vector<1x128xf32> to vector<48x128xf32>
    %26 = arith.addf %23, %25 : vector<48x128xf32>
    %27 = arith.truncf %26 : vector<48x128xf32> to vector<48x128xbf16>
    %c0_11 = arith.constant 0 : index
    %c0_12 = arith.constant 0 : index
    %28 = vector.load %arg5[%c0_11, %c0_12] : memref<48x128xbf16, #tpu.memory_space<vmem>>, vector<48x128xbf16>
    tpu.vector_store %arg5[%c0_11, %c0_12], %27 {strides = array<i32>} : memref<48x128xbf16, #tpu.memory_space<vmem>>, vector<48x128xbf16>,
    return
  }
  func.func @transform_0(%arg0: i32) -> (i32, i32) {
    %c0_i32 = arith.constant 0 : i32
    %c0_i32_0 = arith.constant 0 : i32
    return %arg0, %c0_i32 : i32, i32
  }
  func.func @transform_1(%arg0: i32) -> (i32, i32) {
    %c0_i32 = arith.constant 0 : i32
    %c0_i32_0 = arith.constant 0 : i32
    return %arg0, %c0_i32 : i32, i32
  }
  func.func @transform_2(%arg0: i32) -> (i32, i32) {
    %c0_i32 = arith.constant 0 : i32
    %c0_i32_0 = arith.constant 0 : i32
    %c0_i32_1 = arith.constant 0 : i32
    return %c0_i32, %c0_i32_0 : i32, i32
  }
  func.func @transform_3(%arg0: i32) -> (i32, i32) {
    %c0_i32 = arith.constant 0 : i32
    %c0_i32_0 = arith.constant 0 : i32
    %c0_i32_1 = arith.constant 0 : i32
    return %c0_i32, %c0_i32_0 : i32, i32
  }
  func.func @transform_4(%arg0: i32) -> (i32, i32) {
    %c0_i32 = arith.constant 0 : i32
    %c0_i32_0 = arith.constant 0 : i32
    return %arg0, %c0_i32 : i32, i32
  }
}

</mosaic_0001>

<bundles_post_ra>
// kernel: visual_encoder_forward.61
= control target key start
LH: loop header
LB: loop body
LE: loop exit
PB: predicated region body
PF: predicated region fallthrough
CT: control target
= control target key end

     0   :  { %v170_v6 = vmov 128.0   ;;  %s229_s0 = inlined_call_operand.vmem [shape: bf16[32,128], index: 0, kind: input, shape index: {}]   ;;  %s230_s1 = inlined_call_operand.vmem [shape: f32[1,128], index: 1, kind: input, shape index: {}]   ;;  %s231_s2 = inlined_call_operand.vmem [shape: f32[1,128], index: 2, kind: input, shape index: {}]   ;;  %s232_s3 = inlined_call_operand.vmem [shape: bf16[32,128], index: 3, kind: output, shape index: {}]  }
   0x1   :  { %v155_v0 = vld [vmem:[%s229_s0 + $0x8] sm:$0xff]   ;;  %v138_v1 = vld [vmem:[%s229_s0] sm:$0xff]   ;;  %160 = vrcp.f32 %v170_v6 }
   0x2   :  { %v143_v2 = vunpack.c.l.bf16 %v155_v0  ;;  %v139_v3 = vunpack.c.l.bf16 %v138_v1  ;;  %v144_v4 = vunpack.c.h.bf16 %v155_v0  ;;  %v140_v5 = vunpack.c.h.bf16 %v138_v1  ;;  %v158_v0 = vld [vmem:[%s230_s1] ss:$0 sm:$0xff] }
   0x4   :  { %26 = vadd.xlane.f32.xlu1 %v143_v2  ;;  %22 = vadd.xlane.f32.xlu0 %v139_v3 }
   0x7   :  { %v161_v7 = vpop.eup %160 }
   0x8   :  { %v31_v8 = vmul.f32 128.0, %v161_v7  ;;  %vm35_vm0 = vweird.f32 %v161_v7 }
   0xa   :  { %v32_v9 = vsub.f32 1.0, %v31_v8 }
   0xc   :  { %28 = vadd.xlane.f32.xlu1 %v144_v4  ;;  %24 = vadd.xlane.f32.xlu0 %v140_v5  ;;  %v33_v10 = vmul.f32 %v161_v7, %v32_v9 }
   0xe   :  { %v34_v11 = vadd.f32 %v161_v7, %v33_v10 }
  0x10   :  { %v36_v12 = vsel %vm35_vm0, %v161_v7, %v34_v11  ;;  %v159_v7 = vld [vmem:[%s231_s2] ss:$0 sm:$0xff] }
  0x77   :  { %v27_v13 = vpop.xlane.xlu1 %26  ;;  %v23_v14 = vpop.xlane.xlu0 %22 }
  0x78   :  { %v39_v15 = vmul.f32 %v36_v12, %v27_v13  ;;  %v37_v16 = vmul.f32 %v36_v12, %v23_v14 }
  0x7a   :  { %v197_v17 = vsub.f32 %v143_v2, %v39_v15  ;;  %v199_v18 = vsub.f32 %v139_v3, %v37_v16 }
  0x7c   :  { %v47_v19 = vmul.f32 %v197_v17, %v197_v17  ;;  %v45_v20 = vmul.f32 %v199_v18, %v199_v18 }
  0x7e   :  { %53 = vadd.xlane.f32.xlu0 %v47_v19  ;;  %49 = vadd.xlane.f32.xlu2 %v45_v20 }
  0x7f   :  { %v29_v21 = vpop.xlane.xlu1 %28  ;;  %v25_v22 = vpop.xlane.xlu0 %24 }
  0x80   :  { %v40_v23 = vmul.f32 %v36_v12, %v29_v21  ;;  %v38_v24 = vmul.f32 %v36_v12, %v25_v22 }
  0x82   :  { %v205_v25 = vsub.f32 %v144_v4, %v40_v23  ;;  %v207_v26 = vsub.f32 %v140_v5, %v38_v24 }
  0x84   :  { %v48_v27 = vmul.f32 %v205_v25, %v205_v25  ;;  %v46_v28 = vmul.f32 %v207_v26, %v207_v26 }
  0x86   :  { %55 = vadd.xlane.f32.xlu1 %v48_v27  ;;  %51 = vadd.xlane.f32.xlu2 %v46_v28 }
  0xf1   :  { %v50_v29 = vpop.xlane.xlu2 %49  ;;  %v54_v30 = vpop.xlane.xlu0 %53 }
  0xf2   :  { %v57_v31 = vmul.f32 %v50_v29, %v36_v12  ;;  %v59_v32 = vmul.f32 %v54_v30, %v36_v12 }
  0xf4   :  { %v61_v33 = vadd.f32 1e-05, %v57_v31  ;;  %v63_v34 = vadd.f32 1e-05, %v59_v32 }
  0xf6   :  { %162 = vrsqrt.f32 %v61_v33  ;;  %vm91_vm3 = vweird.f32 %v63_v34  ;;  %vm71_vm4 = vweird.f32 %v61_v33 }
  0xf7   :  { %164 = vrsqrt.f32 %v63_v34 }
  0xf9   :  { %v56_v35 = vpop.xlane.xlu1 %55  ;;  %v52_v36 = vpop.xlane.xlu2 %51 }
  0xfa   :  { %v60_v37 = vmul.f32 %v56_v35, %v36_v12  ;;  %v58_v38 = vmul.f32 %v52_v36, %v36_v12 }
  0xfc   :  { %v163_v39 = vpop.eup %162  ;;  %v64_v40 = vadd.f32 1e-05, %v60_v37  ;;  %v62_v41 = vadd.f32 1e-05, %v58_v38 }
  0xfd   :  { %v165_v42 = vpop.eup %164  ;;  %v66_v43 = vmul.f32 %v163_v39, %v61_v33  ;;  %vm72_vm2 = vweird.f32 %v163_v39 }
  0xfe   :  { %v86_v44 = vmul.f32 %v165_v42, %v63_v34  ;;  %166 = vrsqrt.f32 %v64_v40  ;;  %vm92_vm1 = vweird.f32 %v165_v42  ;;  %vm73_vm6 = vmor %vm71_vm4, %vm72_vm2  ;;  %vm101_vm9 = vweird.f32 %v64_v40 }
  0xff   :  { %v67_v45 = vmul.f32 %v163_v39, %v66_v43  ;;  %168 = vrsqrt.f32 %v62_v41  ;;  %vm93_vm5 = vmor %vm91_vm3, %vm92_vm1  ;;  %vm81_vm11 = vweird.f32 %v62_v41 }
 0x100   :  { %v87_v46 = vmul.f32 %v165_v42, %v86_v44 }
 0x101   :  { %v68_v47 = vmul.f32 0.5, %v67_v45 }
 0x102   :  { %v88_v48 = vmul.f32 0.5, %v87_v46 }
 0x103   :  { %v69_v49 = vsub.f32 1.5, %v68_v47 }
 0x104   :  { %v167_v50 = vpop.eup %166  ;;  %v89_v51 = vsub.f32 1.5, %v88_v48 }
 0x105   :  { %v169_v52 = vpop.eup %168  ;;  %v96_v53 = vmul.f32 %v167_v50, %v64_v40  ;;  %v70_v54 = vmul.f32 %v163_v39, %v69_v49  ;;  %vm102_vm7 = vweird.f32 %v167_v50 }
 0x106   :  { %v90_v55 = vmul.f32 %v165_v42, %v89_v51  ;;  %v76_v56 = vmul.f32 %v169_v52, %v62_v41  ;;  %vm82_vm8 = vweird.f32 %v169_v52  ;;  %vm103_vm10 = vmor %vm101_vm9, %vm102_vm7 }
 0x107   :  { %v97_v57 = vmul.f32 %v167_v50, %v96_v53  ;;  %v74_v61 = vsel %vm73_vm6, %v163_v39, %v70_v54  ;;  %vm83_vm12 = vmor %vm81_vm11, %vm82_vm8 }
 0x108   :  { %v77_v58 = vmul.f32 %v169_v52, %v76_v56  ;;  %v94_v59 = vsel %vm93_vm5, %v165_v42, %v90_v55  ;;  %v105_v3 = vmul.f32 %v74_v61, %v199_v18 }
 0x109   :  { %v98_v60 = vmul.f32 0.5, %v97_v57  ;;  %v107_v1 = vmul.f32 %v94_v59, %v197_v17 }
 0x10a   :  { %v78_v62 = vmul.f32 0.5, %v77_v58  ;;  %v113_v11 = vmul.f32 %v158_v0, %v105_v3 }
 0x10b   :  { %v99_v63 = vsub.f32 1.5, %v98_v60  ;;  %v115_v8 = vmul.f32 %v158_v0, %v107_v1 }
 0x10c   :  { %v79_v2 = vsub.f32 1.5, %v78_v62  ;;  %v121_v17 = vadd.f32 %v159_v7, %v113_v11 }
 0x10d   :  { %v100_v4 = vmul.f32 %v167_v50, %v99_v63  ;;  %v123_v15 = vadd.f32 %v159_v7, %v115_v8 }
 0x10e   :  { %v80_v5 = vmul.f32 %v169_v52, %v79_v2 }
 0x10f   :  { %v104_v6 = vsel %vm103_vm10, %v167_v50, %v100_v4 }
 0x110   :  { %v108_v9 = vmul.f32 %v104_v6, %v205_v25  ;;  %v84_v10 = vsel %vm83_vm12, %v169_v52, %v80_v5 }
 0x111   :  { %v106_v12 = vmul.f32 %v84_v10, %v207_v26 }
 0x112   :  { %v116_v13 = vmul.f32 %v158_v0, %v108_v9 }
 0x113   :  { %v114_v14 = vmul.f32 %v158_v0, %v106_v12 }
 0x114   :  { %v124_v16 = vadd.f32 %v159_v7, %v116_v13 }
 0x115   :  { %v122_v18 = vadd.f32 %v159_v7, %v114_v14 }
 0x116   :  { %v153_v19 = vpack.c.bf16 %v124_v16, %v123_v15 }
 0x117   :  { %v148_v20 = vpack.c.bf16 %v122_v18, %v121_v17 }
 0x118   :  { %156 = vst [vmem:[%s232_s3 + $0x8] sm:$0xff] %v153_v19  }
 0x119   :  { %149 = vst [vmem:[%s232_s3] sm:$0xff] %v148_v20  }

// kernel: visual_encoder_forward.63
= control target key start
LH: loop header
LB: loop body
LE: loop exit
PB: predicated region body
PF: predicated region fallthrough
CT: control target
= control target key end

     0   :  { %s689_s1 = inlined_call_operand.vmem [shape: bf16[128,384], index: 1, kind: input, shape index: {}]   ;;  %s690_s0 = inlined_call_operand.vmem [shape: bf16[32,128], index: 0, kind: input, shape index: {}]   ;;  %s691_s2 = inlined_call_operand.vmem [shape: f32[1,384], index: 2, kind: input, shape index: {}]   ;;  %s692_s3 = inlined_call_operand.vmem [shape: bf16[32,384], index: 3, kind: output, shape index: {}]  }
   0x1   :  { %v448_v0 = vld [vmem:[%s689_s1 + $0xa8] sm:$0xf]  ;;  %v482_v1 = vld [vmem:[%s689_s1 + $0xb0] sm:$0xf0]  ;;  %v481_v2 = vld [vmem:[%s689_s1 + $0xac] sm:$0xf] }
   0x2   :  { %v449_v3 = vor.u32 %v482_v1, %v448_v0  ;;  %v450_v4 = vld [vmem:[%s689_s1 + $0xb4] sm:$0xf0]  ;;  %v456_v5 = vld [vmem:[%s689_s1 + $0xb0] sm:$0xf]  ;;  %v483_v6 = vld [vmem:[%s689_s1 + $0xb8] sm:$0xf0] }
   0x3   :  { %v453_v7 = vor.u32 %v481_v2, %v450_v4  ;;  %v457_v8 = vor.u32 %v483_v6, %v456_v5  ;;  %v436_v9 = vld [vmem:[%s689_s1 + $0x90] sm:$0xf]  ;;  %v479_v10 = vld [vmem:[%s689_s1 + $0x98] sm:$0xf0]  ;;  %v478_v11 = vld [vmem:[%s689_s1 + $0x94] sm:$0xf] }
   0x4   :  { %218 = vmatpush.bf16.msra.mxu0 %v449_v3  ;;  %v437_v12 = vor.u32 %v479_v10, %v436_v9  ;;  %v438_v13 = vld [vmem:[%s689_s1 + $0x9c] sm:$0xf0]  ;;  %v444_v14 = vld [vmem:[%s689_s1 + $0x98] sm:$0xf]  ;;  %v480_v15 = vld [vmem:[%s689_s1 + $0xa0] sm:$0xf0]  ;;  %484 = vmatpush.bf16.msra.mxu3 %v449_v3 }
   0x5   :  { %237 = vmatpush.bf16.msra.mxu1 %v453_v7  ;;  %256 = vmatpush.bf16.msra.mxu2 %v457_v8  ;;  %v441_v16 = vor.u32 %v478_v11, %v438_v13  ;;  %v445_v17 = vor.u32 %v480_v15, %v444_v14  ;;  %v424_v18 = vld [vmem:[%s689_s1 + $0x78] sm:$0xf]  ;;  %v476_v19 = vld [vmem:[%s689_s1 + $0x80] sm:$0xf0]  ;;  %v475_v20 = vld [vmem:[%s689_s1 + $0x7c] sm:$0xf] }
   0x6   :  { %v426_v21 = vld [vmem:[%s689_s1 + $0x84] sm:$0xf0]  ;;  %v432_v22 = vld [vmem:[%s689_s1 + $0x80] sm:$0xf]  ;;  %v477_v23 = vld [vmem:[%s689_s1 + $0x88] sm:$0xf0]  ;;  %v425_v24 = vor.u32 %v476_v19, %v424_v18 }
   0x7   :  { %v429_v25 = vor.u32 %v475_v20, %v426_v21  ;;  %v433_v26 = vor.u32 %v477_v23, %v432_v22  ;;  %v412_v27 = vld [vmem:[%s689_s1 + $0x60] sm:$0xf]  ;;  %v473_v28 = vld [vmem:[%s689_s1 + $0x68] sm:$0xf0]  ;;  %v472_v29 = vld [vmem:[%s689_s1 + $0x64] sm:$0xf] }
   0x8   :  { %219 = vmatpush.bf16.msra.mxu0 %v437_v12  ;;  %485 = vmatpush.bf16.msra.mxu3 %v437_v12  ;;  %v414_v30 = vld [vmem:[%s689_s1 + $0x6c] sm:$0xf0]  ;;  %v420_v31 = vld [vmem:[%s689_s1 + $0x68] sm:$0xf]  ;;  %v474_v32 = vld [vmem:[%s689_s1 + $0x70] sm:$0xf0]  ;;  %v413_v33 = vor.u32 %v473_v28, %v412_v27 }
   0x9   :  { %238 = vmatpush.bf16.msra.mxu1 %v441_v16  ;;  %257 = vmatpush.bf16.msra.mxu2 %v445_v17  ;;  %v417_v34 = vor.u32 %v472_v29, %v414_v30  ;;  %v421_v35 = vor.u32 %v474_v32, %v420_v31  ;;  %v400_v36 = vld [vmem:[%s689_s1 + $0x48] sm:$0xf]  ;;  %v470_v37 = vld [vmem:[%s689_s1 + $0x50] sm:$0xf0]  ;;  %v469_v38 = vld [vmem:[%s689_s1 + $0x4c] sm:$0xf] }
   0xa   :  { %v402_v39 = vld [vmem:[%s689_s1 + $0x54] sm:$0xf0]  ;;  %v408_v40 = vld [vmem:[%s689_s1 + $0x50] sm:$0xf]  ;;  %v471_v41 = vld [vmem:[%s689_s1 + $0x58] sm:$0xf0]  ;;  %v401_v42 = vor.u32 %v470_v37, %v400_v36 }
   0xb   :  { %v405_v43 = vor.u32 %v469_v38, %v402_v39  ;;  %v409_v44 = vor.u32 %v471_v41, %v408_v40  ;;  %v388_v45 = vld [vmem:[%s689_s1 + $0x30] sm:$0xf]  ;;  %v467_v46 = vld [vmem:[%s689_s1 + $0x38] sm:$0xf0]  ;;  %v466_v47 = vld [vmem:[%s689_s1 + $0x34] sm:$0xf] }
   0xc   :  { %220 = vmatpush.bf16.msra.mxu0 %v425_v24  ;;  %486 = vmatpush.bf16.msra.mxu3 %v425_v24  ;;  %v390_v48 = vld [vmem:[%s689_s1 + $0x3c] sm:$0xf0]  ;;  %v396_v49 = vld [vmem:[%s689_s1 + $0x38] sm:$0xf]  ;;  %v468_v50 = vld [vmem:[%s689_s1 + $0x40] sm:$0xf0]  ;;  %v389_v51 = vor.u32 %v467_v46, %v388_v45 }
   0xd   :  { %239 = vmatpush.bf16.msra.mxu1 %v429_v25  ;;  %258 = vmatpush.bf16.msra.mxu2 %v433_v26  ;;  %v393_v52 = vor.u32 %v466_v47, %v390_v48  ;;  %v397_v53 = vor.u32 %v468_v50, %v396_v49  ;;  %v376_v54 = vld [vmem:[%s689_s1 + $0x18] sm:$0xf]  ;;  %v464_v55 = vld [vmem:[%s689_s1 + $0x20] sm:$0xf0]  ;;  %v463_v56 = vld [vmem:[%s689_s1 + $0x1c] sm:$0xf] }
   0xe   :  { %v378_v57 = vld [vmem:[%s689_s1 + $0x24] sm:$0xf0]  ;;  %v384_v58 = vld [vmem:[%s689_s1 + $0x20] sm:$0xf]  ;;  %v465_v59 = vld [vmem:[%s689_s1 + $0x28] sm:$0xf0]  ;;  %v377_v60 = vor.u32 %v464_v55, %v376_v54 }
   0xf   :  { %v381_v61 = vor.u32 %v463_v56, %v378_v57  ;;  %v385_v62 = vor.u32 %v465_v59, %v384_v58  ;;  %v364_v63 = vld [vmem:[%s689_s1] sm:$0xf]  ;;  %v461_v0 = vld [vmem:[%s689_s1 + $0x8] sm:$0xf0]  ;;  %v460_v1 = vld [vmem:[%s689_s1 + $0x4] sm:$0xf] }
  0x10   :  { %221 = vmatpush.bf16.msra.mxu0 %v413_v33  ;;  %487 = vmatpush.bf16.msra.mxu3 %v413_v33  ;;  %v366_v2 = vld [vmem:[%s689_s1 + $0xc] sm:$0xf0]  ;;  %v372_v3 = vld [vmem:[%s689_s1 + $0x8] sm:$0xf]  ;;  %v462_v4 = vld [vmem:[%s689_s1 + $0x10] sm:$0xf0]  ;;  %v365_v5 = vor.u32 %v461_v0, %v364_v63 }
  0x11   :  { %240 = vmatpush.bf16.msra.mxu1 %v417_v34  ;;  %259 = vmatpush.bf16.msra.mxu2 %v421_v35  ;;  %v369_v6 = vor.u32 %v460_v1, %v366_v2  ;;  %v373_v7 = vor.u32 %v462_v4, %v372_v3  ;;  %v458_v8 = vld [vmem:[%s690_s0] sm:$0xff]  ;;  %v459_v9 = vld [vmem:[%s690_s0 + $0x8] sm:$0xff] }
  0x12   :  { %v314_v10 = vld [vmem:[%s691_s2] sm:$0x7] }
  0x13   :  { %v316_v11 = vperm.slane %v314_v10, 0  ;;  %v317_v12 = vperm.slane %v314_v10, 1  ;;  %v318_v18 = vperm.slane %v314_v10, 2 }
  0x14   :  { %222 = vmatpush.bf16.msra.mxu0 %v401_v42  ;;  %488 = vmatpush.bf16.msra.mxu3 %v401_v42 }
  0x15   :  { %241 = vmatpush.bf16.msra.mxu1 %v405_v43  ;;  %260 = vmatpush.bf16.msra.mxu2 %v409_v44 }
  0x18   :  { %223 = vmatpush.bf16.msra.mxu0 %v389_v51  ;;  %489 = vmatpush.bf16.msra.mxu3 %v389_v51 }
  0x19   :  { %242 = vmatpush.bf16.msra.mxu1 %v393_v52  ;;  %261 = vmatpush.bf16.msra.mxu2 %v397_v53 }
  0x1c   :  { %224 = vmatpush.bf16.msra.mxu0 %v377_v60  ;;  %490 = vmatpush.bf16.msra.mxu3 %v377_v60 }
  0x1d   :  { %243 = vmatpush.bf16.msra.mxu1 %v381_v61  ;;  %262 = vmatpush.bf16.msra.mxu2 %v385_v62 }
  0x20   :  { %225 = vmatpush.bf16.msra.mxu0 %v365_v5  ;;  %491 = vmatpush.bf16.msra.mxu3 %v365_v5 }
  0x21   :  { %244 = vmatpush.bf16.msra.mxu1 %v369_v6  ;;  %263 = vmatpush.bf16.msra.mxu2 %v373_v7 }
  0x23   :  { %226 = vmatmul.bf16.vlgmr.msra.gmra.mxu0 %v458_v8  ;;  %231 = vmatmul.bf16.vlgmr.msra.gmra.mxu3 %v459_v9 }
  0x24   :  { %245 = vmatmul.bf16.vlgmr.msra.gmra.mxu1 %v458_v8  ;;  %264 = vmatmul.bf16.vlgmr.msra.gmra.mxu2 %v458_v8 }
  0x34   :  { %250 = vmatmul.bf16.gmra.mxu1 %v459_v9  ;;  %269 = vmatmul.bf16.gmra.mxu2 %v459_v9 }
  0xa0   :  { %v227_v13 = vpop.f32.mrf.mxu0 }
  0xa1   :  { %v322_v14 = vadd.f32 %v316_v11, %v227_v13  ;;  %v246_v15 = vpop.f32.mrf.mxu1 }
  0xa2   :  { %v323_v16 = vadd.f32 %v317_v12, %v246_v15 }
  0xa4   :  { %v334_v17 = vpack.c.bf16 %v323_v16, %v322_v14 }
  0xa6   :  { %342 = vst [vmem:[%s692_s3] sm:$0xff] %v334_v17  ;;  %v232_v27 = vpop.f32.mrf.mxu3 }
  0xa7   :  { %v265_v19 = vpop.f32.mrf.mxu2  ;;  %v328_v29 = vadd.f32 %v316_v11, %v232_v27 }
  0xa8   :  { %v324_v20 = vadd.f32 %v318_v18, %v265_v19  ;;  %v229_v21 = vpop.f32.mrf.mxu0 }
  0xa9   :  { %v325_v22 = vadd.f32 %v316_v11, %v229_v21  ;;  %v248_v23 = vpop.f32.mrf.mxu1 }
  0xaa   :  { %v335_v24 = vpack.c.bf16 %v324_v20, %v324_v20  ;;  %v326_v25 = vadd.f32 %v317_v12, %v248_v23 }
  0xac   :  { %343 = vst [vmem:[%s692_s3 + $0x8] sm:$0xf] %v335_v24  ;;  %v336_v26 = vpack.c.bf16 %v326_v25, %v325_v22 }
  0xae   :  { %344 = vst [vmem:[%s692_s3 + $0xc] sm:$0xff] %v336_v26  ;;  %v234_v35 = vpop.f32.mrf.mxu3 }
  0xaf   :  { %v267_v28 = vpop.f32.mrf.mxu2  ;;  %v331_v39 = vadd.f32 %v316_v11, %v234_v35 }
  0xb0   :  { %v327_v30 = vadd.f32 %v318_v18, %v267_v28 }
  0xb1   :  { %v251_v31 = vpop.f32.mrf.mxu1 }
  0xb2   :  { %v337_v32 = vpack.c.bf16 %v327_v30, %v327_v30  ;;  %v329_v33 = vadd.f32 %v317_v12, %v251_v31 }
  0xb4   :  { %345 = vst [vmem:[%s692_s3 + $0x14] sm:$0xf] %v337_v32  ;;  %v338_v34 = vpack.c.bf16 %v329_v33, %v328_v29 }
  0xb6   :  { %346 = vst [vmem:[%s692_s3 + $0x18] sm:$0xff] %v338_v34 }
  0xb7   :  { %v270_v36 = vpop.f32.mrf.mxu2 }
  0xb8   :  { %v330_v37 = vadd.f32 %v318_v18, %v270_v36 }
  0xb9   :  { %v253_v38 = vpop.f32.mrf.mxu1 }
  0xba   :  { %v339_v40 = vpack.c.bf16 %v330_v37, %v330_v37  ;;  %v332_v41 = vadd.f32 %v317_v12, %v253_v38 }
  0xbc   :  { %347 = vst [vmem:[%s692_s3 + $0x20] sm:$0xf] %v339_v40  ;;  %v340_v42 = vpack.c.bf16 %v332_v41, %v331_v39 }
  0xbe   :  { %348 = vst [vmem:[%s692_s3 + $0x24] sm:$0xff] %v340_v42 }
  0xbf   :  { %v272_v43 = vpop.f32.mrf.mxu2 }
  0xc0   :  { %v333_v44 = vadd.f32 %v318_v18, %v272_v43 }
  0xc2   :  { %v341_v45 = vpack.c.bf16 %v333_v44, %v333_v44 }
  0xc4   :  { %349 = vst [vmem:[%s692_s3 + $0x2c] sm:$0xf] %v341_v45 }

// kernel: visual_encoder_forward.60
= control target key start
LH: loop header
LB: loop body
LE: loop exit
PB: predicated region body
PF: predicated region fallthrough
CT: control target
= control target key end

     0   :  { %s1115_s1 = inlined_call_operand.vmem [shape: bf16[768,128], index: 1, kind: input, shape index: {}]   ;;  %s1116_s0 = inlined_call_operand.vmem [shape: bf16[24,768], index: 0, kind: input, shape index: {}]   ;;  %s1117_s2 = inlined_call_operand.vmem [shape: f32[1,128], index: 2, kind: input, shape index: {}]   ;;  %s1118_s3 = inlined_call_operand.vmem [shape: bf16[24,128], index: 3, kind: output, shape index: {}]  }
   0x1   :  { %v834_v0 = vld [vmem:[%s1115_s1 + $0x38] sm:$0xff]  ;;  %v833_v4 = vld [vmem:[%s1115_s1 + $0x30] sm:$0xff]  ;;  %v832_v8 = vld [vmem:[%s1115_s1 + $0x28] sm:$0xff] }
   0x2   :  { %v842_v1 = vld [vmem:[%s1115_s1 + $0x78] sm:$0xff]  ;;  %468 = vmatpush.bf16.msra.mxu0 %v834_v0  ;;  %v841_v5 = vld [vmem:[%s1115_s1 + $0x70] sm:$0xff]  ;;  %v840_v9 = vld [vmem:[%s1115_s1 + $0x68] sm:$0xff] }
   0x3   :  { %v850_v2 = vld [vmem:[%s1115_s1 + $0xb8] sm:$0xff]  ;;  %486 = vmatpush.bf16.msra.mxu1 %v842_v1  ;;  %v849_v6 = vld [vmem:[%s1115_s1 + $0xb0] sm:$0xff]  ;;  %v848_v10 = vld [vmem:[%s1115_s1 + $0xa8] sm:$0xff] }
   0x4   :  { %v858_v3 = vld [vmem:[%s1115_s1 + $0xf8] sm:$0xff]  ;;  %504 = vmatpush.bf16.msra.mxu2 %v850_v2  ;;  %v857_v7 = vld [vmem:[%s1115_s1 + $0xf0] sm:$0xff]  ;;  %v856_v11 = vld [vmem:[%s1115_s1 + $0xe8] sm:$0xff] }
   0x5   :  { %522 = vmatpush.bf16.msra.mxu3 %v858_v3  ;;  %v831_v12 = vld [vmem:[%s1115_s1 + $0x20] sm:$0xff]  ;;  %v830_v16 = vld [vmem:[%s1115_s1 + $0x18] sm:$0xff]  ;;  %v829_v20 = vld [vmem:[%s1115_s1 + $0x10] sm:$0xff] }
   0x6   :  { %469 = vmatpush.bf16.msra.mxu0 %v833_v4  ;;  %v839_v13 = vld [vmem:[%s1115_s1 + $0x60] sm:$0xff]  ;;  %v838_v17 = vld [vmem:[%s1115_s1 + $0x58] sm:$0xff]  ;;  %v837_v21 = vld [vmem:[%s1115_s1 + $0x50] sm:$0xff] }
   0x7   :  { %487 = vmatpush.bf16.msra.mxu1 %v841_v5  ;;  %v847_v14 = vld [vmem:[%s1115_s1 + $0xa0] sm:$0xff]  ;;  %v846_v18 = vld [vmem:[%s1115_s1 + $0x98] sm:$0xff]  ;;  %v845_v22 = vld [vmem:[%s1115_s1 + $0x90] sm:$0xff] }
   0x8   :  { %505 = vmatpush.bf16.msra.mxu2 %v849_v6  ;;  %v855_v15 = vld [vmem:[%s1115_s1 + $0xe0] sm:$0xff]  ;;  %v854_v19 = vld [vmem:[%s1115_s1 + $0xd8] sm:$0xff]  ;;  %v853_v23 = vld [vmem:[%s1115_s1 + $0xd0] sm:$0xff] }
   0x9   :  { %523 = vmatpush.bf16.msra.mxu3 %v857_v7  ;;  %v828_v24 = vld [vmem:[%s1115_s1 + $0x8] sm:$0xff]  ;;  %v827_v28 = vld [vmem:[%s1115_s1] sm:$0xff]  ;;  %v824_v33 = vld [vmem:[%s1116_s0 + $0x14] sm:$0xf0] }
   0xa   :  { %470 = vmatpush.bf16.msra.mxu0 %v832_v8  ;;  %v836_v25 = vld [vmem:[%s1115_s1 + $0x48] sm:$0xff]  ;;  %v835_v29 = vld [vmem:[%s1115_s1 + $0x40] sm:$0xff]  ;;  %v609_v35 = vld [vmem:[%s1116_s0 + $0x18] sm:$0xf0] }
   0xb   :  { %488 = vmatpush.bf16.msra.mxu1 %v840_v9  ;;  %v844_v26 = vld [vmem:[%s1115_s1 + $0x88] sm:$0xff]  ;;  %v843_v30 = vld [vmem:[%s1115_s1 + $0x80] sm:$0xff]  ;;  %v866_v40 = vld [vmem:[%s1115_s1 + $0x138] sm:$0xff] }
   0xc   :  { %506 = vmatpush.bf16.msra.mxu2 %v848_v10  ;;  %v852_v27 = vld [vmem:[%s1115_s1 + $0xc8] sm:$0xff]  ;;  %v851_v31 = vld [vmem:[%s1115_s1 + $0xc0] sm:$0xff]  ;;  %v874_v45 = vld [vmem:[%s1115_s1 + $0x178] sm:$0xff] }
   0xd   :  { %524 = vmatpush.bf16.msra.mxu3 %v856_v11  ;;  %v607_v32 = vld [vmem:[%s1116_s0] sm:$0xf]  ;;  %v821_v34 = vld [vmem:[%s1116_s0 + $0x4] sm:$0xf]  ;;  %v615_v36 = vld [vmem:[%s1116_s0 + $0x8] sm:$0xf] }
   0xe   :  { %471 = vmatpush.bf16.msra.mxu0 %v831_v12  ;;  %v825_v37 = vld [vmem:[%s1116_s0 + $0x1c] sm:$0xf0]  ;;  %v822_v38 = vld [vmem:[%s1116_s0 + $0xc] sm:$0xf]  ;;  %v617_v39 = vld [vmem:[%s1116_s0 + $0x20] sm:$0xf0]  ;;  %v608_v41 = vor.u32 %v824_v33, %v607_v32  ;;  %v612_v42 = vor.u32 %v821_v34, %v609_v35 }
   0xf   :  { %489 = vmatpush.bf16.msra.mxu1 %v839_v13  ;;  %v616_v43 = vor.u32 %v825_v37, %v615_v36  ;;  %v620_v44 = vor.u32 %v822_v38, %v617_v39  ;;  %v865_v46 = vld [vmem:[%s1115_s1 + $0x130] sm:$0xff]  ;;  %v864_v48 = vld [vmem:[%s1115_s1 + $0x128] sm:$0xff]  ;;  %v31_v51 = vld [vmem:[%s1116_s0 + $0x38] sm:$0xff] }
  0x10   :  { %507 = vmatpush.bf16.msra.mxu2 %v847_v14  ;;  %v873_v47 = vld [vmem:[%s1115_s1 + $0x170] sm:$0xff]  ;;  %v872_v50 = vld [vmem:[%s1115_s1 + $0x168] sm:$0xff]  ;;  %v863_v52 = vld [vmem:[%s1115_s1 + $0x120] sm:$0xff]  ;;  %v152_v55 = vunpack.c.l.b16 %v31_v51  ;;  %v153_v56 = vunpack.c.h.b16 %v31_v51 }
  0x11   :  { %525 = vmatpush.bf16.msra.mxu3 %v855_v15  ;;  %v30_v49 = vld [vmem:[%s1116_s0 + $0x30] sm:$0xff]  ;;  %v871_v57 = vld [vmem:[%s1115_s1 + $0x160] sm:$0xff]  ;;  %v862_v58 = vld [vmem:[%s1115_s1 + $0x118] sm:$0xff] }
  0x12   :  { %472 = vmatpush.bf16.msra.mxu0 %v830_v16  ;;  %v150_v53 = vunpack.c.l.b16 %v30_v49  ;;  %v151_v54 = vunpack.c.h.b16 %v30_v49  ;;  %v164_v61 = vpack.c.b16 %v152_v55, %v152_v55  ;;  %v165_v62 = vpack.c.b16 %v153_v56, %v153_v56  ;;  %v870_v63 = vld [vmem:[%s1115_s1 + $0x158] sm:$0xff]  ;;  %v861_v0 = vld [vmem:[%s1115_s1 + $0x110] sm:$0xff]  ;;  %v860_v2 = vld [vmem:[%s1115_s1 + $0x108] sm:$0xff] }
  0x13   :  { %490 = vmatpush.bf16.msra.mxu1 %v838_v17  ;;  %v869_v1 = vld [vmem:[%s1115_s1 + $0x150] sm:$0xff]  ;;  %v868_v3 = vld [vmem:[%s1115_s1 + $0x148] sm:$0xff]  ;;  %v32_v4 = vld [vmem:[%s1116_s0 + $0x40] sm:$0xff] }
  0x14   :  { %508 = vmatpush.bf16.msra.mxu2 %v846_v18  ;;  %v162_v59 = vpack.c.b16 %v150_v53, %v150_v53  ;;  %v163_v60 = vpack.c.b16 %v151_v54, %v151_v54  ;;  %v859_v5 = vld [vmem:[%s1115_s1 + $0x100] sm:$0xff]  ;;  %v623_v6 = vld [vmem:[%s1116_s0 + $0x10] sm:$0xf]  ;;  %v826_v7 = vld [vmem:[%s1116_s0 + $0x24] sm:$0xf0]  ;;  %v154_v8 = vunpack.c.l.b16 %v32_v4  ;;  %v155_v12 = vunpack.c.h.b16 %v32_v4 }
  0x15   :  { %526 = vmatpush.bf16.msra.mxu3 %v854_v19  ;;  %v867_v9 = vld [vmem:[%s1115_s1 + $0x140] sm:$0xff]  ;;  %v823_v10 = vld [vmem:[%s1116_s0 + $0x14] sm:$0xf]  ;;  %v625_v11 = vld [vmem:[%s1116_s0 + $0x28] sm:$0xf0]  ;;  %v624_v13 = vor.u32 %v826_v7, %v623_v6 }
  0x16   :  { %473 = vmatpush.bf16.msra.mxu0 %v829_v20  ;;  %v166_v14 = vpack.c.b16 %v154_v8, %v154_v8  ;;  %v628_v15 = vor.u32 %v823_v10, %v625_v11  ;;  %v167_v16 = vpack.c.b16 %v155_v12, %v155_v12 }
  0x17   :  { %491 = vmatpush.bf16.msra.mxu1 %v837_v21 }
  0x18   :  { %509 = vmatpush.bf16.msra.mxu2 %v845_v22 }
  0x19   :  { %527 = vmatpush.bf16.msra.mxu3 %v853_v23 }
  0x1a   :  { %474 = vmatpush.bf16.msra.mxu0 %v828_v24 }
  0x1b   :  { %492 = vmatpush.bf16.msra.mxu1 %v836_v25 }
  0x1c   :  { %510 = vmatpush.bf16.msra.mxu2 %v844_v26 }
  0x1d   :  { %528 = vmatpush.bf16.msra.mxu3 %v852_v27 }
  0x1e   :  { %475 = vmatpush.bf16.msra.mxu0 %v827_v28 }
  0x1f   :  { %493 = vmatpush.bf16.msra.mxu1 %v835_v29 }
  0x20   :  { %511 = vmatpush.bf16.msra.mxu2 %v843_v30 }
  0x21   :  { %529 = vmatpush.bf16.msra.mxu3 %v851_v31  ;;  %476 = vmatmul.bf16.vlgmr.msra.gmra.mxu0 %v608_v41 }
  0x22   :  { %540 = vmatpush.bf16.msrb.mxu0 %v866_v40  ;;  %494 = vmatmul.bf16.vlgmr.msra.gmra.mxu1 %v612_v42 }
  0x23   :  { %512 = vmatmul.bf16.vlgmr.msra.gmra.mxu2 %v616_v43  ;;  %558 = vmatpush.bf16.msrb.mxu1 %v874_v45 }
  0x24   :  { %880 = vmatpush.bf16.msrb.mxu2 %v866_v40  ;;  %530 = vmatmul.bf16.vlgmr.msra.gmra.mxu3 %v620_v44 }
  0x25   :  { %888 = vmatpush.bf16.msrb.mxu3 %v874_v45 }
  0x26   :  { %541 = vmatpush.bf16.msrb.mxu0 %v865_v46 }
  0x27   :  { %559 = vmatpush.bf16.msrb.mxu1 %v873_v47 }
  0x28   :  { %881 = vmatpush.bf16.msrb.mxu2 %v865_v46 }
  0x29   :  { %889 = vmatpush.bf16.msrb.mxu3 %v873_v47 }
  0x2a   :  { %542 = vmatpush.bf16.msrb.mxu0 %v864_v48 }
  0x2b   :  { %560 = vmatpush.bf16.msrb.mxu1 %v872_v50 }
  0x2c   :  { %882 = vmatpush.bf16.msrb.mxu2 %v864_v48 }
  0x2d   :  { %890 = vmatpush.bf16.msrb.mxu3 %v872_v50  ;;  %v896_v50 = vld [vmem:[%s1117_s2] ss:$0 sm:$0xff] }
  0x2e   :  { %543 = vmatpush.bf16.msrb.mxu0 %v863_v52 }
  0x2f   :  { %561 = vmatpush.bf16.msrb.mxu1 %v871_v57 }
  0x30   :  { %883 = vmatpush.bf16.msrb.mxu2 %v863_v52 }
  0x31   :  { %891 = vmatpush.bf16.msrb.mxu3 %v871_v57  ;;  %481 = vmatmul.bf16.gmra.mxu0 %v162_v59 }
  0x32   :  { %544 = vmatpush.bf16.msrb.mxu0 %v862_v58  ;;  %499 = vmatmul.bf16.gmra.mxu1 %v163_v60 }
  0x33   :  { %517 = vmatmul.bf16.gmra.mxu2 %v164_v61  ;;  %562 = vmatpush.bf16.msrb.mxu1 %v870_v63 }
  0x34   :  { %884 = vmatpush.bf16.msrb.mxu2 %v862_v58  ;;  %535 = vmatmul.bf16.gmra.mxu3 %v165_v62 }
  0x35   :  { %892 = vmatpush.bf16.msrb.mxu3 %v870_v63 }
  0x36   :  { %545 = vmatpush.bf16.msrb.mxu0 %v861_v0 }
  0x37   :  { %563 = vmatpush.bf16.msrb.mxu1 %v869_v1 }
  0x38   :  { %885 = vmatpush.bf16.msrb.mxu2 %v861_v0 }
  0x39   :  { %893 = vmatpush.bf16.msrb.mxu3 %v869_v1 }
  0x3a   :  { %546 = vmatpush.bf16.msrb.mxu0 %v860_v2 }
  0x3b   :  { %564 = vmatpush.bf16.msrb.mxu1 %v868_v3 }
  0x3c   :  { %886 = vmatpush.bf16.msrb.mxu2 %v860_v2 }
  0x3d   :  { %894 = vmatpush.bf16.msrb.mxu3 %v868_v3 }
  0x3e   :  { %547 = vmatpush.bf16.msrb.mxu0 %v859_v5 }
  0x3f   :  { %565 = vmatpush.bf16.msrb.mxu1 %v867_v9 }
  0x40   :  { %887 = vmatpush.bf16.msrb.mxu2 %v859_v5 }
  0x41   :  { %895 = vmatpush.bf16.msrb.mxu3 %v867_v9  ;;  %548 = vmatmul.bf16.vlgmr.msrb.gmra.mxu0 %v624_v13 }
  0x42   :  { %566 = vmatmul.bf16.vlgmr.msrb.gmra.mxu1 %v628_v15 }
  0x43   :  { %553 = vmatmul.bf16.vlgmr.msrb.gmra.mxu2 %v166_v14 }
  0x44   :  { %571 = vmatmul.bf16.vlgmr.msrb.gmra.mxu3 %v167_v16 }
  0x9e   :  { %v477_v17 = vpop.f32.mrf.mxu0 }
  0x9f   :  { %v495_v18 = vpop.f32.mrf.mxu1 }
  0xa0   :  { %v496_v31 = vadd.f32 %v495_v18, %v477_v17 }
  0xa6   :  { %v513_v19 = vpop.f32.mrf.mxu2  ;;  %v479_v21 = vpop.f32.mrf.mxu0 }
  0xa7   :  { %v531_v20 = vpop.f32.mrf.mxu3  ;;  %v497_v22 = vpop.f32.mrf.mxu1  ;;  %v514_v32 = vadd.f32 %v513_v19, %v496_v31 }
  0xa8   :  { %v498_v37 = vadd.f32 %v497_v22, %v479_v21 }
  0xa9   :  { %v532_v40 = vadd.f32 %v531_v20, %v514_v32 }
  0xae   :  { %v515_v23 = vpop.f32.mrf.mxu2  ;;  %v482_v25 = vpop.f32.mrf.mxu0 }
  0xaf   :  { %v533_v24 = vpop.f32.mrf.mxu3  ;;  %v500_v26 = vpop.f32.mrf.mxu1  ;;  %v516_v41 = vadd.f32 %v515_v23, %v498_v37 }
  0xb0   :  { %v501_v35 = vadd.f32 %v500_v26, %v482_v25 }
  0xb1   :  { %v534_v44 = vadd.f32 %v533_v24, %v516_v41 }
  0xb6   :  { %v518_v27 = vpop.f32.mrf.mxu2  ;;  %v484_v29 = vpop.f32.mrf.mxu0 }
  0xb7   :  { %v536_v28 = vpop.f32.mrf.mxu3  ;;  %v502_v30 = vpop.f32.mrf.mxu1  ;;  %v519_v39 = vadd.f32 %v518_v27, %v501_v35 }
  0xb9   :  { %v537_v43 = vadd.f32 %v536_v28, %v519_v39 }
  0xbe   :  { %v520_v33 = vpop.f32.mrf.mxu2  ;;  %v549_v36 = vpop.f32.mrf.mxu0 }
  0xbf   :  { %v538_v34 = vpop.f32.mrf.mxu3  ;;  %v567_v38 = vpop.f32.mrf.mxu1  ;;  %v550_v42 = vadd.f32 %v549_v36, %v532_v40 }
  0xc1   :  { %v568_v49 = vadd.f32 %v567_v38, %v550_v42 }
  0xc3   :  { %v592_v56 = vadd.f32 %v896_v50, %v568_v49 }
  0xc6   :  { %v554_v45 = vpop.f32.mrf.mxu2  ;;  %v551_v48 = vpop.f32.mrf.mxu0 }
  0xc7   :  { %v555_v46 = vadd.f32 %v554_v45, %v537_v43  ;;  %v572_v47 = vpop.f32.mrf.mxu3  ;;  %v552_v51 = vadd.f32 %v551_v48, %v534_v44  ;;  %v569_v53 = vpop.f32.mrf.mxu1 }
  0xc9   :  { %v573_v52 = vadd.f32 %v572_v47, %v555_v46  ;;  %v570_v54 = vadd.f32 %v569_v53, %v552_v51 }
  0xcb   :  { %v594_v55 = vadd.f32 %v896_v50, %v573_v52  ;;  %v593_v57 = vadd.f32 %v896_v50, %v570_v54 }
  0xcd   :  { %v597_v58 = vpack.c.bf16 %v594_v55, %v594_v55  ;;  %v878_v59 = vpack.c.bf16 %v593_v57, %v592_v56 }
  0xce   :  { %v556_v60 = vpop.f32.mrf.mxu2 }
  0xcf   :  { %600 = vst [vmem:[%s1118_s3 + $0x8] sm:$0xf] %v597_v58  ;;  %v574_v61 = vpop.f32.mrf.mxu3 }
  0xd0   :  { %879 = vst [vmem:[%s1118_s3] sm:$0xff] %v878_v59  }

// kernel: visual_encoder_forward.65
= control target key start
LH: loop header
LB: loop body
LE: loop exit
PB: predicated region body
PF: predicated region fallthrough
CT: control target
= control target key end

     0   :  { %s289_s1 = inlined_call_operand.vmem [shape: bf16[128,128], index: 1, kind: input, shape index: {}]   ;;  %s290_s2 = inlined_call_operand.vmem [shape: f32[1,128], index: 2, kind: input, shape index: {}]   ;;  %s291_s0 = inlined_call_operand.vmem [shape: bf16[32,128], index: 0, kind: input, shape index: {}]   ;;  %s292_s3 = inlined_call_operand.vmem [shape: bf16[32,128], index: 3, kind: output, shape index: {}]  }
   0x1   :  { %v209_v0 = vld [vmem:[%s289_s1 + $0x38] sm:$0xff]  ;;  %v208_v1 = vld [vmem:[%s289_s1 + $0x30] sm:$0xff]  ;;  %v207_v2 = vld [vmem:[%s289_s1 + $0x28] sm:$0xff] }
   0x2   :  { %106 = vmatpush.bf16.msra.mxu0 %v209_v0  ;;  %221 = vmatpush.bf16.msra.mxu1 %v209_v0  ;;  %v206_v3 = vld [vmem:[%s289_s1 + $0x20] sm:$0xff]  ;;  %v205_v4 = vld [vmem:[%s289_s1 + $0x18] sm:$0xff]  ;;  %v204_v5 = vld [vmem:[%s289_s1 + $0x10] sm:$0xff] }
   0x3   :  { %v203_v6 = vld [vmem:[%s289_s1 + $0x8] sm:$0xff]  ;;  %v202_v7 = vld [vmem:[%s289_s1] sm:$0xff] }
   0x4   :  { %v200_v8 = vld [vmem:[%s291_s0] sm:$0xff]  ;;  %v201_v9 = vld [vmem:[%s291_s0 + $0x8] sm:$0xff] }
   0x5   :  { %v229_v12 = vld [vmem:[%s290_s2] ss:$0 sm:$0xff] }
   0x6   :  { %107 = vmatpush.bf16.msra.mxu0 %v208_v1  ;;  %222 = vmatpush.bf16.msra.mxu1 %v208_v1 }
   0xa   :  { %108 = vmatpush.bf16.msra.mxu0 %v207_v2  ;;  %223 = vmatpush.bf16.msra.mxu1 %v207_v2 }
   0xe   :  { %109 = vmatpush.bf16.msra.mxu0 %v206_v3  ;;  %224 = vmatpush.bf16.msra.mxu1 %v206_v3 }
  0x12   :  { %110 = vmatpush.bf16.msra.mxu0 %v205_v4  ;;  %225 = vmatpush.bf16.msra.mxu1 %v205_v4 }
  0x16   :  { %111 = vmatpush.bf16.msra.mxu0 %v204_v5  ;;  %226 = vmatpush.bf16.msra.mxu1 %v204_v5 }
  0x1a   :  { %112 = vmatpush.bf16.msra.mxu0 %v203_v6  ;;  %227 = vmatpush.bf16.msra.mxu1 %v203_v6 }
  0x1e   :  { %113 = vmatpush.bf16.msra.mxu0 %v202_v7  ;;  %228 = vmatpush.bf16.msra.mxu1 %v202_v7 }
  0x21   :  { %114 = vmatmul.bf16.vlgmr.msra.gmra.mxu0 %v200_v8  ;;  %119 = vmatmul.bf16.vlgmr.msra.gmra.mxu1 %v201_v9 }
  0x9e   :  { %v115_v10 = vpop.f32.mrf.mxu0  ;;  %v120_v11 = vpop.f32.mrf.mxu1 }
  0x9f   :  { %v144_v15 = vadd.f32 %v229_v12, %v115_v10  ;;  %v146_v16 = vadd.f32 %v229_v12, %v120_v11 }
  0xa6   :  { %v117_v13 = vpop.f32.mrf.mxu0  ;;  %v122_v14 = vpop.f32.mrf.mxu1 }
  0xa7   :  { %v145_v17 = vadd.f32 %v229_v12, %v117_v13  ;;  %v147_v18 = vadd.f32 %v229_v12, %v122_v14 }
  0xa9   :  { %v213_v19 = vpack.c.bf16 %v145_v17, %v144_v15  ;;  %v218_v20 = vpack.c.bf16 %v147_v18, %v146_v16 }
  0xab   :  { %214 = vst [vmem:[%s292_s3] sm:$0xff] %v213_v19  }
  0xac   :  { %220 = vst [vmem:[%s292_s3 + $0x8] sm:$0xff] %v218_v20  }

// kernel: visual_encoder_forward.64
= control target key start
LH: loop header
LB: loop body
LE: loop exit
PB: predicated region body
PF: predicated region fallthrough
CT: control target
= control target key end

     0   :  { %s660_s12 = smov 0   ;;  %s662_s13 = smov 0   ;;  %s728_s0 = inlined_call_operand.vmem [shape: bf16[2,4,13,32], index: 0, kind: input, shape index: {}]   ;;  %s729_s1 = inlined_call_operand.vmem [shape: bf16[2,4,13,32], index: 1, kind: input, shape index: {}]   ;;  %s730_s2 = inlined_call_operand.vmem [shape: bf16[2,4,13,32], index: 2, kind: input, shape index: {}]   ;;  %s731_s3 = inlined_call_operand.vmem [shape: bf16[2,4,13,32], index: 3, kind: output, shape index: {}]  }
   0x1   :  { %s664_s14 = smov 0   ;;  %s666_s15 = smov 0  }
   0x2   :  { %s668_s16 = smov 0  }
   0x3 LB: > { %s22_s17 = sadd.s32 1, %s629_s14  ;;  %s25_s18 = sadd.s32 1, %s633_s15  ;;  %s637_s16 = sphi %s668_s16, %s13_s16   ;;  %s633_s15 = sphi %s666_s15, %s735_s15   ;;  %s629_s14 = sphi %s664_s14, %s734_s14   ;;  %s625_s13 = sphi %s662_s13, %s733_s13   ;;  %s621_s12 = sphi %s660_s12, %s732_s12  }
   0x4   : > { %p23_p0 = scmp.ge.s32.totalorder %s22_s17, 4  ;;  %p518_p1 = scmp.ge.s32.totalorder %s637_s16, 1 }
   0x5   : > { %p189_p2 = scmp.lt.s32.totalorder %s637_s16, 9 }
   0x6   : > { %s737_s17 = smov (%p23_p0, %s22_s17), 0  ;;  %s739_s18 = smov (!%p23_p0, %s25_s18), %s633_s15 }
   0x7   : > { %p190_p3 = pnand %p518_p1, %p189_p2  ;;  %p27_p4 = scmp.ge.s32.totalorder %s739_s18, 2 }
   0x8   : > { %p239_p5 = scmp.lt.s32.totalorder (!%p190_p3), %s625_s13, 1  ;;  %p241_p6 = scmp.lt.s32.totalorder (!%p190_p3), %s621_s12, 3 }
   0x9   : > { %s741_s18 = smov (%p27_p4, %s739_s18), 0  ;;  %193 = sbr.rel (%p190_p3) target bundleno = 558 (0x22e), region = 32 }
   0xe   : > { %s743_s13 = smov (!%p239_p5, %s625_s13), 1  ;;  %s745_s12 = smov (!%p241_p6, %s621_s12), 3  ;;  %vm290_vm0 = vcmask 261120   ;;  %vm311_vm1 = vcmask 105472   ;;  %vm315_vm2 = vcmask 102400   ;;  %vm346_vm3 = vcmask 1045504  }
   0xf   : > { %s520_s19 = sshll.u32 %s743_s13, 3  ;;  %s519_s20 = sshll.u32 %s745_s12, 1  ;;  %vm347_vm4 = vcmask 1046528   ;;  %v639_v24 = vmov 65535   ;;  %vm369_vm5 = vcmask 257024   ;;  %vm371_vm6 = vcmask 256000  }
  0x10   : > { %s245_s21 = sadd.s32 %s520_s19, %s519_s20  ;;  %v348_v25 = vsel %vm346_vm3, 4294967295, %v639_v24  ;;  %vm372_vm7 = vsmask.f32 2304 }
  0x11   : > { %s690_s22 = sshll.u32 %s245_s21, 2  ;;  %v349_v26 = vsel %vm347_vm4, %v348_v25, 0  ;;  %vm373_vm8 = vmand %vm371_vm6, %vm372_vm7 }
  0x12   : > { %s256_s25 = scalar_lea.vmem %s729_s1, %s690_s22  ;;  %s247_s28 = scalar_lea.vmem %s728_s0, %s690_s22 }
  0x13   : > { %v537_v0 = vld [vmem:[%s256_s25] sm:$0xf]  ;;  %v548_v1 = vld [vmem:[%s256_s25] sm:$0x70]  ;;  %s265_s4 = scalar_lea.vmem %s730_s2, %s690_s22  ;;  %s274_s7 = scalar_lea.vmem %s731_s3, %s690_s22 }
  0x14   : > { %v538_v2 = vor.u32 %v548_v1, %v537_v0  ;;  %v533_v4 = vld [vmem:[%s247_s28] sm:$0xf]  ;;  %v547_v5 = vld [vmem:[%s247_s28] sm:$0x70] }
  0x15   : > { %v534_v6 = vor.u32 %v547_v5, %v533_v4  ;;  %v542_v21 = vld [vmem:[%s265_s4] sm:$0xf]  ;;  %v549_v22 = vld [vmem:[%s265_s4] sm:$0x70] }
  0x16   : > { %v295_v3 = vsel %vm290_vm0, %v538_v2, 0  ;;  %v543_v23 = vor.u32 %v549_v22, %v542_v21  ;;  %v374_v38 = vld [vmem:[%s274_s7 + $0x4] sm:$0x7] }
  0x17   : > { %304 = vmatpush.bf16.xpose.msra.mxu0 %v295_v3 }
  0x18   : > { %v351_v27 = vand.u32 %v543_v23, %v349_v26 }
  0x1a   : > { %360 = vmatpush.bf16.msra.mxu1 %v351_v27 }
  0x1e   : > { %539 = vmatmul.msk.bf16.vlgmr.msra.gmra.mxu0 %vm290_vm0, %v534_v6 }
  0x9b   : > { %v306_v7 = vpop.f32.mrf.mxu0 }
  0x9c   : > { %v312_v8 = vsel %vm311_vm1, %v306_v7, -inf }
  0x9d   : > { %313 = vmax.xlane.f32.xlu0 %v312_v8 }
  0xa3   : > { %v308_v9 = vpop.f32.mrf.mxu0 }
  0xa4   : > { %v316_v10 = vsel %vm315_vm2, %v308_v9, -inf }
  0xa5   : > { %317 = vmax.xlane.f32.xlu0 %v316_v10 }
 0x110   : > { %v314_v11 = vpop.xlane.xlu0 %313 }
 0x111   : > { %v319_v12 = vsub.f32 %v306_v7, %v314_v11 }
 0x113   : > { %v321_v13 = vmul.f32 1.442695, %v319_v12 }
 0x115   : > { %591 = vpow2.f32 %v321_v13 }
 0x118   : > { %v318_v14 = vpop.xlane.xlu0 %317 }
 0x119   : > { %v320_v15 = vsub.f32 %v308_v9, %v318_v14 }
 0x11b   : > { %v592_v16 = vpop.eup %591  ;;  %v323_v17 = vmul.f32 1.442695, %v320_v15 }
 0x11c   : > { %v325_v18 = vsel %vm311_vm1, %v592_v16, 0.0 }
 0x11d   : > { %593 = vpow2.f32 %v323_v17  ;;  %326 = vadd.xlane.f32.xlu1 %v325_v18 }
 0x123   : > { %v594_v19 = vpop.eup %593 }
 0x124   : > { %v328_v20 = vsel %vm315_vm2, %v594_v19, 0.0 }
 0x125   : > { %329 = vadd.xlane.f32.xlu1 %v328_v20 }
 0x190   : > { %v327_v28 = vpop.xlane.xlu1 %326 }
 0x191   : > { %595 = vrcp.f32 %v327_v28 }
 0x197   : > { %v596_v30 = vpop.eup %595 }
 0x198   : > { %v330_v29 = vpop.xlane.xlu1 %329  ;;  %v333_v32 = vmul.f32 %v596_v30, %v592_v16 }
 0x199   : > { %597 = vrcp.f32 %v330_v29 }
 0x19f   : > { %v598_v31 = vpop.eup %597 }
 0x1a0   : > { %v334_v33 = vmul.f32 %v598_v31, %v594_v19 }
 0x1a2   : > { %v335_v34 = vpack.c.bf16 %v334_v33, %v333_v32 }
 0x1a4   : > { %544 = vmatmul.msk.bf16.vlgmr.msra.gmra.mxu1 %vm311_vm1, %v335_v34 }
 0x221   : > { %v362_v35 = vpop.f32.mrf.mxu1 }
 0x222   : > { %v367_v36 = vpack.c.bf16 %v362_v35, %v362_v35 }
 0x224   : > { %370 = vst.msk [vmem:[%s274_s7] sm:$0xf] %vm369_vm5, %v367_v36 }
 0x229   : > { %v364_v37 = vpop.f32.mrf.mxu1 }
 0x22a   : > { %v368_v39 = vpack.c.bf16 %v364_v37, %v364_v37 }
 0x22c   : > { %v375_v40 = vsel %vm373_vm8, %v368_v39, %v374_v38 }
 0x22d   : > { %376 = vst [vmem:[%s274_s7 + $0x4] sm:$0x7] %v375_v40 }
 0x22e PF: > { %s13_s16 = sadd.s32 1, %s637_s16   ;;  %s732_s12 = smov %s629_s14 }
 0x22f   : > { %p10_p7 = scmp.ge.s32.totalorder %s13_s16, 10   ;;  %s733_s13 = smov %s633_s15 }
 0x230   : > { %s734_s14 = smov %s737_s17  ;;  %s735_s15 = smov %s741_s18 }
 0x231   :  { %12 = sbr.rel (!%p10_p7) target bundleno = 3 (0x3), region = 68 }

// kernel: visual_encoder_forward.67
= control target key start
LH: loop header
LB: loop body
LE: loop exit
PB: predicated region body
PF: predicated region fallthrough
CT: control target
= control target key end

     0   :  { %s767_s1 = inlined_call_operand.vmem [shape: bf16[128,256], index: 1, kind: input, shape index: {}]   ;;  %s768_s0 = inlined_call_operand.vmem [shape: bf16[32,128], index: 0, kind: input, shape index: {}]   ;;  %s769_s2 = inlined_call_operand.vmem [shape: f32[1,256], index: 2, kind: input, shape index: {}]   ;;  %s770_s3 = inlined_call_operand.vmem [shape: bf16[32,256], index: 3, kind: output, shape index: {}]  }
   0x1   :  { %v463_v0 = vld [vmem:[%s767_s1 + $0x70] sm:$0xf]  ;;  %v486_v1 = vld [vmem:[%s767_s1 + $0x74] sm:$0xf0]  ;;  %v485_v2 = vld [vmem:[%s767_s1 + $0x74] sm:$0xf] }
   0x2   :  { %v464_v3 = vor.u32 %v486_v1, %v463_v0  ;;  %v465_v4 = vld [vmem:[%s767_s1 + $0x78] sm:$0xf0]  ;;  %v455_v5 = vld [vmem:[%s767_s1 + $0x60] sm:$0xf]  ;;  %v484_v6 = vld [vmem:[%s767_s1 + $0x64] sm:$0xf0] }
   0x3   :  { %v468_v7 = vor.u32 %v485_v2, %v465_v4  ;;  %v483_v8 = vld [vmem:[%s767_s1 + $0x64] sm:$0xf]  ;;  %v457_v9 = vld [vmem:[%s767_s1 + $0x68] sm:$0xf0]  ;;  %v456_v10 = vor.u32 %v484_v6, %v455_v5  ;;  %v447_v12 = vld [vmem:[%s767_s1 + $0x50] sm:$0xf] }
   0x4   :  { %146 = vmatpush.bf16.msra.mxu0 %v464_v3  ;;  %487 = vmatpush.bf16.msra.mxu2 %v464_v3  ;;  %v460_v11 = vor.u32 %v483_v8, %v457_v9  ;;  %v482_v13 = vld [vmem:[%s767_s1 + $0x54] sm:$0xf0]  ;;  %v481_v14 = vld [vmem:[%s767_s1 + $0x54] sm:$0xf]  ;;  %v449_v15 = vld [vmem:[%s767_s1 + $0x58] sm:$0xf0] }
   0x5   :  { %165 = vmatpush.bf16.msra.mxu1 %v468_v7  ;;  %495 = vmatpush.bf16.msra.mxu3 %v468_v7  ;;  %v448_v16 = vor.u32 %v482_v13, %v447_v12  ;;  %v452_v17 = vor.u32 %v481_v14, %v449_v15  ;;  %v439_v18 = vld [vmem:[%s767_s1 + $0x40] sm:$0xf]  ;;  %v480_v19 = vld [vmem:[%s767_s1 + $0x44] sm:$0xf0]  ;;  %v479_v20 = vld [vmem:[%s767_s1 + $0x44] sm:$0xf] }
   0x6   :  { %v441_v21 = vld [vmem:[%s767_s1 + $0x48] sm:$0xf0]  ;;  %v440_v22 = vor.u32 %v480_v19, %v439_v18  ;;  %v431_v24 = vld [vmem:[%s767_s1 + $0x30] sm:$0xf]  ;;  %v478_v25 = vld [vmem:[%s767_s1 + $0x34] sm:$0xf0] }
   0x7   :  { %v444_v23 = vor.u32 %v479_v20, %v441_v21  ;;  %v477_v26 = vld [vmem:[%s767_s1 + $0x34] sm:$0xf]  ;;  %v433_v27 = vld [vmem:[%s767_s1 + $0x38] sm:$0xf0]  ;;  %v432_v28 = vor.u32 %v478_v25, %v431_v24  ;;  %v423_v30 = vld [vmem:[%s767_s1 + $0x20] sm:$0xf] }
   0x8   :  { %147 = vmatpush.bf16.msra.mxu0 %v456_v10  ;;  %488 = vmatpush.bf16.msra.mxu2 %v456_v10  ;;  %v436_v29 = vor.u32 %v477_v26, %v433_v27  ;;  %v476_v31 = vld [vmem:[%s767_s1 + $0x24] sm:$0xf0]  ;;  %v475_v32 = vld [vmem:[%s767_s1 + $0x24] sm:$0xf]  ;;  %v425_v33 = vld [vmem:[%s767_s1 + $0x28] sm:$0xf0] }
   0x9   :  { %166 = vmatpush.bf16.msra.mxu1 %v460_v11  ;;  %496 = vmatpush.bf16.msra.mxu3 %v460_v11  ;;  %v424_v34 = vor.u32 %v476_v31, %v423_v30  ;;  %v428_v35 = vor.u32 %v475_v32, %v425_v33  ;;  %v415_v36 = vld [vmem:[%s767_s1 + $0x10] sm:$0xf]  ;;  %v474_v37 = vld [vmem:[%s767_s1 + $0x14] sm:$0xf0]  ;;  %v473_v38 = vld [vmem:[%s767_s1 + $0x14] sm:$0xf] }
   0xa   :  { %v417_v39 = vld [vmem:[%s767_s1 + $0x18] sm:$0xf0]  ;;  %v416_v40 = vor.u32 %v474_v37, %v415_v36  ;;  %v407_v42 = vld [vmem:[%s767_s1] sm:$0xf]  ;;  %v472_v43 = vld [vmem:[%s767_s1 + $0x4] sm:$0xf0] }
   0xb   :  { %v420_v41 = vor.u32 %v473_v38, %v417_v39  ;;  %v471_v44 = vld [vmem:[%s767_s1 + $0x4] sm:$0xf]  ;;  %v409_v45 = vld [vmem:[%s767_s1 + $0x8] sm:$0xf0]  ;;  %v408_v46 = vor.u32 %v472_v43, %v407_v42  ;;  %v211_v50 = vld [vmem:[%s769_s2] sm:$0x3] }
   0xc   :  { %148 = vmatpush.bf16.msra.mxu0 %v448_v16  ;;  %489 = vmatpush.bf16.msra.mxu2 %v448_v16  ;;  %v412_v47 = vor.u32 %v471_v44, %v409_v45  ;;  %v469_v48 = vld [vmem:[%s768_s0] sm:$0xff]  ;;  %v470_v49 = vld [vmem:[%s768_s0 + $0x8] sm:$0xff]  ;;  %v213_v51 = vperm.slane %v211_v50, 0  ;;  %v214_v52 = vperm.slane %v211_v50, 1 }
   0xd   :  { %167 = vmatpush.bf16.msra.mxu1 %v452_v17  ;;  %497 = vmatpush.bf16.msra.mxu3 %v452_v17 }
  0x10   :  { %149 = vmatpush.bf16.msra.mxu0 %v440_v22  ;;  %490 = vmatpush.bf16.msra.mxu2 %v440_v22 }
  0x11   :  { %168 = vmatpush.bf16.msra.mxu1 %v444_v23  ;;  %498 = vmatpush.bf16.msra.mxu3 %v444_v23 }
  0x14   :  { %150 = vmatpush.bf16.msra.mxu0 %v432_v28  ;;  %491 = vmatpush.bf16.msra.mxu2 %v432_v28 }
  0x15   :  { %169 = vmatpush.bf16.msra.mxu1 %v436_v29  ;;  %499 = vmatpush.bf16.msra.mxu3 %v436_v29 }
  0x18   :  { %151 = vmatpush.bf16.msra.mxu0 %v424_v34  ;;  %492 = vmatpush.bf16.msra.mxu2 %v424_v34 }
  0x19   :  { %170 = vmatpush.bf16.msra.mxu1 %v428_v35  ;;  %500 = vmatpush.bf16.msra.mxu3 %v428_v35 }
  0x1c   :  { %152 = vmatpush.bf16.msra.mxu0 %v416_v40  ;;  %493 = vmatpush.bf16.msra.mxu2 %v416_v40 }
  0x1d   :  { %171 = vmatpush.bf16.msra.mxu1 %v420_v41  ;;  %501 = vmatpush.bf16.msra.mxu3 %v420_v41 }
  0x20   :  { %153 = vmatpush.bf16.msra.mxu0 %v408_v46  ;;  %494 = vmatpush.bf16.msra.mxu2 %v408_v46 }
  0x21   :  { %172 = vmatpush.bf16.msra.mxu1 %v412_v47  ;;  %502 = vmatpush.bf16.msra.mxu3 %v412_v47 }
  0x23   :  { %154 = vmatmul.bf16.vlgmr.msra.gmra.mxu0 %v469_v48  ;;  %159 = vmatmul.bf16.vlgmr.msra.gmra.mxu2 %v470_v49 }
  0x24   :  { %173 = vmatmul.bf16.vlgmr.msra.gmra.mxu1 %v469_v48  ;;  %178 = vmatmul.bf16.vlgmr.msra.gmra.mxu3 %v470_v49 }
  0xa0   :  { %v155_v53 = vpop.f32.mrf.mxu0 }
  0xa1   :  { %v660_v54 = vadd.f32 %v213_v51, %v155_v53  ;;  %v174_v55 = vpop.f32.mrf.mxu1 }
  0xa2   :  { %v662_v56 = vadd.f32 %v214_v52, %v174_v55 }
  0xa3   :  { %v225_v57 = vmul.f32 -1.702, %v660_v54 }
  0xa4   :  { %v226_v58 = vmul.f32 -1.702, %v662_v56 }
  0xa5   :  { %v233_v59 = vmul.f32 1.442695, %v225_v57 }
  0xa6   :  { %v235_v60 = vmul.f32 1.442695, %v226_v58  ;;  %v160_v61 = vpop.f32.mrf.mxu2 }
  0xa7   :  { %503 = vpow2.f32 %v233_v59  ;;  %v666_v62 = vadd.f32 %v213_v51, %v160_v61  ;;  %v179_v63 = vpop.f32.mrf.mxu3 }
  0xa8   :  { %505 = vpow2.f32 %v235_v60  ;;  %v668_v0 = vadd.f32 %v214_v52, %v179_v63  ;;  %v157_v1 = vpop.f32.mrf.mxu0 }
  0xa9   :  { %v229_v2 = vmul.f32 -1.702, %v666_v62  ;;  %v671_v3 = vadd.f32 %v213_v51, %v157_v1  ;;  %v176_v4 = vpop.f32.mrf.mxu1 }
  0xaa   :  { %v230_v5 = vmul.f32 -1.702, %v668_v0  ;;  %v674_v6 = vadd.f32 %v214_v52, %v176_v4 }
  0xab   :  { %v241_v7 = vmul.f32 1.442695, %v229_v2  ;;  %v227_v8 = vmul.f32 -1.702, %v671_v3 }
  0xac   :  { %v243_v9 = vmul.f32 1.442695, %v230_v5  ;;  %v228_v10 = vmul.f32 -1.702, %v674_v6 }
  0xad   :  { %v504_v11 = vpop.eup %503  ;;  %507 = vpow2.f32 %v241_v7  ;;  %v237_v12 = vmul.f32 1.442695, %v227_v8 }
  0xae   :  { %v506_v13 = vpop.eup %505  ;;  %v249_v14 = vadd.f32 1.0, %v504_v11  ;;  %509 = vpow2.f32 %v243_v9  ;;  %v239_v15 = vmul.f32 1.442695, %v228_v10  ;;  %v162_v16 = vpop.f32.mrf.mxu2 }
  0xaf   :  { %v250_v17 = vadd.f32 1.0, %v506_v13  ;;  %511 = vpow2.f32 %v237_v12  ;;  %v678_v18 = vadd.f32 %v213_v51, %v162_v16  ;;  %v181_v19 = vpop.f32.mrf.mxu3 }
  0xb0   :  { %513 = vrcp.f32 %v249_v14  ;;  %v266_v22 = vand.u32 2147483647, %v249_v14  ;;  %v268_v23 = vand.u32 2147483648, %v249_v14  ;;  %v683_v28 = vadd.f32 %v214_v52, %v181_v19 }
  0xb1   :  { %515 = vrcp.f32 %v250_v17  ;;  %v231_v20 = vmul.f32 -1.702, %v678_v18  ;;  %v281_v25 = vand.u32 2147483647, %v250_v17  ;;  %v283_v26 = vand.u32 2147483648, %v250_v17 }
  0xb2   :  { %517 = vpow2.f32 %v239_v15  ;;  %vm262_vm0 = vweird.f32 %v249_v14  ;;  %vm277_vm1 = vweird.f32 %v250_v17  ;;  %vm688_vm2 = vcmp.eq.f32.partialorder %v266_v22, 8.507059e+37 }
  0xb3   :  { %v508_v21 = vpop.eup %507  ;;  %v245_v32 = vmul.f32 1.442695, %v231_v20  ;;  %v269_v36 = vor.u32 1.1754944e-38, %v268_v23  ;;  %vm693_vm3 = vcmp.eq.f32.partialorder %v281_v25, 8.507059e+37  ;;  %v284_v40 = vor.u32 1.1754944e-38, %v283_v26 }
  0xb4   :  { %v510_v24 = vpop.eup %509  ;;  %v681_v27 = vadd.f32 1.0, %v508_v21  ;;  %v232_v41 = vmul.f32 -1.702, %v683_v28 }
  0xb5   :  { %v512_v29 = vpop.eup %511  ;;  %v685_v30 = vadd.f32 1.0, %v510_v24 }
  0xb6   :  { %v514_v31 = vpop.eup %513  ;;  %519 = vrcp.f32 %v681_v27  ;;  %v326_v43 = vand.u32 2147483647, %v681_v27  ;;  %v328_v44 = vand.u32 2147483648, %v681_v27  ;;  %v700_v45 = vadd.f32 1.0, %v512_v29 }
  0xb7   :  { %v516_v33 = vpop.eup %515  ;;  %v258_v34 = vmul.f32 %v514_v31, %v249_v14  ;;  %521 = vrcp.f32 %v685_v30  ;;  %vm263_vm4 = vweird.f32 %v514_v31  ;;  %v341_v49 = vand.u32 2147483647, %v685_v30 }
  0xb8   :  { %v518_v37 = vpop.eup %517  ;;  %v273_v38 = vmul.f32 %v516_v33, %v250_v17  ;;  %523 = vpow2.f32 %v245_v32  ;;  %v343_v50 = vand.u32 2147483648, %v685_v30  ;;  %vm278_vm5 = vweird.f32 %v516_v33  ;;  %vm264_vm9 = vmor %vm262_vm0, %vm263_vm4 }
  0xb9   :  { %v259_v42 = vsub.f32 1.0, %v258_v34  ;;  %v702_v47 = vadd.f32 1.0, %v518_v37  ;;  %525 = vrcp.f32 %v700_v45  ;;  %vm322_vm6 = vweird.f32 %v681_v27  ;;  %vm279_vm10 = vmor %vm277_vm1, %vm278_vm5 }
  0xba   :  { %v274_v46 = vsub.f32 1.0, %v273_v38  ;;  %vm337_vm7 = vweird.f32 %v685_v30  ;;  %vm710_vm8 = vcmp.eq.f32.partialorder %v326_v43, 8.507059e+37  ;;  %v329_v60 = vor.u32 1.1754944e-38, %v328_v44 }
  0xbb   :  { %v260_v48 = vmul.f32 %v514_v31, %v259_v42  ;;  %527 = vrcp.f32 %v702_v47  ;;  %v247_v63 = vmul.f32 1.442695, %v232_v41  ;;  %vm719_vm11 = vcmp.eq.f32.partialorder %v341_v49, 8.507059e+37 }
  0xbc   :  { %v520_v51 = vpop.eup %519  ;;  %v275_v52 = vmul.f32 %v516_v33, %v274_v46  ;;  %v344_v5 = vor.u32 1.1754944e-38, %v343_v50  ;;  %vm292_vm12 = vweird.f32 %v700_v45  ;;  %v296_v21 = vand.u32 2147483647, %v700_v45 }
  0xbd   :  { %v522_v53 = vpop.eup %521  ;;  %v261_v55 = vadd.f32 %v514_v31, %v260_v48  ;;  %v318_v57 = vmul.f32 %v520_v51, %v681_v27  ;;  %vm323_vm13 = vweird.f32 %v520_v51  ;;  %v298_v22 = vand.u32 2147483648, %v700_v45 }
  0xbe   :  { %v276_v59 = vadd.f32 %v516_v33, %v275_v52  ;;  %v333_v61 = vmul.f32 %v522_v53, %v685_v30  ;;  %v524_v7 = vpop.eup %523  ;;  %vm338_vm14 = vweird.f32 %v522_v53  ;;  %vm324_vm15 = vmor %vm322_vm6, %vm323_vm13  ;;  %v311_v29 = vand.u32 2147483647, %v702_v47 }
  0xbf   :  { %v265_v1 = vsel %vm264_vm9, %v514_v31, %v261_v55  ;;  %v319_v2 = vsub.f32 1.0, %v318_v57  ;;  %v526_v11 = vpop.eup %525  ;;  %v255_v23 = vadd.f32 1.0, %v524_v7  ;;  %vm339_vm0 = vmor %vm337_vm7, %vm338_vm14  ;;  %v313_v35 = vand.u32 2147483648, %v702_v47 }
  0xc0   :  { %v270_v8 = vsel %vm688_vm2, %v269_v36, %v265_v1  ;;  %v280_v9 = vsel %vm279_vm10, %v516_v33, %v276_v59  ;;  %v334_v10 = vsub.f32 1.0, %v333_v61  ;;  %v288_v17 = vmul.f32 %v526_v11, %v700_v45 }
  0xc1   :  { %v377_v12 = vmul.f32 %v270_v8, %v660_v54  ;;  %v285_v13 = vsel %vm693_vm3, %v284_v40, %v280_v9  ;;  %v320_v14 = vmul.f32 %v520_v51, %v319_v2  ;;  %v528_v19 = vpop.eup %527  ;;  %vm293_vm1 = vweird.f32 %v526_v11 }
  0xc2   :  { %v378_v15 = vmul.f32 %v285_v13, %v662_v56  ;;  %v335_v16 = vmul.f32 %v522_v53, %v334_v10  ;;  %v289_v25 = vsub.f32 1.0, %v288_v17  ;;  %v303_v26 = vmul.f32 %v528_v19, %v702_v47  ;;  %vm294_vm3 = vmor %vm292_vm12, %vm293_vm1 }
  0xc3   :  { %v321_v20 = vadd.f32 %v520_v51, %v320_v14  ;;  %529 = vrcp.f32 %v255_v23  ;;  %vm308_vm2 = vweird.f32 %v528_v19  ;;  %vm297_vm4 = vcmp.eq.f32.partialorder %v296_v21, 8.507059e+37 }
  0xc4   :  { %v385_v24 = vpack.c.bf16 %v378_v15, %v377_v12  ;;  %v336_v54 = vadd.f32 %v522_v53, %v335_v16  ;;  %v290_v32 = vmul.f32 %v526_v11, %v289_v25  ;;  %v304_v33 = vsub.f32 1.0, %v303_v26 }
  0xc5   :  { %v325_v56 = vsel %vm324_vm15, %v520_v51, %v321_v20  ;;  %531 = vpow2.f32 %v247_v63  ;;  %v299_v39 = vor.u32 1.1754944e-38, %v298_v22  ;;  %vm307_vm5 = vweird.f32 %v702_v47 }
  0xc6   :  { %389 = vst [vmem:[%s770_s3] sm:$0xff] %v385_v24  ;;  %v330_v27 = vsel %vm710_vm8, %v329_v60, %v325_v56  ;;  %v340_v31 = vsel %vm339_vm0, %v522_v53, %v336_v54  ;;  %v291_v37 = vadd.f32 %v526_v11, %v290_v32  ;;  %v305_v38 = vmul.f32 %v528_v19, %v304_v33  ;;  %vm309_vm6 = vmor %vm307_vm5, %vm308_vm2 }
  0xc7   :  { %v381_v34 = vmul.f32 %v330_v27, %v666_v62  ;;  %v345_v30 = vsel %vm719_vm11, %v344_v5, %v340_v31  ;;  %v314_v44 = vor.u32 1.1754944e-38, %v313_v35  ;;  %vm312_vm7 = vcmp.eq.f32.partialorder %v311_v29, 8.507059e+37 }
  0xc8   :  { %v382_v36 = vmul.f32 %v345_v30, %v668_v0  ;;  %v295_v41 = vsel %vm294_vm3, %v526_v11, %v291_v37  ;;  %v306_v62 = vadd.f32 %v528_v19, %v305_v38  ;;  %vm352_vm9 = vweird.f32 %v255_v23 }
  0xc9   :  { %v530_v42 = vpop.eup %529  ;;  %v300_v43 = vsel %vm297_vm4, %v299_v39, %v295_v41  ;;  %v356_v58 = vand.u32 2147483647, %v255_v23 }
  0xca   :  { %v387_v40 = vpack.c.bf16 %v382_v36, %v381_v34  ;;  %v379_v0 = vmul.f32 %v300_v43, %v671_v3  ;;  %v310_v45 = vsel %vm309_vm6, %v528_v19, %v306_v62  ;;  %v348_v46 = vmul.f32 %v530_v42, %v255_v23 }
  0xcb   :  { %v315_v48 = vsel %vm312_vm7, %v314_v44, %v310_v45  ;;  %v532_v49 = vpop.eup %531  ;;  %vm353_vm8 = vweird.f32 %v530_v42  ;;  %v358_v3 = vand.u32 2147483648, %v255_v23  ;;  %vm357_vm11 = vcmp.eq.f32.partialorder %v356_v58, 8.507059e+37 }
  0xcc   :  { %391 = vst [vmem:[%s770_s3 + $0x10] sm:$0xff] %v387_v40  ;;  %v380_v50 = vmul.f32 %v315_v48, %v674_v6  ;;  %v349_v51 = vsub.f32 1.0, %v348_v46  ;;  %v256_v47 = vadd.f32 1.0, %v532_v49  ;;  %vm354_vm10 = vmor %vm352_vm9, %vm353_vm8 }
  0xcd   :  { %v359_v6 = vor.u32 1.1754944e-38, %v358_v3 }
  0xce   :  { %v386_v52 = vpack.c.bf16 %v380_v50, %v379_v0  ;;  %533 = vrcp.f32 %v256_v47  ;;  %v350_v53 = vmul.f32 %v530_v42, %v349_v51  ;;  %v373_v63 = vand.u32 2147483648, %v256_v47 }
  0xcf   :  { %v371_v2 = vand.u32 2147483647, %v256_v47  ;;  %vm367_vm13 = vweird.f32 %v256_v47 }
  0xd0   :  { %390 = vst [vmem:[%s770_s3 + $0x8] sm:$0xff] %v386_v52  ;;  %v351_v55 = vadd.f32 %v530_v42, %v350_v53  ;;  %v374_v7 = vor.u32 1.1754944e-38, %v373_v63 }
  0xd1   :  { %vm372_vm15 = vcmp.eq.f32.partialorder %v371_v2, 8.507059e+37 }
  0xd2   :  { %v355_v60 = vsel %vm354_vm10, %v530_v42, %v351_v55 }
  0xd3   :  { %v360_v4 = vsel %vm357_vm11, %v359_v6, %v355_v60 }
  0xd4   :  { %v534_v57 = vpop.eup %533  ;;  %v383_v8 = vmul.f32 %v360_v4, %v678_v18 }
  0xd5   :  { %v363_v59 = vmul.f32 %v534_v57, %v256_v47  ;;  %vm368_vm12 = vweird.f32 %v534_v57 }
  0xd6   :  { %vm369_vm14 = vmor %vm367_vm13, %vm368_vm12 }
  0xd7   :  { %v364_v61 = vsub.f32 1.0, %v363_v59 }
  0xd9   :  { %v365_v1 = vmul.f32 %v534_v57, %v364_v61 }
  0xdb   :  { %v366_v5 = vadd.f32 %v534_v57, %v365_v1 }
  0xdd   :  { %v370_v9 = vsel %vm369_vm14, %v534_v57, %v366_v5 }
  0xde   :  { %v375_v10 = vsel %vm372_vm15, %v374_v7, %v370_v9 }
  0xdf   :  { %v384_v11 = vmul.f32 %v375_v10, %v683_v28 }
  0xe1   :  { %v388_v12 = vpack.c.bf16 %v384_v11, %v383_v8 }
  0xe3   :  { %392 = vst [vmem:[%s770_s3 + $0x18] sm:$0xff] %v388_v12 }

// kernel: visual_encoder_forward.66
= control target key start
LH: loop header
LB: loop body
LE: loop exit
PB: predicated region body
PF: predicated region fallthrough
CT: control target
= control target key end

     0   :  { %v219_v18 = vmov 128.0   ;;  %s300_s0 = inlined_call_operand.vmem [shape: bf16[32,128], index: 0, kind: input, shape index: {}]   ;;  %s301_s1 = inlined_call_operand.vmem [shape: bf16[32,128], index: 1, kind: input, shape index: {}]   ;;  %s302_s4 = inlined_call_operand.vmem [shape: bf16[32,128], index: 4, kind: output, shape index: {0}]   ;;  %s303_s2 = inlined_call_operand.vmem [shape: f32[1,128], index: 2, kind: input, shape index: {}]   ;;  %s304_s3 = inlined_call_operand.vmem [shape: f32[1,128], index: 3, kind: input, shape index: {}]   ;;  %s305_s5 = inlined_call_operand.vmem [shape: bf16[32,128], index: 5, kind: output, shape index: {1}]  }
   0x1   :  { %v202_v0 = vld [vmem:[%s300_s0 + $0x8] sm:$0xff]   ;;  %v167_v2 = vld [vmem:[%s300_s0] sm:$0xff]   ;;  %209 = vrcp.f32 %v219_v18 }
   0x2   :  { %v203_v1 = vld [vmem:[%s301_s1 + $0x8] sm:$0xff]   ;;  %v172_v3 = vunpack.c.l.bf16 %v202_v0  ;;  %v168_v5 = vunpack.c.l.bf16 %v167_v2  ;;  %v175_v6 = vld [vmem:[%s301_s1] sm:$0xff]   ;;  %v173_v7 = vunpack.c.h.bf16 %v202_v0  ;;  %v169_v10 = vunpack.c.h.bf16 %v167_v2 }
   0x3   :  { %v180_v4 = vunpack.c.l.bf16 %v203_v1  ;;  %v176_v8 = vunpack.c.l.bf16 %v175_v6  ;;  %v181_v9 = vunpack.c.h.bf16 %v203_v1  ;;  %v177_v11 = vunpack.c.h.bf16 %v175_v6 }
   0x5   :  { %v37_v12 = vadd.f32 %v180_v4, %v172_v3  ;;  %v35_v13 = vadd.f32 %v176_v8, %v168_v5  ;;  %v38_v14 = vadd.f32 %v181_v9, %v173_v7  ;;  %v36_v15 = vadd.f32 %v177_v11, %v169_v10 }
   0x7   :  { %43 = vadd.xlane.f32.xlu1 %v37_v12  ;;  %39 = vadd.xlane.f32.xlu0 %v35_v13  ;;  %v190_v16 = vpack.c.bf16 %v38_v14, %v37_v12  ;;  %v185_v17 = vpack.c.bf16 %v36_v15, %v35_v13  ;;  %v210_v19 = vpop.eup %209 }
   0x8   :  { %v48_v20 = vmul.f32 128.0, %v210_v19  ;;  %vm52_vm0 = vweird.f32 %v210_v19 }
   0x9   :  { %204 = vst [vmem:[%s302_s4 + $0x8] sm:$0xff] %v190_v16  }
   0xa   :  { %186 = vst [vmem:[%s302_s4] sm:$0xff] %v185_v17   ;;  %v49_v21 = vsub.f32 1.0, %v48_v20 }
   0xc   :  { %v50_v22 = vmul.f32 %v210_v19, %v49_v21 }
   0xe   :  { %v51_v23 = vadd.f32 %v210_v19, %v50_v22 }
   0xf   :  { %45 = vadd.xlane.f32.xlu1 %v38_v14  ;;  %41 = vadd.xlane.f32.xlu0 %v36_v15 }
  0x10   :  { %v53_v24 = vsel %vm52_vm0, %v210_v19, %v51_v23  ;;  %v208_v19 = vld [vmem:[%s304_s3] ss:$0 sm:$0xff] }
  0x7a   :  { %v44_v25 = vpop.xlane.xlu1 %43  ;;  %v40_v27 = vpop.xlane.xlu0 %39 }
  0x7b   :  { %v56_v26 = vmul.f32 %v53_v24, %v44_v25  ;;  %v54_v28 = vmul.f32 %v53_v24, %v40_v27 }
  0x7d   :  { %v268_v29 = vsub.f32 %v37_v12, %v56_v26  ;;  %v270_v30 = vsub.f32 %v35_v13, %v54_v28  ;;  %v207_v12 = vld [vmem:[%s303_s2] ss:$0 sm:$0xff] }
  0x7f   :  { %v64_v31 = vmul.f32 %v268_v29, %v268_v29  ;;  %v62_v32 = vmul.f32 %v270_v30, %v270_v30 }
  0x81   :  { %70 = vadd.xlane.f32.xlu0 %v64_v31  ;;  %66 = vadd.xlane.f32.xlu2 %v62_v32 }
  0x82   :  { %v46_v33 = vpop.xlane.xlu1 %45  ;;  %v42_v35 = vpop.xlane.xlu0 %41 }
  0x83   :  { %v57_v34 = vmul.f32 %v53_v24, %v46_v33  ;;  %v55_v36 = vmul.f32 %v53_v24, %v42_v35 }
  0x85   :  { %v276_v37 = vsub.f32 %v38_v14, %v57_v34  ;;  %v278_v38 = vsub.f32 %v36_v15, %v55_v36 }
  0x87   :  { %v65_v39 = vmul.f32 %v276_v37, %v276_v37  ;;  %v63_v40 = vmul.f32 %v278_v38, %v278_v38 }
  0x89   :  { %72 = vadd.xlane.f32.xlu1 %v65_v39  ;;  %68 = vadd.xlane.f32.xlu2 %v63_v40 }
  0xf4   :  { %v71_v41 = vpop.xlane.xlu0 %70  ;;  %v67_v42 = vpop.xlane.xlu2 %66 }
  0xf5   :  { %v76_v43 = vmul.f32 %v71_v41, %v53_v24  ;;  %v74_v44 = vmul.f32 %v67_v42, %v53_v24 }
  0xf7   :  { %v80_v45 = vadd.f32 1e-05, %v76_v43  ;;  %v78_v46 = vadd.f32 1e-05, %v74_v44 }
  0xf9   :  { %211 = vrsqrt.f32 %v80_v45  ;;  %vm108_vm3 = vweird.f32 %v80_v45  ;;  %vm88_vm4 = vweird.f32 %v78_v46 }
  0xfa   :  { %213 = vrsqrt.f32 %v78_v46 }
  0xfc   :  { %v73_v47 = vpop.xlane.xlu1 %72  ;;  %v69_v49 = vpop.xlane.xlu2 %68 }
  0xfd   :  { %v77_v48 = vmul.f32 %v73_v47, %v53_v24  ;;  %v75_v50 = vmul.f32 %v69_v49, %v53_v24 }
  0xff   :  { %v212_v51 = vpop.eup %211  ;;  %v81_v52 = vadd.f32 1e-05, %v77_v48  ;;  %v79_v55 = vadd.f32 1e-05, %v75_v50 }
 0x100   :  { %v214_v53 = vpop.eup %213  ;;  %v103_v54 = vmul.f32 %v212_v51, %v80_v45  ;;  %vm109_vm1 = vweird.f32 %v212_v51 }
 0x101   :  { %v83_v56 = vmul.f32 %v214_v53, %v78_v46  ;;  %215 = vrsqrt.f32 %v81_v52  ;;  %vm89_vm2 = vweird.f32 %v214_v53  ;;  %vm110_vm5 = vmor %vm108_vm3, %vm109_vm1  ;;  %vm118_vm9 = vweird.f32 %v81_v52 }
 0x102   :  { %v104_v57 = vmul.f32 %v212_v51, %v103_v54  ;;  %217 = vrsqrt.f32 %v79_v55  ;;  %vm90_vm6 = vmor %vm88_vm4, %vm89_vm2  ;;  %vm98_vm11 = vweird.f32 %v79_v55 }
 0x103   :  { %v84_v58 = vmul.f32 %v214_v53, %v83_v56 }
 0x104   :  { %v105_v59 = vmul.f32 0.5, %v104_v57 }
 0x105   :  { %v85_v60 = vmul.f32 0.5, %v84_v58 }
 0x106   :  { %v106_v61 = vsub.f32 1.5, %v105_v59 }
 0x107   :  { %v216_v62 = vpop.eup %215  ;;  %v86_v63 = vsub.f32 1.5, %v85_v60 }
 0x108   :  { %v218_v0 = vpop.eup %217  ;;  %v107_v1 = vmul.f32 %v212_v51, %v106_v61  ;;  %v113_v2 = vmul.f32 %v216_v62, %v81_v52  ;;  %vm119_vm7 = vweird.f32 %v216_v62 }
 0x109   :  { %v87_v3 = vmul.f32 %v214_v53, %v86_v63  ;;  %v93_v4 = vmul.f32 %v218_v0, %v79_v55  ;;  %vm99_vm8 = vweird.f32 %v218_v0  ;;  %vm120_vm10 = vmor %vm118_vm9, %vm119_vm7 }
 0x10a   :  { %v114_v5 = vmul.f32 %v216_v62, %v113_v2  ;;  %v111_v7 = vsel %vm110_vm5, %v212_v51, %v107_v1  ;;  %vm100_vm12 = vmor %vm98_vm11, %vm99_vm8 }
 0x10b   :  { %v94_v6 = vmul.f32 %v218_v0, %v93_v4  ;;  %v91_v9 = vsel %vm90_vm6, %v214_v53, %v87_v3  ;;  %v124_v13 = vmul.f32 %v111_v7, %v268_v29 }
 0x10c   :  { %v115_v8 = vmul.f32 0.5, %v114_v5  ;;  %v122_v15 = vmul.f32 %v91_v9, %v270_v30 }
 0x10d   :  { %v95_v10 = vmul.f32 0.5, %v94_v6  ;;  %v132_v20 = vmul.f32 %v207_v12, %v124_v13 }
 0x10e   :  { %v116_v11 = vsub.f32 1.5, %v115_v8  ;;  %v130_v23 = vmul.f32 %v207_v12, %v122_v15 }
 0x10f   :  { %v96_v14 = vsub.f32 1.5, %v95_v10  ;;  %v140_v27 = vadd.f32 %v208_v19, %v132_v20 }
 0x110   :  { %v117_v16 = vmul.f32 %v216_v62, %v116_v11  ;;  %v138_v29 = vadd.f32 %v208_v19, %v130_v23 }
 0x111   :  { %v97_v17 = vmul.f32 %v218_v0, %v96_v14 }
 0x112   :  { %v121_v18 = vsel %vm120_vm10, %v216_v62, %v117_v16 }
 0x113   :  { %v125_v21 = vmul.f32 %v121_v18, %v276_v37  ;;  %v101_v22 = vsel %vm100_vm12, %v218_v0, %v97_v17 }
 0x114   :  { %v123_v24 = vmul.f32 %v101_v22, %v278_v38 }
 0x115   :  { %v133_v25 = vmul.f32 %v207_v12, %v125_v21 }
 0x116   :  { %v131_v26 = vmul.f32 %v207_v12, %v123_v24 }
 0x117   :  { %v141_v28 = vadd.f32 %v208_v19, %v133_v25 }
 0x118   :  { %v139_v30 = vadd.f32 %v208_v19, %v131_v26 }
 0x119   :  { %v200_v31 = vpack.c.bf16 %v141_v28, %v140_v27 }
 0x11a   :  { %v195_v32 = vpack.c.bf16 %v139_v30, %v138_v29 }
 0x11b   :  { %205 = vst [vmem:[%s305_s5 + $0x8] sm:$0xff] %v200_v31  }
 0x11c   :  { %196 = vst [vmem:[%s305_s5] sm:$0xff] %v195_v32  }

// kernel: visual_encoder_forward.68
= control target key start
LH: loop header
LB: loop body
LE: loop exit
PB: predicated region body
PF: predicated region fallthrough
CT: control target
= control target key end

     0   :  { %s515_s1 = inlined_call_operand.vmem [shape: bf16[256,128], index: 1, kind: input, shape index: {}]   ;;  %s516_s0 = inlined_call_operand.vmem [shape: bf16[32,256], index: 0, kind: input, shape index: {}]   ;;  %s517_s2 = inlined_call_operand.vmem [shape: f32[1,128], index: 2, kind: input, shape index: {}]   ;;  %s518_s3 = inlined_call_operand.vmem [shape: bf16[32,128], index: 3, kind: input, shape index: {}]   ;;  %s519_s4 = inlined_call_operand.vmem [shape: bf16[32,128], index: 4, kind: output, shape index: {}]  }
   0x1   :  { %v357_v0 = vld [vmem:[%s515_s1 + $0x38] sm:$0xff]  ;;  %v356_v2 = vld [vmem:[%s515_s1 + $0x30] sm:$0xff]  ;;  %v355_v4 = vld [vmem:[%s515_s1 + $0x28] sm:$0xff] }
   0x2   :  { %v365_v1 = vld [vmem:[%s515_s1 + $0x78] sm:$0xff]  ;;  %181 = vmatpush.bf16.msra.mxu0 %v357_v0  ;;  %386 = vmatpush.bf16.msra.mxu2 %v357_v0  ;;  %v364_v3 = vld [vmem:[%s515_s1 + $0x70] sm:$0xff]  ;;  %v363_v5 = vld [vmem:[%s515_s1 + $0x68] sm:$0xff] }
   0x3   :  { %200 = vmatpush.bf16.msra.mxu1 %v365_v1  ;;  %394 = vmatpush.bf16.msra.mxu3 %v365_v1  ;;  %v354_v6 = vld [vmem:[%s515_s1 + $0x20] sm:$0xff]  ;;  %v353_v8 = vld [vmem:[%s515_s1 + $0x18] sm:$0xff]  ;;  %v352_v10 = vld [vmem:[%s515_s1 + $0x10] sm:$0xff] }
   0x4   :  { %v362_v7 = vld [vmem:[%s515_s1 + $0x60] sm:$0xff]  ;;  %v361_v9 = vld [vmem:[%s515_s1 + $0x58] sm:$0xff]  ;;  %v360_v11 = vld [vmem:[%s515_s1 + $0x50] sm:$0xff] }
   0x5   :  { %v351_v12 = vld [vmem:[%s515_s1 + $0x8] sm:$0xff]  ;;  %v350_v14 = vld [vmem:[%s515_s1] sm:$0xff]  ;;  %v276_v18 = vld [vmem:[%s516_s0 + $0x10] sm:$0xf] }
   0x6   :  { %182 = vmatpush.bf16.msra.mxu0 %v356_v2  ;;  %387 = vmatpush.bf16.msra.mxu2 %v356_v2  ;;  %v359_v13 = vld [vmem:[%s515_s1 + $0x48] sm:$0xff]  ;;  %v358_v15 = vld [vmem:[%s515_s1 + $0x40] sm:$0xff]  ;;  %v349_v19 = vld [vmem:[%s516_s0 + $0x14] sm:$0xf0] }
   0x7   :  { %201 = vmatpush.bf16.msra.mxu1 %v364_v3  ;;  %395 = vmatpush.bf16.msra.mxu3 %v364_v3  ;;  %v268_v16 = vld [vmem:[%s516_s0] sm:$0xf]  ;;  %v347_v17 = vld [vmem:[%s516_s0 + $0x4] sm:$0xf0]  ;;  %v346_v20 = vld [vmem:[%s516_s0 + $0x4] sm:$0xf]  ;;  %v277_v25 = vor.u32 %v349_v19, %v276_v18 }
   0x8   :  { %v270_v21 = vld [vmem:[%s516_s0 + $0x8] sm:$0xf0]  ;;  %v348_v22 = vld [vmem:[%s516_s0 + $0x14] sm:$0xf]  ;;  %v278_v23 = vld [vmem:[%s516_s0 + $0x18] sm:$0xf0]  ;;  %v269_v24 = vor.u32 %v347_v17, %v268_v16 }
   0x9   :  { %v273_v26 = vor.u32 %v346_v20, %v270_v21  ;;  %v281_v27 = vor.u32 %v348_v22, %v278_v23  ;;  %v402_v31 = vld [vmem:[%s517_s2] ss:$0 sm:$0xff]  ;;  %v384_v42 = vld [vmem:[%s518_s3 + $0x8] sm:$0xff]  }
   0xa   :  { %183 = vmatpush.bf16.msra.mxu0 %v355_v4  ;;  %388 = vmatpush.bf16.msra.mxu2 %v355_v4  ;;  %v367_v33 = vld [vmem:[%s518_s3] sm:$0xff]   ;;  %v372_v47 = vunpack.c.l.bf16 %v384_v42  ;;  %v373_v52 = vunpack.c.h.bf16 %v384_v42 }
   0xb   :  { %202 = vmatpush.bf16.msra.mxu1 %v363_v5  ;;  %396 = vmatpush.bf16.msra.mxu3 %v363_v5  ;;  %v368_v38 = vunpack.c.l.bf16 %v367_v33  ;;  %v369_v40 = vunpack.c.h.bf16 %v367_v33 }
   0xe   :  { %184 = vmatpush.bf16.msra.mxu0 %v354_v6  ;;  %389 = vmatpush.bf16.msra.mxu2 %v354_v6 }
   0xf   :  { %203 = vmatpush.bf16.msra.mxu1 %v362_v7  ;;  %397 = vmatpush.bf16.msra.mxu3 %v362_v7 }
  0x12   :  { %185 = vmatpush.bf16.msra.mxu0 %v353_v8  ;;  %390 = vmatpush.bf16.msra.mxu2 %v353_v8 }
  0x13   :  { %204 = vmatpush.bf16.msra.mxu1 %v361_v9  ;;  %398 = vmatpush.bf16.msra.mxu3 %v361_v9 }
  0x16   :  { %186 = vmatpush.bf16.msra.mxu0 %v352_v10  ;;  %391 = vmatpush.bf16.msra.mxu2 %v352_v10 }
  0x17   :  { %205 = vmatpush.bf16.msra.mxu1 %v360_v11  ;;  %399 = vmatpush.bf16.msra.mxu3 %v360_v11 }
  0x1a   :  { %187 = vmatpush.bf16.msra.mxu0 %v351_v12  ;;  %392 = vmatpush.bf16.msra.mxu2 %v351_v12 }
  0x1b   :  { %206 = vmatpush.bf16.msra.mxu1 %v359_v13  ;;  %400 = vmatpush.bf16.msra.mxu3 %v359_v13 }
  0x1e   :  { %188 = vmatpush.bf16.msra.mxu0 %v350_v14  ;;  %393 = vmatpush.bf16.msra.mxu2 %v350_v14 }
  0x1f   :  { %207 = vmatpush.bf16.msra.mxu1 %v358_v15  ;;  %401 = vmatpush.bf16.msra.mxu3 %v358_v15 }
  0x21   :  { %189 = vmatmul.bf16.vlgmr.msra.gmra.mxu0 %v269_v24  ;;  %194 = vmatmul.bf16.vlgmr.msra.gmra.mxu2 %v277_v25 }
  0x22   :  { %208 = vmatmul.bf16.vlgmr.msra.gmra.mxu1 %v273_v26  ;;  %213 = vmatmul.bf16.vlgmr.msra.gmra.mxu3 %v281_v27 }
  0x9e   :  { %v190_v28 = vpop.f32.mrf.mxu0 }
  0x9f   :  { %v209_v29 = vpop.f32.mrf.mxu1 }
  0xa0   :  { %v210_v30 = vadd.f32 %v209_v29, %v190_v28 }
  0xa2   :  { %v238_v37 = vadd.f32 %v402_v31, %v210_v30 }
  0xa4   :  { %v195_v32 = vpop.f32.mrf.mxu2  ;;  %v250_v44 = vadd.f32 %v368_v38, %v238_v37 }
  0xa5   :  { %v214_v34 = vpop.f32.mrf.mxu3 }
  0xa6   :  { %v192_v35 = vpop.f32.mrf.mxu0  ;;  %v215_v41 = vadd.f32 %v214_v34, %v195_v32 }
  0xa7   :  { %v211_v36 = vpop.f32.mrf.mxu1 }
  0xa8   :  { %v212_v39 = vadd.f32 %v211_v36, %v192_v35  ;;  %v240_v49 = vadd.f32 %v402_v31, %v215_v41 }
  0xaa   :  { %v239_v43 = vadd.f32 %v402_v31, %v212_v39  ;;  %v252_v54 = vadd.f32 %v372_v47, %v240_v49 }
  0xac   :  { %v251_v45 = vadd.f32 %v369_v40, %v239_v43  ;;  %v197_v46 = vpop.f32.mrf.mxu2 }
  0xad   :  { %v216_v48 = vpop.f32.mrf.mxu3 }
  0xae   :  { %v377_v50 = vpack.c.bf16 %v251_v45, %v250_v44  ;;  %v217_v51 = vadd.f32 %v216_v48, %v197_v46 }
  0xb0   :  { %378 = vst [vmem:[%s519_s4] sm:$0xff] %v377_v50   ;;  %v241_v53 = vadd.f32 %v402_v31, %v217_v51 }
  0xb2   :  { %v253_v55 = vadd.f32 %v373_v52, %v241_v53 }
  0xb4   :  { %v382_v56 = vpack.c.bf16 %v253_v55, %v252_v54 }
  0xb6   :  { %385 = vst [vmem:[%s519_s4 + $0x8] sm:$0xff] %v382_v56  }

// kernel: visual_encoder_forward.45
= control target key start
LH: loop header
LB: loop body
LE: loop exit
PB: predicated region body
PF: predicated region fallthrough
CT: control target
= control target key end

     0   :  { %v103_v3 = vmov 128.0   ;;  %s136_s0 = inlined_call_operand.vmem [shape: bf16[16,128], index: 0, kind: input, shape index: {}]   ;;  %s137_s1 = inlined_call_operand.vmem [shape: f32[1,128], index: 1, kind: input, shape index: {}]   ;;  %s138_s2 = inlined_call_operand.vmem [shape: f32[1,128], index: 2, kind: input, shape index: {}]   ;;  %s139_s3 = inlined_call_operand.vmem [shape: bf16[16,128], index: 3, kind: output, shape index: {}]  }
   0x1   :  { %v86_v0 = vld [vmem:[%s136_s0] sm:$0xff]   ;;  %97 = vrcp.f32 %v103_v3 }
   0x2   :  { %v87_v1 = vunpack.c.l.bf16 %v86_v0  ;;  %v88_v2 = vunpack.c.h.bf16 %v86_v0  ;;  %v95_v36 = vld [vmem:[%s137_s1] ss:$0 sm:$0xff] }
   0x3   :  { %v96_v40 = vld [vmem:[%s138_s2] ss:$0 sm:$0xff] }
   0x4   :  { %18 = vadd.xlane.f32.xlu0 %v87_v1 }
   0x7   :  { %v98_v4 = vpop.eup %97 }
   0x8   :  { %v23_v5 = vmul.f32 128.0, %v98_v4  ;;  %vm27_vm0 = vweird.f32 %v98_v4 }
   0xa   :  { %v24_v6 = vsub.f32 1.0, %v23_v5 }
   0xc   :  { %20 = vadd.xlane.f32.xlu0 %v88_v2  ;;  %v25_v7 = vmul.f32 %v98_v4, %v24_v6 }
   0xe   :  { %v26_v8 = vadd.f32 %v98_v4, %v25_v7 }
  0x10   :  { %v28_v9 = vsel %vm27_vm0, %v98_v4, %v26_v8 }
  0x77   :  { %v19_v10 = vpop.xlane.xlu0 %18 }
  0x78   :  { %v29_v11 = vmul.f32 %v28_v9, %v19_v10 }
  0x7a   :  { %v31_v12 = vsub.f32 %v87_v1, %v29_v11 }
  0x7c   :  { %v33_v13 = vmul.f32 %v31_v12, %v31_v12 }
  0x7e   :  { %35 = vadd.xlane.f32.xlu1 %v33_v13 }
  0x7f   :  { %v21_v14 = vpop.xlane.xlu0 %20 }
  0x80   :  { %v30_v15 = vmul.f32 %v28_v9, %v21_v14 }
  0x82   :  { %v32_v16 = vsub.f32 %v88_v2, %v30_v15 }
  0x84   :  { %v34_v17 = vmul.f32 %v32_v16, %v32_v16 }
  0x86   :  { %37 = vadd.xlane.f32.xlu1 %v34_v17 }
  0xf1   :  { %v36_v18 = vpop.xlane.xlu1 %35 }
  0xf2   :  { %v39_v19 = vmul.f32 %v36_v18, %v28_v9 }
  0xf4   :  { %v41_v20 = vadd.f32 1e-12, %v39_v19 }
  0xf6   :  { %99 = vrsqrt.f32 %v41_v20  ;;  %vm49_vm2 = vweird.f32 %v41_v20 }
  0xf9   :  { %v38_v21 = vpop.xlane.xlu1 %37 }
  0xfa   :  { %v40_v22 = vmul.f32 %v38_v21, %v28_v9 }
  0xfc   :  { %v100_v23 = vpop.eup %99  ;;  %v42_v24 = vadd.f32 1e-12, %v40_v22 }
  0xfd   :  { %v44_v25 = vmul.f32 %v100_v23, %v41_v20  ;;  %vm50_vm1 = vweird.f32 %v100_v23 }
  0xfe   :  { %101 = vrsqrt.f32 %v42_v24  ;;  %vm51_vm3 = vmor %vm49_vm2, %vm50_vm1  ;;  %vm59_vm5 = vweird.f32 %v42_v24 }
  0xff   :  { %v45_v26 = vmul.f32 %v100_v23, %v44_v25 }
 0x101   :  { %v46_v27 = vmul.f32 0.5, %v45_v26 }
 0x103   :  { %v47_v28 = vsub.f32 1.5, %v46_v27 }
 0x104   :  { %v102_v29 = vpop.eup %101 }
 0x105   :  { %v48_v30 = vmul.f32 %v100_v23, %v47_v28  ;;  %v54_v31 = vmul.f32 %v102_v29, %v42_v24  ;;  %vm60_vm4 = vweird.f32 %v102_v29 }
 0x106   :  { %vm61_vm6 = vmor %vm59_vm5, %vm60_vm4 }
 0x107   :  { %v55_v32 = vmul.f32 %v102_v29, %v54_v31  ;;  %v52_v33 = vsel %vm51_vm3, %v100_v23, %v48_v30 }
 0x108   :  { %v63_v37 = vmul.f32 %v52_v33, %v31_v12 }
 0x109   :  { %v56_v34 = vmul.f32 0.5, %v55_v32 }
 0x10a   :  { %v69_v41 = vmul.f32 %v95_v36, %v63_v37 }
 0x10b   :  { %v57_v35 = vsub.f32 1.5, %v56_v34 }
 0x10c   :  { %v75_v44 = vadd.f32 %v96_v40, %v69_v41 }
 0x10d   :  { %v58_v38 = vmul.f32 %v102_v29, %v57_v35 }
 0x10f   :  { %v62_v39 = vsel %vm61_vm6, %v102_v29, %v58_v38 }
 0x110   :  { %v64_v42 = vmul.f32 %v62_v39, %v32_v16 }
 0x112   :  { %v70_v43 = vmul.f32 %v95_v36, %v64_v42 }
 0x114   :  { %v76_v45 = vadd.f32 %v96_v40, %v70_v43 }
 0x116   :  { %v92_v46 = vpack.c.bf16 %v76_v45, %v75_v44 }
 0x118   :  { %93 = vst [vmem:[%s139_s3] sm:$0xff] %v92_v46  }

// kernel: visual_encoder_forward.46
= control target key start
LH: loop header
LB: loop body
LE: loop exit
PB: predicated region body
PF: predicated region fallthrough
CT: control target
= control target key end

     0   :  { %s594_s1 = inlined_call_operand.vmem [shape: bf16[128,384], index: 1, kind: input, shape index: {}]   ;;  %s595_s0 = inlined_call_operand.vmem [shape: bf16[16,128], index: 0, kind: input, shape index: {}]   ;;  %s596_s2 = inlined_call_operand.vmem [shape: f32[1,384], index: 2, kind: input, shape index: {}]   ;;  %s597_s3 = inlined_call_operand.vmem [shape: bf16[16,384], index: 3, kind: output, shape index: {}]  }
   0x1   :  { %v377_v0 = vld [vmem:[%s594_s1 + $0xa8] sm:$0xf]  ;;  %v410_v1 = vld [vmem:[%s594_s1 + $0xb0] sm:$0xf0]  ;;  %v409_v2 = vld [vmem:[%s594_s1 + $0xac] sm:$0xf] }
   0x2   :  { %v378_v3 = vor.u32 %v410_v1, %v377_v0  ;;  %v379_v4 = vld [vmem:[%s594_s1 + $0xb4] sm:$0xf0]  ;;  %v385_v5 = vld [vmem:[%s594_s1 + $0xb0] sm:$0xf]  ;;  %v411_v6 = vld [vmem:[%s594_s1 + $0xb8] sm:$0xf0] }
   0x3   :  { %v382_v7 = vor.u32 %v409_v2, %v379_v4  ;;  %v386_v8 = vor.u32 %v411_v6, %v385_v5  ;;  %v365_v9 = vld [vmem:[%s594_s1 + $0x90] sm:$0xf]  ;;  %v407_v10 = vld [vmem:[%s594_s1 + $0x98] sm:$0xf0]  ;;  %v406_v11 = vld [vmem:[%s594_s1 + $0x94] sm:$0xf] }
   0x4   :  { %198 = vmatpush.bf16.msra.mxu0 %v378_v3  ;;  %v366_v12 = vor.u32 %v407_v10, %v365_v9  ;;  %v367_v13 = vld [vmem:[%s594_s1 + $0x9c] sm:$0xf0]  ;;  %v373_v14 = vld [vmem:[%s594_s1 + $0x98] sm:$0xf]  ;;  %v408_v15 = vld [vmem:[%s594_s1 + $0xa0] sm:$0xf0] }
   0x5   :  { %212 = vmatpush.bf16.msra.mxu1 %v382_v7  ;;  %226 = vmatpush.bf16.msra.mxu2 %v386_v8  ;;  %v370_v16 = vor.u32 %v406_v11, %v367_v13  ;;  %v374_v17 = vor.u32 %v408_v15, %v373_v14  ;;  %v353_v18 = vld [vmem:[%s594_s1 + $0x78] sm:$0xf]  ;;  %v404_v19 = vld [vmem:[%s594_s1 + $0x80] sm:$0xf0]  ;;  %v403_v20 = vld [vmem:[%s594_s1 + $0x7c] sm:$0xf] }
   0x6   :  { %v355_v21 = vld [vmem:[%s594_s1 + $0x84] sm:$0xf0]  ;;  %v361_v22 = vld [vmem:[%s594_s1 + $0x80] sm:$0xf]  ;;  %v405_v23 = vld [vmem:[%s594_s1 + $0x88] sm:$0xf0]  ;;  %v354_v24 = vor.u32 %v404_v19, %v353_v18 }
   0x7   :  { %v358_v25 = vor.u32 %v403_v20, %v355_v21  ;;  %v362_v26 = vor.u32 %v405_v23, %v361_v22  ;;  %v341_v27 = vld [vmem:[%s594_s1 + $0x60] sm:$0xf]  ;;  %v401_v28 = vld [vmem:[%s594_s1 + $0x68] sm:$0xf0]  ;;  %v400_v29 = vld [vmem:[%s594_s1 + $0x64] sm:$0xf] }
   0x8   :  { %199 = vmatpush.bf16.msra.mxu0 %v366_v12  ;;  %v343_v30 = vld [vmem:[%s594_s1 + $0x6c] sm:$0xf0]  ;;  %v349_v31 = vld [vmem:[%s594_s1 + $0x68] sm:$0xf]  ;;  %v402_v32 = vld [vmem:[%s594_s1 + $0x70] sm:$0xf0]  ;;  %v342_v33 = vor.u32 %v401_v28, %v341_v27 }
   0x9   :  { %213 = vmatpush.bf16.msra.mxu1 %v370_v16  ;;  %227 = vmatpush.bf16.msra.mxu2 %v374_v17  ;;  %v346_v34 = vor.u32 %v400_v29, %v343_v30  ;;  %v350_v35 = vor.u32 %v402_v32, %v349_v31  ;;  %v329_v36 = vld [vmem:[%s594_s1 + $0x48] sm:$0xf]  ;;  %v398_v37 = vld [vmem:[%s594_s1 + $0x50] sm:$0xf0]  ;;  %v397_v38 = vld [vmem:[%s594_s1 + $0x4c] sm:$0xf] }
   0xa   :  { %v331_v39 = vld [vmem:[%s594_s1 + $0x54] sm:$0xf0]  ;;  %v337_v40 = vld [vmem:[%s594_s1 + $0x50] sm:$0xf]  ;;  %v399_v41 = vld [vmem:[%s594_s1 + $0x58] sm:$0xf0]  ;;  %v330_v42 = vor.u32 %v398_v37, %v329_v36 }
   0xb   :  { %v334_v43 = vor.u32 %v397_v38, %v331_v39  ;;  %v338_v44 = vor.u32 %v399_v41, %v337_v40  ;;  %v317_v45 = vld [vmem:[%s594_s1 + $0x30] sm:$0xf]  ;;  %v395_v46 = vld [vmem:[%s594_s1 + $0x38] sm:$0xf0]  ;;  %v394_v47 = vld [vmem:[%s594_s1 + $0x34] sm:$0xf] }
   0xc   :  { %200 = vmatpush.bf16.msra.mxu0 %v354_v24  ;;  %v319_v48 = vld [vmem:[%s594_s1 + $0x3c] sm:$0xf0]  ;;  %v325_v49 = vld [vmem:[%s594_s1 + $0x38] sm:$0xf]  ;;  %v396_v50 = vld [vmem:[%s594_s1 + $0x40] sm:$0xf0]  ;;  %v318_v51 = vor.u32 %v395_v46, %v317_v45 }
   0xd   :  { %214 = vmatpush.bf16.msra.mxu1 %v358_v25  ;;  %228 = vmatpush.bf16.msra.mxu2 %v362_v26  ;;  %v322_v52 = vor.u32 %v394_v47, %v319_v48  ;;  %v326_v53 = vor.u32 %v396_v50, %v325_v49  ;;  %v305_v54 = vld [vmem:[%s594_s1 + $0x18] sm:$0xf]  ;;  %v392_v55 = vld [vmem:[%s594_s1 + $0x20] sm:$0xf0]  ;;  %v391_v56 = vld [vmem:[%s594_s1 + $0x1c] sm:$0xf] }
   0xe   :  { %v307_v57 = vld [vmem:[%s594_s1 + $0x24] sm:$0xf0]  ;;  %v313_v58 = vld [vmem:[%s594_s1 + $0x20] sm:$0xf]  ;;  %v393_v59 = vld [vmem:[%s594_s1 + $0x28] sm:$0xf0]  ;;  %v306_v60 = vor.u32 %v392_v55, %v305_v54 }
   0xf   :  { %v310_v61 = vor.u32 %v391_v56, %v307_v57  ;;  %v314_v62 = vor.u32 %v393_v59, %v313_v58  ;;  %v293_v63 = vld [vmem:[%s594_s1] sm:$0xf]  ;;  %v389_v0 = vld [vmem:[%s594_s1 + $0x8] sm:$0xf0]  ;;  %v388_v1 = vld [vmem:[%s594_s1 + $0x4] sm:$0xf] }
  0x10   :  { %201 = vmatpush.bf16.msra.mxu0 %v342_v33  ;;  %v295_v2 = vld [vmem:[%s594_s1 + $0xc] sm:$0xf0]  ;;  %v301_v3 = vld [vmem:[%s594_s1 + $0x8] sm:$0xf]  ;;  %v390_v4 = vld [vmem:[%s594_s1 + $0x10] sm:$0xf0]  ;;  %v294_v5 = vor.u32 %v389_v0, %v293_v63 }
  0x11   :  { %215 = vmatpush.bf16.msra.mxu1 %v346_v34  ;;  %229 = vmatpush.bf16.msra.mxu2 %v350_v35  ;;  %v298_v6 = vor.u32 %v388_v1, %v295_v2  ;;  %v302_v7 = vor.u32 %v390_v4, %v301_v3  ;;  %v387_v8 = vld [vmem:[%s595_s0] sm:$0xff] }
  0x12   :  { %v261_v9 = vld [vmem:[%s596_s2] sm:$0x7] }
  0x13   :  { %v263_v10 = vperm.slane %v261_v9, 0  ;;  %v264_v11 = vperm.slane %v261_v9, 1  ;;  %v265_v17 = vperm.slane %v261_v9, 2 }
  0x14   :  { %202 = vmatpush.bf16.msra.mxu0 %v330_v42 }
  0x15   :  { %216 = vmatpush.bf16.msra.mxu1 %v334_v43  ;;  %230 = vmatpush.bf16.msra.mxu2 %v338_v44 }
  0x18   :  { %203 = vmatpush.bf16.msra.mxu0 %v318_v51 }
  0x19   :  { %217 = vmatpush.bf16.msra.mxu1 %v322_v52  ;;  %231 = vmatpush.bf16.msra.mxu2 %v326_v53 }
  0x1c   :  { %204 = vmatpush.bf16.msra.mxu0 %v306_v60 }
  0x1d   :  { %218 = vmatpush.bf16.msra.mxu1 %v310_v61  ;;  %232 = vmatpush.bf16.msra.mxu2 %v314_v62 }
  0x20   :  { %205 = vmatpush.bf16.msra.mxu0 %v294_v5 }
  0x21   :  { %219 = vmatpush.bf16.msra.mxu1 %v298_v6  ;;  %233 = vmatpush.bf16.msra.mxu2 %v302_v7 }
  0x23   :  { %206 = vmatmul.bf16.vlgmr.msra.gmra.mxu0 %v387_v8 }
  0x24   :  { %220 = vmatmul.bf16.vlgmr.msra.gmra.mxu1 %v387_v8  ;;  %234 = vmatmul.bf16.vlgmr.msra.gmra.mxu2 %v387_v8 }
  0xa0   :  { %v207_v12 = vpop.f32.mrf.mxu0 }
  0xa1   :  { %v269_v13 = vadd.f32 %v263_v10, %v207_v12  ;;  %v221_v14 = vpop.f32.mrf.mxu1 }
  0xa2   :  { %v270_v15 = vadd.f32 %v264_v11, %v221_v14 }
  0xa4   :  { %v275_v16 = vpack.c.bf16 %v270_v15, %v269_v13 }
  0xa6   :  { %279 = vst [vmem:[%s597_s3] sm:$0xff] %v275_v16 }
  0xa7   :  { %v235_v18 = vpop.f32.mrf.mxu2 }
  0xa8   :  { %v271_v19 = vadd.f32 %v265_v17, %v235_v18  ;;  %v209_v20 = vpop.f32.mrf.mxu0 }
  0xa9   :  { %v272_v21 = vadd.f32 %v263_v10, %v209_v20  ;;  %v223_v22 = vpop.f32.mrf.mxu1 }
  0xaa   :  { %v276_v23 = vpack.c.bf16 %v271_v19, %v271_v19  ;;  %v273_v24 = vadd.f32 %v264_v11, %v223_v22 }
  0xac   :  { %280 = vst [vmem:[%s597_s3 + $0x8] sm:$0xf] %v276_v23  ;;  %v277_v25 = vpack.c.bf16 %v273_v24, %v272_v21 }
  0xae   :  { %281 = vst [vmem:[%s597_s3 + $0xc] sm:$0xff] %v277_v25 }
  0xaf   :  { %v237_v26 = vpop.f32.mrf.mxu2 }
  0xb0   :  { %v274_v27 = vadd.f32 %v265_v17, %v237_v26 }
  0xb2   :  { %v278_v28 = vpack.c.bf16 %v274_v27, %v274_v27 }
  0xb4   :  { %282 = vst [vmem:[%s597_s3 + $0x14] sm:$0xf] %v278_v28 }

// kernel: visual_encoder_forward.47
= control target key start
LH: loop header
LB: loop body
LE: loop exit
PB: predicated region body
PF: predicated region fallthrough
CT: control target
= control target key end

     0   :  { %s627_s15 = smov 0   ;;  %s629_s16 = smov 0   ;;  %s696_s0 = inlined_call_operand.vmem [shape: bf16[2,4,8,32], index: 0, kind: input, shape index: {}]   ;;  %s697_s1 = inlined_call_operand.vmem [shape: bf16[2,4,8,32], index: 1, kind: input, shape index: {}]   ;;  %s698_s2 = inlined_call_operand.vmem [shape: bf16[2,4,8,32], index: 2, kind: input, shape index: {}]   ;;  %s699_s3 = inlined_call_operand.vmem [shape: f32[2,1,8], index: 3, kind: input, shape index: {}]   ;;  %s700_s4 = inlined_call_operand.vmem [shape: bf16[2,4,8,32], index: 4, kind: output, shape index: {}]  }
   0x1   :  { %s631_s17 = smov 0   ;;  %s633_s18 = smov 0  }
   0x2   :  { %s635_s19 = smov 0  }
   0x3 LB: > { %s23_s20 = sadd.s32 1, %s592_s17  ;;  %s26_s21 = sadd.s32 1, %s596_s18  ;;  %s600_s19 = sphi %s635_s19, %s14_s19   ;;  %s596_s18 = sphi %s633_s18, %s704_s18   ;;  %s592_s17 = sphi %s631_s17, %s703_s17   ;;  %s588_s16 = sphi %s629_s16, %s702_s16   ;;  %s584_s15 = sphi %s627_s15, %s701_s15  }
   0x4   : > { %p24_p0 = scmp.ge.s32.totalorder %s23_s20, 4  ;;  %p504_p1 = scmp.ge.s32.totalorder %s600_s19, 1 }
   0x5   : > { %p219_p2 = scmp.lt.s32.totalorder %s600_s19, 9 }
   0x6   : > { %s706_s20 = smov (%p24_p0, %s23_s20), 0  ;;  %s708_s21 = smov (!%p24_p0, %s26_s21), %s596_s18 }
   0x7   : > { %p220_p3 = pnand %p504_p1, %p219_p2  ;;  %p28_p4 = scmp.ge.s32.totalorder %s708_s21, 2 }
   0x8   : > { %p270_p5 = scmp.lt.s32.totalorder (!%p220_p3), %s588_s16, 1  ;;  %p272_p6 = scmp.lt.s32.totalorder (!%p220_p3), %s584_s15, 3 }
   0x9   : > { %s710_s21 = smov (%p28_p4, %s708_s21), 0  ;;  %223 = sbr.rel (%p220_p3) target bundleno = 546 (0x222), region = 36 }
   0xe   : > { %s712_s16 = smov (!%p270_p5, %s588_s16), 1  ;;  %s714_s15 = smov (!%p272_p6, %s584_s15), 3  ;;  %vm312_vm0 = vcmask 261120   ;;  %vm332_vm1 = vcmask 64512   ;;  %vm349_vm2 = vcmask 1043456   ;;  %vm367_vm3 = vcmask 257024  }
   0xf   : > { %s505_s22 = sshll.u32 %s712_s16, 2  ;;  %s296_s25 = scalar_lea.vmem %s699_s3, %s712_s16 }
  0x10   : > { %s275_s26 = sadd.s32 %s505_s22, %s714_s15  ;;  %v557_v3 = vld [vmem:[%s296_s25] ss:$0 sm:$0xff] }
  0x11   : > { %s660_s27 = sshll.u32 %s275_s26, 2 }
  0x12   : > { %s285_s30 = scalar_lea.vmem %s697_s1, %s660_s27  ;;  %s277_s7 = scalar_lea.vmem %s696_s0, %s660_s27 }
  0x13   : > { %v307_v0 = vld [vmem:[%s285_s30] sm:$0xf]  ;;  %s293_s10 = scalar_lea.vmem %s698_s2, %s660_s27  ;;  %s304_s13 = scalar_lea.vmem %s700_s4, %s660_s27 }
  0x14   : > { %v317_v1 = vsel %vm312_vm0, %v307_v0, 0  ;;  %v306_v2 = vld [vmem:[%s277_s7] sm:$0xf] }
  0x15   : > { %326 = vmatpush.bf16.xpose.msra.mxu0 %v317_v1  ;;  %v345_v13 = vld [vmem:[%s293_s10] sm:$0xf] }
  0x16   : > { %v351_v14 = vsel %vm349_vm2, %v345_v13, 0 }
  0x17   : > { %360 = vmatpush.bf16.msra.mxu1 %v351_v14 }
  0x1c   : > { %513 = vmatmul.msk.bf16.vlgmr.msra.gmra.mxu0 %vm312_vm0, %v306_v2 }
  0x99   : > { %v328_v4 = vpop.f32.mrf.mxu0 }
  0x9a   : > { %v329_v5 = vadd.f32 %v557_v3, %v328_v4 }
  0x9c   : > { %v333_v6 = vsel %vm332_vm1, %v329_v5, -inf }
  0x9d   : > { %334 = vmax.xlane.f32.xlu0 %v333_v6 }
  0xa1   : > { %v330_v7 = vpop.f32.mrf.mxu0 }
 0x110   : > { %v335_v8 = vpop.xlane.xlu0 %334 }
 0x111   : > { %v336_v9 = vsub.f32 %v329_v5, %v335_v8 }
 0x113   : > { %v337_v10 = vmul.f32 1.442695, %v336_v9 }
 0x115   : > { %558 = vpow2.f32 %v337_v10 }
 0x11b   : > { %v559_v11 = vpop.eup %558 }
 0x11c   : > { %v339_v12 = vsel %vm332_vm1, %v559_v11, 0.0 }
 0x11d   : > { %340 = vadd.xlane.f32.xlu0 %v339_v12 }
 0x190   : > { %v341_v15 = vpop.xlane.xlu0 %340 }
 0x191   : > { %560 = vrcp.f32 %v341_v15 }
 0x197   : > { %v561_v16 = vpop.eup %560 }
 0x198   : > { %v343_v17 = vmul.f32 %v561_v16, %v559_v11 }
 0x19a   : > { %v344_v18 = vpack.c.bf16 %v343_v17, %v343_v17 }
 0x19c   : > { %514 = vmatmul.msk.bf16.vlgmr.msra.gmra.mxu1 %vm332_vm1, %v344_v18 }
 0x219   : > { %v362_v19 = vpop.f32.mrf.mxu1 }
 0x21a   : > { %v366_v20 = vpack.c.bf16 %v362_v19, %v362_v19 }
 0x21c   : > { %368 = vst.msk [vmem:[%s304_s13] sm:$0xf] %vm367_vm3, %v366_v20 }
 0x221   : > { %v364_v21 = vpop.f32.mrf.mxu1 }
 0x222 PF: > { %s14_s19 = sadd.s32 1, %s600_s19   ;;  %s701_s15 = smov %s592_s17 }
 0x223   : > { %p11_p7 = scmp.ge.s32.totalorder %s14_s19, 10   ;;  %s702_s16 = smov %s596_s18 }
 0x224   : > { %s703_s17 = smov %s706_s20  ;;  %s704_s18 = smov %s710_s21 }
 0x225   :  { %13 = sbr.rel (!%p11_p7) target bundleno = 3 (0x3), region = 75 }

// kernel: visual_encoder_forward.49
= control target key start
LH: loop header
LB: loop body
LE: loop exit
PB: predicated region body
PF: predicated region fallthrough
CT: control target
= control target key end

     0   :  { %v116_v8 = vmov 128.0   ;;  %s157_s0 = inlined_call_operand.vmem [shape: bf16[16,128], index: 0, kind: input, shape index: {}]   ;;  %s158_s1 = inlined_call_operand.vmem [shape: bf16[16,128], index: 1, kind: input, shape index: {}]   ;;  %s159_s2 = inlined_call_operand.vmem [shape: f32[1,128], index: 2, kind: input, shape index: {}]   ;;  %s160_s3 = inlined_call_operand.vmem [shape: f32[1,128], index: 3, kind: input, shape index: {}]   ;;  %s161_s4 = inlined_call_operand.vmem [shape: bf16[16,128], index: 4, kind: output, shape index: {}]  }
   0x1   :  { %v95_v0 = vld [vmem:[%s157_s0] sm:$0xff]   ;;  %110 = vrcp.f32 %v116_v8 }
   0x2   :  { %v99_v1 = vld [vmem:[%s158_s1] sm:$0xff]   ;;  %v96_v2 = vunpack.c.l.bf16 %v95_v0  ;;  %v97_v5 = vunpack.c.h.bf16 %v95_v0 }
   0x3   :  { %v100_v3 = vunpack.c.l.bf16 %v99_v1  ;;  %v101_v6 = vunpack.c.h.bf16 %v99_v1  ;;  %v108_v41 = vld [vmem:[%s159_s2] ss:$0 sm:$0xff] }
   0x4   :  { %v109_v45 = vld [vmem:[%s160_s3] ss:$0 sm:$0xff] }
   0x5   :  { %v25_v4 = vadd.f32 %v100_v3, %v96_v2  ;;  %v26_v7 = vadd.f32 %v101_v6, %v97_v5 }
   0x7   :  { %27 = vadd.xlane.f32.xlu0 %v25_v4  ;;  %v111_v9 = vpop.eup %110 }
   0x8   :  { %v32_v10 = vmul.f32 128.0, %v111_v9  ;;  %vm36_vm0 = vweird.f32 %v111_v9 }
   0xa   :  { %v33_v11 = vsub.f32 1.0, %v32_v10 }
   0xc   :  { %v34_v12 = vmul.f32 %v111_v9, %v33_v11 }
   0xe   :  { %v35_v13 = vadd.f32 %v111_v9, %v34_v12 }
   0xf   :  { %29 = vadd.xlane.f32.xlu0 %v26_v7 }
  0x10   :  { %v37_v14 = vsel %vm36_vm0, %v111_v9, %v35_v13 }
  0x7a   :  { %v28_v15 = vpop.xlane.xlu0 %27 }
  0x7b   :  { %v38_v16 = vmul.f32 %v37_v14, %v28_v15 }
  0x7d   :  { %v40_v17 = vsub.f32 %v25_v4, %v38_v16 }
  0x7f   :  { %v42_v18 = vmul.f32 %v40_v17, %v40_v17 }
  0x81   :  { %44 = vadd.xlane.f32.xlu1 %v42_v18 }
  0x82   :  { %v30_v19 = vpop.xlane.xlu0 %29 }
  0x83   :  { %v39_v20 = vmul.f32 %v37_v14, %v30_v19 }
  0x85   :  { %v41_v21 = vsub.f32 %v26_v7, %v39_v20 }
  0x87   :  { %v43_v22 = vmul.f32 %v41_v21, %v41_v21 }
  0x89   :  { %46 = vadd.xlane.f32.xlu1 %v43_v22 }
  0xf4   :  { %v45_v23 = vpop.xlane.xlu1 %44 }
  0xf5   :  { %v48_v24 = vmul.f32 %v45_v23, %v37_v14 }
  0xf7   :  { %v50_v25 = vadd.f32 1e-12, %v48_v24 }
  0xf9   :  { %112 = vrsqrt.f32 %v50_v25  ;;  %vm58_vm2 = vweird.f32 %v50_v25 }
  0xfc   :  { %v47_v26 = vpop.xlane.xlu1 %46 }
  0xfd   :  { %v49_v27 = vmul.f32 %v47_v26, %v37_v14 }
  0xff   :  { %v113_v28 = vpop.eup %112  ;;  %v51_v29 = vadd.f32 1e-12, %v49_v27 }
 0x100   :  { %v53_v30 = vmul.f32 %v113_v28, %v50_v25  ;;  %vm59_vm1 = vweird.f32 %v113_v28 }
 0x101   :  { %114 = vrsqrt.f32 %v51_v29  ;;  %vm60_vm3 = vmor %vm58_vm2, %vm59_vm1  ;;  %vm68_vm5 = vweird.f32 %v51_v29 }
 0x102   :  { %v54_v31 = vmul.f32 %v113_v28, %v53_v30 }
 0x104   :  { %v55_v32 = vmul.f32 0.5, %v54_v31 }
 0x106   :  { %v56_v33 = vsub.f32 1.5, %v55_v32 }
 0x107   :  { %v115_v34 = vpop.eup %114 }
 0x108   :  { %v57_v35 = vmul.f32 %v113_v28, %v56_v33  ;;  %v63_v36 = vmul.f32 %v115_v34, %v51_v29  ;;  %vm69_vm4 = vweird.f32 %v115_v34 }
 0x109   :  { %vm70_vm6 = vmor %vm68_vm5, %vm69_vm4 }
 0x10a   :  { %v64_v37 = vmul.f32 %v115_v34, %v63_v36  ;;  %v61_v38 = vsel %vm60_vm3, %v113_v28, %v57_v35 }
 0x10b   :  { %v72_v42 = vmul.f32 %v61_v38, %v40_v17 }
 0x10c   :  { %v65_v39 = vmul.f32 0.5, %v64_v37 }
 0x10d   :  { %v78_v46 = vmul.f32 %v108_v41, %v72_v42 }
 0x10e   :  { %v66_v40 = vsub.f32 1.5, %v65_v39 }
 0x10f   :  { %v84_v49 = vadd.f32 %v109_v45, %v78_v46 }
 0x110   :  { %v67_v43 = vmul.f32 %v115_v34, %v66_v40 }
 0x112   :  { %v71_v44 = vsel %vm70_vm6, %v115_v34, %v67_v43 }
 0x113   :  { %v73_v47 = vmul.f32 %v71_v44, %v41_v21 }
 0x115   :  { %v79_v48 = vmul.f32 %v108_v41, %v73_v47 }
 0x117   :  { %v85_v50 = vadd.f32 %v109_v45, %v79_v48 }
 0x119   :  { %v105_v51 = vpack.c.bf16 %v85_v50, %v84_v49 }
 0x11b   :  { %106 = vst [vmem:[%s161_s4] sm:$0xff] %v105_v51  }

// kernel: visual_encoder_forward.50
= control target key start
LH: loop header
LB: loop body
LE: loop exit
PB: predicated region body
PF: predicated region fallthrough
CT: control target
= control target key end

     0   :  { %s448_s1 = inlined_call_operand.vmem [shape: bf16[128,256], index: 1, kind: input, shape index: {}]   ;;  %s449_s0 = inlined_call_operand.vmem [shape: bf16[16,128], index: 0, kind: input, shape index: {}]   ;;  %s450_s2 = inlined_call_operand.vmem [shape: f32[1,256], index: 2, kind: input, shape index: {}]   ;;  %s451_s3 = inlined_call_operand.vmem [shape: bf16[16,256], index: 3, kind: output, shape index: {}]  }
   0x1   :  { %v289_v0 = vld [vmem:[%s448_s1 + $0x70] sm:$0xf]  ;;  %v311_v1 = vld [vmem:[%s448_s1 + $0x74] sm:$0xf0]  ;;  %v310_v2 = vld [vmem:[%s448_s1 + $0x74] sm:$0xf] }
   0x2   :  { %v290_v3 = vor.u32 %v311_v1, %v289_v0  ;;  %v291_v4 = vld [vmem:[%s448_s1 + $0x78] sm:$0xf0]  ;;  %v281_v5 = vld [vmem:[%s448_s1 + $0x60] sm:$0xf]  ;;  %v309_v6 = vld [vmem:[%s448_s1 + $0x64] sm:$0xf0] }
   0x3   :  { %v294_v7 = vor.u32 %v310_v2, %v291_v4  ;;  %v308_v8 = vld [vmem:[%s448_s1 + $0x64] sm:$0xf]  ;;  %v283_v9 = vld [vmem:[%s448_s1 + $0x68] sm:$0xf0]  ;;  %v282_v10 = vor.u32 %v309_v6, %v281_v5  ;;  %v273_v12 = vld [vmem:[%s448_s1 + $0x50] sm:$0xf] }
   0x4   :  { %130 = vmatpush.bf16.msra.mxu0 %v290_v3  ;;  %v286_v11 = vor.u32 %v308_v8, %v283_v9  ;;  %v307_v13 = vld [vmem:[%s448_s1 + $0x54] sm:$0xf0]  ;;  %v306_v14 = vld [vmem:[%s448_s1 + $0x54] sm:$0xf]  ;;  %v275_v15 = vld [vmem:[%s448_s1 + $0x58] sm:$0xf0] }
   0x5   :  { %144 = vmatpush.bf16.msra.mxu1 %v294_v7  ;;  %v274_v16 = vor.u32 %v307_v13, %v273_v12  ;;  %v278_v17 = vor.u32 %v306_v14, %v275_v15  ;;  %v265_v18 = vld [vmem:[%s448_s1 + $0x40] sm:$0xf]  ;;  %v305_v19 = vld [vmem:[%s448_s1 + $0x44] sm:$0xf0]  ;;  %v304_v20 = vld [vmem:[%s448_s1 + $0x44] sm:$0xf] }
   0x6   :  { %v267_v21 = vld [vmem:[%s448_s1 + $0x48] sm:$0xf0]  ;;  %v266_v22 = vor.u32 %v305_v19, %v265_v18  ;;  %v257_v24 = vld [vmem:[%s448_s1 + $0x30] sm:$0xf]  ;;  %v303_v25 = vld [vmem:[%s448_s1 + $0x34] sm:$0xf0] }
   0x7   :  { %v270_v23 = vor.u32 %v304_v20, %v267_v21  ;;  %v302_v26 = vld [vmem:[%s448_s1 + $0x34] sm:$0xf]  ;;  %v259_v27 = vld [vmem:[%s448_s1 + $0x38] sm:$0xf0]  ;;  %v258_v28 = vor.u32 %v303_v25, %v257_v24  ;;  %v249_v30 = vld [vmem:[%s448_s1 + $0x20] sm:$0xf] }
   0x8   :  { %131 = vmatpush.bf16.msra.mxu0 %v282_v10  ;;  %v262_v29 = vor.u32 %v302_v26, %v259_v27  ;;  %v301_v31 = vld [vmem:[%s448_s1 + $0x24] sm:$0xf0]  ;;  %v300_v32 = vld [vmem:[%s448_s1 + $0x24] sm:$0xf]  ;;  %v251_v33 = vld [vmem:[%s448_s1 + $0x28] sm:$0xf0] }
   0x9   :  { %145 = vmatpush.bf16.msra.mxu1 %v286_v11  ;;  %v250_v34 = vor.u32 %v301_v31, %v249_v30  ;;  %v254_v35 = vor.u32 %v300_v32, %v251_v33  ;;  %v241_v36 = vld [vmem:[%s448_s1 + $0x10] sm:$0xf]  ;;  %v299_v37 = vld [vmem:[%s448_s1 + $0x14] sm:$0xf0]  ;;  %v298_v38 = vld [vmem:[%s448_s1 + $0x14] sm:$0xf] }
   0xa   :  { %v243_v39 = vld [vmem:[%s448_s1 + $0x18] sm:$0xf0]  ;;  %v242_v40 = vor.u32 %v299_v37, %v241_v36  ;;  %v233_v42 = vld [vmem:[%s448_s1] sm:$0xf]  ;;  %v297_v43 = vld [vmem:[%s448_s1 + $0x4] sm:$0xf0] }
   0xb   :  { %v246_v41 = vor.u32 %v298_v38, %v243_v39  ;;  %v296_v44 = vld [vmem:[%s448_s1 + $0x4] sm:$0xf]  ;;  %v235_v45 = vld [vmem:[%s448_s1 + $0x8] sm:$0xf0]  ;;  %v234_v46 = vor.u32 %v297_v43, %v233_v42  ;;  %v173_v49 = vld [vmem:[%s450_s2] sm:$0x3] }
   0xc   :  { %132 = vmatpush.bf16.msra.mxu0 %v274_v16  ;;  %v238_v47 = vor.u32 %v296_v44, %v235_v45  ;;  %v295_v48 = vld [vmem:[%s449_s0] sm:$0xff]  ;;  %v175_v50 = vperm.slane %v173_v49, 0  ;;  %v176_v51 = vperm.slane %v173_v49, 1 }
   0xd   :  { %146 = vmatpush.bf16.msra.mxu1 %v278_v17 }
  0x10   :  { %133 = vmatpush.bf16.msra.mxu0 %v266_v22 }
  0x11   :  { %147 = vmatpush.bf16.msra.mxu1 %v270_v23 }
  0x14   :  { %134 = vmatpush.bf16.msra.mxu0 %v258_v28 }
  0x15   :  { %148 = vmatpush.bf16.msra.mxu1 %v262_v29 }
  0x18   :  { %135 = vmatpush.bf16.msra.mxu0 %v250_v34 }
  0x19   :  { %149 = vmatpush.bf16.msra.mxu1 %v254_v35 }
  0x1c   :  { %136 = vmatpush.bf16.msra.mxu0 %v242_v40 }
  0x1d   :  { %150 = vmatpush.bf16.msra.mxu1 %v246_v41 }
  0x20   :  { %137 = vmatpush.bf16.msra.mxu0 %v234_v46 }
  0x21   :  { %151 = vmatpush.bf16.msra.mxu1 %v238_v47 }
  0x23   :  { %138 = vmatmul.bf16.vlgmr.msra.gmra.mxu0 %v295_v48 }
  0x24   :  { %152 = vmatmul.bf16.vlgmr.msra.gmra.mxu1 %v295_v48 }
  0xa0   :  { %v139_v52 = vpop.f32.mrf.mxu0 }
  0xa1   :  { %v179_v53 = vadd.f32 %v175_v50, %v139_v52  ;;  %v153_v54 = vpop.f32.mrf.mxu1 }
  0xa2   :  { %v180_v55 = vadd.f32 %v176_v51, %v153_v54 }
  0xa3   :  { %v187_v56 = vmul.f32 0.044715, %v179_v53  ;;  %v183_v17 = vmul.f32 0.5, %v179_v53 }
  0xa4   :  { %v188_v57 = vmul.f32 0.044715, %v180_v55  ;;  %v184_v20 = vmul.f32 0.5, %v180_v55 }
  0xa5   :  { %v191_v58 = vmul.f32 %v187_v56, %v179_v53 }
  0xa6   :  { %v192_v59 = vmul.f32 %v188_v57, %v180_v55 }
  0xa7   :  { %v195_v60 = vmul.f32 %v191_v58, %v179_v53 }
  0xa8   :  { %v196_v61 = vmul.f32 %v192_v59, %v180_v55  ;;  %v141_v62 = vpop.f32.mrf.mxu0 }
  0xa9   :  { %v199_v63 = vadd.f32 %v195_v60, %v179_v53  ;;  %v181_v0 = vadd.f32 %v175_v50, %v141_v62  ;;  %v155_v1 = vpop.f32.mrf.mxu1 }
  0xaa   :  { %v200_v2 = vadd.f32 %v196_v61, %v180_v55  ;;  %v182_v3 = vadd.f32 %v176_v51, %v155_v1 }
  0xab   :  { %v203_v4 = vmul.f32 0.7978846, %v199_v63  ;;  %v189_v5 = vmul.f32 0.044715, %v181_v0  ;;  %v185_v27 = vmul.f32 0.5, %v181_v0 }
  0xac   :  { %v204_v6 = vmul.f32 0.7978846, %v200_v2  ;;  %v190_v7 = vmul.f32 0.044715, %v182_v3  ;;  %v186_v29 = vmul.f32 0.5, %v182_v3 }
  0xad   :  { %312 = vtanh.f32 %v203_v4  ;;  %v193_v8 = vmul.f32 %v189_v5, %v181_v0 }
  0xae   :  { %314 = vtanh.f32 %v204_v6  ;;  %v194_v9 = vmul.f32 %v190_v7, %v182_v3 }
  0xaf   :  { %v197_v10 = vmul.f32 %v193_v8, %v181_v0 }
  0xb0   :  { %v198_v11 = vmul.f32 %v194_v9, %v182_v3 }
  0xb1   :  { %v201_v12 = vadd.f32 %v197_v10, %v181_v0 }
  0xb2   :  { %v202_v13 = vadd.f32 %v198_v11, %v182_v3 }
  0xb3   :  { %v313_v14 = vpop.eup %312  ;;  %v205_v15 = vmul.f32 0.7978846, %v201_v12 }
  0xb4   :  { %v315_v16 = vpop.eup %314  ;;  %v211_v18 = vadd.f32 1.0, %v313_v14  ;;  %v206_v19 = vmul.f32 0.7978846, %v202_v13 }
  0xb5   :  { %v212_v21 = vadd.f32 1.0, %v315_v16  ;;  %316 = vtanh.f32 %v205_v15 }
  0xb6   :  { %v215_v22 = vmul.f32 %v211_v18, %v183_v17  ;;  %318 = vtanh.f32 %v206_v19 }
  0xb7   :  { %v216_v23 = vmul.f32 %v212_v21, %v184_v20 }
  0xb9   :  { %v219_v24 = vpack.c.bf16 %v216_v23, %v215_v22 }
  0xbb   :  { %v317_v25 = vpop.eup %316  ;;  %221 = vst [vmem:[%s451_s3] sm:$0xff] %v219_v24 }
  0xbc   :  { %v319_v26 = vpop.eup %318  ;;  %v213_v28 = vadd.f32 1.0, %v317_v25 }
  0xbd   :  { %v214_v30 = vadd.f32 1.0, %v319_v26 }
  0xbe   :  { %v217_v31 = vmul.f32 %v213_v28, %v185_v27 }
  0xbf   :  { %v218_v32 = vmul.f32 %v214_v30, %v186_v29 }
  0xc1   :  { %v220_v33 = vpack.c.bf16 %v218_v32, %v217_v31 }
  0xc3   :  { %222 = vst [vmem:[%s451_s3 + $0x8] sm:$0xff] %v220_v33 }

// kernel: visual_encoder_forward.48
= control target key start
LH: loop header
LB: loop body
LE: loop exit
PB: predicated region body
PF: predicated region fallthrough
CT: control target
= control target key end

     0   :  { %s235_s1 = inlined_call_operand.vmem [shape: bf16[128,128], index: 1, kind: input, shape index: {}]   ;;  %s236_s2 = inlined_call_operand.vmem [shape: f32[1,128], index: 2, kind: input, shape index: {}]   ;;  %s237_s0 = inlined_call_operand.vmem [shape: bf16[16,128], index: 0, kind: input, shape index: {}]   ;;  %s238_s3 = inlined_call_operand.vmem [shape: bf16[16,128], index: 3, kind: output, shape index: {}]  }
   0x1   :  { %v175_v0 = vld [vmem:[%s235_s1 + $0x38] sm:$0xff]  ;;  %v174_v1 = vld [vmem:[%s235_s1 + $0x30] sm:$0xff]  ;;  %v173_v2 = vld [vmem:[%s235_s1 + $0x28] sm:$0xff] }
   0x2   :  { %94 = vmatpush.bf16.msra.mxu0 %v175_v0  ;;  %v172_v3 = vld [vmem:[%s235_s1 + $0x20] sm:$0xff]  ;;  %v171_v4 = vld [vmem:[%s235_s1 + $0x18] sm:$0xff]  ;;  %v170_v5 = vld [vmem:[%s235_s1 + $0x10] sm:$0xff] }
   0x3   :  { %v169_v6 = vld [vmem:[%s235_s1 + $0x8] sm:$0xff]  ;;  %v168_v7 = vld [vmem:[%s235_s1] sm:$0xff] }
   0x4   :  { %v167_v8 = vld [vmem:[%s237_s0] sm:$0xff] }
   0x5   :  { %v181_v10 = vld [vmem:[%s236_s2] ss:$0 sm:$0xff] }
   0x6   :  { %95 = vmatpush.bf16.msra.mxu0 %v174_v1 }
   0xa   :  { %96 = vmatpush.bf16.msra.mxu0 %v173_v2 }
   0xe   :  { %97 = vmatpush.bf16.msra.mxu0 %v172_v3 }
  0x12   :  { %98 = vmatpush.bf16.msra.mxu0 %v171_v4 }
  0x16   :  { %99 = vmatpush.bf16.msra.mxu0 %v170_v5 }
  0x1a   :  { %100 = vmatpush.bf16.msra.mxu0 %v169_v6 }
  0x1e   :  { %101 = vmatpush.bf16.msra.mxu0 %v168_v7 }
  0x21   :  { %102 = vmatmul.bf16.vlgmr.msra.gmra.mxu0 %v167_v8 }
  0x9e   :  { %v103_v9 = vpop.f32.mrf.mxu0 }
  0x9f   :  { %v121_v12 = vadd.f32 %v181_v10, %v103_v9 }
  0xa6   :  { %v105_v11 = vpop.f32.mrf.mxu0 }
  0xa7   :  { %v122_v13 = vadd.f32 %v181_v10, %v105_v11 }
  0xa9   :  { %v179_v14 = vpack.c.bf16 %v122_v13, %v121_v12 }
  0xab   :  { %180 = vst [vmem:[%s238_s3] sm:$0xff] %v179_v14  }

// kernel: visual_encoder_forward.51
= control target key start
LH: loop header
LB: loop body
LE: loop exit
PB: predicated region body
PF: predicated region fallthrough
CT: control target
= control target key end

     0   :  { %s395_s1 = inlined_call_operand.vmem [shape: bf16[256,128], index: 1, kind: input, shape index: {}]   ;;  %s396_s0 = inlined_call_operand.vmem [shape: bf16[16,256], index: 0, kind: input, shape index: {}]   ;;  %s397_s2 = inlined_call_operand.vmem [shape: f32[1,128], index: 2, kind: input, shape index: {}]   ;;  %s398_s3 = inlined_call_operand.vmem [shape: bf16[16,128], index: 3, kind: output, shape index: {}]  }
   0x1   :  { %v294_v0 = vld [vmem:[%s395_s1 + $0x38] sm:$0xff]  ;;  %v293_v2 = vld [vmem:[%s395_s1 + $0x30] sm:$0xff]  ;;  %v292_v4 = vld [vmem:[%s395_s1 + $0x28] sm:$0xff] }
   0x2   :  { %v302_v1 = vld [vmem:[%s395_s1 + $0x78] sm:$0xff]  ;;  %162 = vmatpush.bf16.msra.mxu0 %v294_v0  ;;  %v301_v3 = vld [vmem:[%s395_s1 + $0x70] sm:$0xff]  ;;  %v300_v5 = vld [vmem:[%s395_s1 + $0x68] sm:$0xff] }
   0x3   :  { %176 = vmatpush.bf16.msra.mxu1 %v302_v1  ;;  %v291_v6 = vld [vmem:[%s395_s1 + $0x20] sm:$0xff]  ;;  %v290_v8 = vld [vmem:[%s395_s1 + $0x18] sm:$0xff]  ;;  %v289_v10 = vld [vmem:[%s395_s1 + $0x10] sm:$0xff] }
   0x4   :  { %v299_v7 = vld [vmem:[%s395_s1 + $0x60] sm:$0xff]  ;;  %v298_v9 = vld [vmem:[%s395_s1 + $0x58] sm:$0xff]  ;;  %v297_v11 = vld [vmem:[%s395_s1 + $0x50] sm:$0xff] }
   0x5   :  { %v288_v12 = vld [vmem:[%s395_s1 + $0x8] sm:$0xff]  ;;  %v287_v14 = vld [vmem:[%s395_s1] sm:$0xff] }
   0x6   :  { %163 = vmatpush.bf16.msra.mxu0 %v293_v2  ;;  %v296_v13 = vld [vmem:[%s395_s1 + $0x48] sm:$0xff]  ;;  %v295_v15 = vld [vmem:[%s395_s1 + $0x40] sm:$0xff] }
   0x7   :  { %177 = vmatpush.bf16.msra.mxu1 %v301_v3  ;;  %v215_v16 = vld [vmem:[%s396_s0] sm:$0xf]  ;;  %v286_v17 = vld [vmem:[%s396_s0 + $0x4] sm:$0xf0]  ;;  %v285_v18 = vld [vmem:[%s396_s0 + $0x4] sm:$0xf] }
   0x8   :  { %v217_v19 = vld [vmem:[%s396_s0 + $0x8] sm:$0xf0]  ;;  %v216_v20 = vor.u32 %v286_v17, %v215_v16  ;;  %v308_v25 = vld [vmem:[%s397_s2] ss:$0 sm:$0xff] }
   0x9   :  { %v220_v21 = vor.u32 %v285_v18, %v217_v19 }
   0xa   :  { %164 = vmatpush.bf16.msra.mxu0 %v292_v4 }
   0xb   :  { %178 = vmatpush.bf16.msra.mxu1 %v300_v5 }
   0xe   :  { %165 = vmatpush.bf16.msra.mxu0 %v291_v6 }
   0xf   :  { %179 = vmatpush.bf16.msra.mxu1 %v299_v7 }
  0x12   :  { %166 = vmatpush.bf16.msra.mxu0 %v290_v8 }
  0x13   :  { %180 = vmatpush.bf16.msra.mxu1 %v298_v9 }
  0x16   :  { %167 = vmatpush.bf16.msra.mxu0 %v289_v10 }
  0x17   :  { %181 = vmatpush.bf16.msra.mxu1 %v297_v11 }
  0x1a   :  { %168 = vmatpush.bf16.msra.mxu0 %v288_v12 }
  0x1b   :  { %182 = vmatpush.bf16.msra.mxu1 %v296_v13 }
  0x1e   :  { %169 = vmatpush.bf16.msra.mxu0 %v287_v14 }
  0x1f   :  { %183 = vmatpush.bf16.msra.mxu1 %v295_v15 }
  0x21   :  { %170 = vmatmul.bf16.vlgmr.msra.gmra.mxu0 %v216_v20 }
  0x22   :  { %184 = vmatmul.bf16.vlgmr.msra.gmra.mxu1 %v220_v21 }
  0x9e   :  { %v171_v22 = vpop.f32.mrf.mxu0 }
  0x9f   :  { %v185_v23 = vpop.f32.mrf.mxu1 }
  0xa0   :  { %v186_v24 = vadd.f32 %v185_v23, %v171_v22 }
  0xa2   :  { %v203_v29 = vadd.f32 %v308_v25, %v186_v24 }
  0xa6   :  { %v173_v26 = vpop.f32.mrf.mxu0 }
  0xa7   :  { %v187_v27 = vpop.f32.mrf.mxu1 }
  0xa8   :  { %v188_v28 = vadd.f32 %v187_v27, %v173_v26 }
  0xaa   :  { %v204_v30 = vadd.f32 %v308_v25, %v188_v28 }
  0xac   :  { %v306_v31 = vpack.c.bf16 %v204_v30, %v203_v29 }
  0xae   :  { %307 = vst [vmem:[%s398_s3] sm:$0xff] %v306_v31  }

// kernel: visual_encoder_forward.76
= control target key start
LH: loop header
LB: loop body
LE: loop exit
PB: predicated region body
PF: predicated region fallthrough
CT: control target
= control target key end

     0   :  { %s776_s1 = inlined_call_operand.vmem [shape: bf16[128,384], index: 1, kind: input, shape index: {}]   ;;  %s777_s0 = inlined_call_operand.vmem [shape: bf16[48,128], index: 0, kind: input, shape index: {}]   ;;  %s778_s2 = inlined_call_operand.vmem [shape: f32[1,384], index: 2, kind: input, shape index: {}]   ;;  %s779_s3 = inlined_call_operand.vmem [shape: bf16[48,384], index: 3, kind: output, shape index: {}]  }
   0x1   :  { %v519_v0 = vld [vmem:[%s776_s1 + $0xa8] sm:$0xf]  ;;  %v554_v1 = vld [vmem:[%s776_s1 + $0xb0] sm:$0xf0]  ;;  %v553_v2 = vld [vmem:[%s776_s1 + $0xac] sm:$0xf] }
   0x2   :  { %v520_v3 = vor.u32 %v554_v1, %v519_v0  ;;  %v521_v4 = vld [vmem:[%s776_s1 + $0xb4] sm:$0xf0]  ;;  %v527_v5 = vld [vmem:[%s776_s1 + $0xb0] sm:$0xf]  ;;  %v555_v6 = vld [vmem:[%s776_s1 + $0xb8] sm:$0xf0] }
   0x3   :  { %v524_v7 = vor.u32 %v553_v2, %v521_v4  ;;  %v528_v8 = vor.u32 %v555_v6, %v527_v5  ;;  %v507_v9 = vld [vmem:[%s776_s1 + $0x90] sm:$0xf]  ;;  %v551_v10 = vld [vmem:[%s776_s1 + $0x98] sm:$0xf0]  ;;  %v550_v11 = vld [vmem:[%s776_s1 + $0x94] sm:$0xf] }
   0x4   :  { %238 = vmatpush.bf16.msra.mxu0 %v520_v3  ;;  %v508_v12 = vor.u32 %v551_v10, %v507_v9  ;;  %v509_v13 = vld [vmem:[%s776_s1 + $0x9c] sm:$0xf0]  ;;  %v515_v14 = vld [vmem:[%s776_s1 + $0x98] sm:$0xf]  ;;  %v552_v15 = vld [vmem:[%s776_s1 + $0xa0] sm:$0xf0]  ;;  %556 = vmatpush.bf16.msra.mxu3 %v520_v3 }
   0x5   :  { %262 = vmatpush.bf16.msra.mxu1 %v524_v7  ;;  %286 = vmatpush.bf16.msra.mxu2 %v528_v8  ;;  %v512_v16 = vor.u32 %v550_v11, %v509_v13  ;;  %v516_v17 = vor.u32 %v552_v15, %v515_v14  ;;  %v495_v18 = vld [vmem:[%s776_s1 + $0x78] sm:$0xf]  ;;  %v548_v19 = vld [vmem:[%s776_s1 + $0x80] sm:$0xf0]  ;;  %v547_v20 = vld [vmem:[%s776_s1 + $0x7c] sm:$0xf] }
   0x6   :  { %v497_v21 = vld [vmem:[%s776_s1 + $0x84] sm:$0xf0]  ;;  %v503_v22 = vld [vmem:[%s776_s1 + $0x80] sm:$0xf]  ;;  %v549_v23 = vld [vmem:[%s776_s1 + $0x88] sm:$0xf0]  ;;  %v496_v24 = vor.u32 %v548_v19, %v495_v18 }
   0x7   :  { %v500_v25 = vor.u32 %v547_v20, %v497_v21  ;;  %v504_v26 = vor.u32 %v549_v23, %v503_v22  ;;  %v483_v27 = vld [vmem:[%s776_s1 + $0x60] sm:$0xf]  ;;  %v545_v28 = vld [vmem:[%s776_s1 + $0x68] sm:$0xf0]  ;;  %v544_v29 = vld [vmem:[%s776_s1 + $0x64] sm:$0xf] }
   0x8   :  { %239 = vmatpush.bf16.msra.mxu0 %v508_v12  ;;  %557 = vmatpush.bf16.msra.mxu3 %v508_v12  ;;  %v485_v30 = vld [vmem:[%s776_s1 + $0x6c] sm:$0xf0]  ;;  %v491_v31 = vld [vmem:[%s776_s1 + $0x68] sm:$0xf]  ;;  %v546_v32 = vld [vmem:[%s776_s1 + $0x70] sm:$0xf0]  ;;  %v484_v33 = vor.u32 %v545_v28, %v483_v27 }
   0x9   :  { %263 = vmatpush.bf16.msra.mxu1 %v512_v16  ;;  %287 = vmatpush.bf16.msra.mxu2 %v516_v17  ;;  %v488_v34 = vor.u32 %v544_v29, %v485_v30  ;;  %v492_v35 = vor.u32 %v546_v32, %v491_v31  ;;  %v471_v36 = vld [vmem:[%s776_s1 + $0x48] sm:$0xf]  ;;  %v542_v37 = vld [vmem:[%s776_s1 + $0x50] sm:$0xf0]  ;;  %v541_v38 = vld [vmem:[%s776_s1 + $0x4c] sm:$0xf] }
   0xa   :  { %v473_v39 = vld [vmem:[%s776_s1 + $0x54] sm:$0xf0]  ;;  %v479_v40 = vld [vmem:[%s776_s1 + $0x50] sm:$0xf]  ;;  %v543_v41 = vld [vmem:[%s776_s1 + $0x58] sm:$0xf0]  ;;  %v472_v42 = vor.u32 %v542_v37, %v471_v36 }
   0xb   :  { %v476_v43 = vor.u32 %v541_v38, %v473_v39  ;;  %v480_v44 = vor.u32 %v543_v41, %v479_v40  ;;  %v459_v45 = vld [vmem:[%s776_s1 + $0x30] sm:$0xf]  ;;  %v539_v46 = vld [vmem:[%s776_s1 + $0x38] sm:$0xf0]  ;;  %v538_v47 = vld [vmem:[%s776_s1 + $0x34] sm:$0xf] }
   0xc   :  { %240 = vmatpush.bf16.msra.mxu0 %v496_v24  ;;  %558 = vmatpush.bf16.msra.mxu3 %v496_v24  ;;  %v461_v48 = vld [vmem:[%s776_s1 + $0x3c] sm:$0xf0]  ;;  %v467_v49 = vld [vmem:[%s776_s1 + $0x38] sm:$0xf]  ;;  %v540_v50 = vld [vmem:[%s776_s1 + $0x40] sm:$0xf0]  ;;  %v460_v51 = vor.u32 %v539_v46, %v459_v45 }
   0xd   :  { %264 = vmatpush.bf16.msra.mxu1 %v500_v25  ;;  %288 = vmatpush.bf16.msra.mxu2 %v504_v26  ;;  %v464_v52 = vor.u32 %v538_v47, %v461_v48  ;;  %v468_v53 = vor.u32 %v540_v50, %v467_v49  ;;  %v447_v54 = vld [vmem:[%s776_s1 + $0x18] sm:$0xf]  ;;  %v536_v55 = vld [vmem:[%s776_s1 + $0x20] sm:$0xf0]  ;;  %v535_v56 = vld [vmem:[%s776_s1 + $0x1c] sm:$0xf] }
   0xe   :  { %v449_v57 = vld [vmem:[%s776_s1 + $0x24] sm:$0xf0]  ;;  %v455_v58 = vld [vmem:[%s776_s1 + $0x20] sm:$0xf]  ;;  %v537_v59 = vld [vmem:[%s776_s1 + $0x28] sm:$0xf0]  ;;  %v448_v60 = vor.u32 %v536_v55, %v447_v54 }
   0xf   :  { %v452_v61 = vor.u32 %v535_v56, %v449_v57  ;;  %v456_v62 = vor.u32 %v537_v59, %v455_v58  ;;  %v435_v63 = vld [vmem:[%s776_s1] sm:$0xf]  ;;  %v533_v0 = vld [vmem:[%s776_s1 + $0x8] sm:$0xf0]  ;;  %v532_v1 = vld [vmem:[%s776_s1 + $0x4] sm:$0xf] }
  0x10   :  { %241 = vmatpush.bf16.msra.mxu0 %v484_v33  ;;  %559 = vmatpush.bf16.msra.mxu3 %v484_v33  ;;  %v437_v2 = vld [vmem:[%s776_s1 + $0xc] sm:$0xf0]  ;;  %v443_v3 = vld [vmem:[%s776_s1 + $0x8] sm:$0xf]  ;;  %v534_v4 = vld [vmem:[%s776_s1 + $0x10] sm:$0xf0]  ;;  %v436_v5 = vor.u32 %v533_v0, %v435_v63 }
  0x11   :  { %265 = vmatpush.bf16.msra.mxu1 %v488_v34  ;;  %289 = vmatpush.bf16.msra.mxu2 %v492_v35  ;;  %v440_v6 = vor.u32 %v532_v1, %v437_v2  ;;  %v444_v7 = vor.u32 %v534_v4, %v443_v3  ;;  %v529_v8 = vld [vmem:[%s777_s0] sm:$0xff]  ;;  %v530_v9 = vld [vmem:[%s777_s0 + $0x8] sm:$0xff]  ;;  %v531_v10 = vld [vmem:[%s777_s0 + $0x10] sm:$0xff] }
  0x12   :  { %v367_v11 = vld [vmem:[%s778_s2] sm:$0x7] }
  0x13   :  { %v369_v12 = vperm.slane %v367_v11, 0  ;;  %v370_v13 = vperm.slane %v367_v11, 1  ;;  %v371_v19 = vperm.slane %v367_v11, 2 }
  0x14   :  { %242 = vmatpush.bf16.msra.mxu0 %v472_v42  ;;  %560 = vmatpush.bf16.msra.mxu3 %v472_v42 }
  0x15   :  { %266 = vmatpush.bf16.msra.mxu1 %v476_v43  ;;  %290 = vmatpush.bf16.msra.mxu2 %v480_v44 }
  0x18   :  { %243 = vmatpush.bf16.msra.mxu0 %v460_v51  ;;  %561 = vmatpush.bf16.msra.mxu3 %v460_v51 }
  0x19   :  { %267 = vmatpush.bf16.msra.mxu1 %v464_v52  ;;  %291 = vmatpush.bf16.msra.mxu2 %v468_v53 }
  0x1c   :  { %244 = vmatpush.bf16.msra.mxu0 %v448_v60  ;;  %562 = vmatpush.bf16.msra.mxu3 %v448_v60 }
  0x1d   :  { %268 = vmatpush.bf16.msra.mxu1 %v452_v61  ;;  %292 = vmatpush.bf16.msra.mxu2 %v456_v62 }
  0x20   :  { %245 = vmatpush.bf16.msra.mxu0 %v436_v5  ;;  %563 = vmatpush.bf16.msra.mxu3 %v436_v5 }
  0x21   :  { %269 = vmatpush.bf16.msra.mxu1 %v440_v6  ;;  %293 = vmatpush.bf16.msra.mxu2 %v444_v7 }
  0x23   :  { %246 = vmatmul.bf16.vlgmr.msra.gmra.mxu0 %v529_v8  ;;  %251 = vmatmul.bf16.vlgmr.msra.gmra.mxu3 %v530_v9 }
  0x24   :  { %270 = vmatmul.bf16.vlgmr.msra.gmra.mxu1 %v529_v8  ;;  %294 = vmatmul.bf16.vlgmr.msra.gmra.mxu2 %v529_v8 }
  0x33   :  { %256 = vmatmul.bf16.gmra.mxu3 %v531_v10 }
  0x34   :  { %275 = vmatmul.bf16.gmra.mxu1 %v530_v9  ;;  %299 = vmatmul.bf16.gmra.mxu2 %v530_v9 }
  0x44   :  { %280 = vmatmul.bf16.gmra.mxu1 %v531_v10  ;;  %304 = vmatmul.bf16.gmra.mxu2 %v531_v10 }
  0xa0   :  { %v247_v14 = vpop.f32.mrf.mxu0 }
  0xa1   :  { %v375_v15 = vadd.f32 %v369_v12, %v247_v14  ;;  %v271_v16 = vpop.f32.mrf.mxu1 }
  0xa2   :  { %v376_v17 = vadd.f32 %v370_v13, %v271_v16 }
  0xa4   :  { %v393_v18 = vpack.c.bf16 %v376_v17, %v375_v15 }
  0xa6   :  { %405 = vst [vmem:[%s779_s3] sm:$0xff] %v393_v18  ;;  %v252_v25 = vpop.f32.mrf.mxu3 }
  0xa7   :  { %v295_v20 = vpop.f32.mrf.mxu2  ;;  %v381_v30 = vadd.f32 %v369_v12, %v252_v25 }
  0xa8   :  { %v377_v21 = vadd.f32 %v371_v19, %v295_v20  ;;  %v249_v22 = vpop.f32.mrf.mxu0 }
  0xa9   :  { %v378_v23 = vadd.f32 %v369_v12, %v249_v22  ;;  %v273_v24 = vpop.f32.mrf.mxu1 }
  0xaa   :  { %v394_v26 = vpack.c.bf16 %v377_v21, %v377_v21  ;;  %v379_v27 = vadd.f32 %v370_v13, %v273_v24 }
  0xac   :  { %406 = vst [vmem:[%s779_s3 + $0x8] sm:$0xf] %v394_v26  ;;  %v395_v28 = vpack.c.bf16 %v379_v27, %v378_v23 }
  0xae   :  { %407 = vst [vmem:[%s779_s3 + $0xc] sm:$0xff] %v395_v28  ;;  %v254_v35 = vpop.f32.mrf.mxu3 }
  0xaf   :  { %v297_v29 = vpop.f32.mrf.mxu2  ;;  %v384_v40 = vadd.f32 %v369_v12, %v254_v35 }
  0xb0   :  { %v380_v31 = vadd.f32 %v371_v19, %v297_v29 }
  0xb1   :  { %v276_v32 = vpop.f32.mrf.mxu1 }
  0xb2   :  { %v396_v33 = vpack.c.bf16 %v380_v31, %v380_v31  ;;  %v382_v34 = vadd.f32 %v370_v13, %v276_v32 }
  0xb4   :  { %408 = vst [vmem:[%s779_s3 + $0x14] sm:$0xf] %v396_v33  ;;  %v397_v36 = vpack.c.bf16 %v382_v34, %v381_v30 }
  0xb6   :  { %409 = vst [vmem:[%s779_s3 + $0x18] sm:$0xff] %v397_v36  ;;  %v257_v44 = vpop.f32.mrf.mxu3 }
  0xb7   :  { %v300_v37 = vpop.f32.mrf.mxu2  ;;  %v387_v46 = vadd.f32 %v369_v12, %v257_v44 }
  0xb8   :  { %v383_v38 = vadd.f32 %v371_v19, %v300_v37 }
  0xb9   :  { %v278_v39 = vpop.f32.mrf.mxu1 }
  0xba   :  { %v398_v41 = vpack.c.bf16 %v383_v38, %v383_v38  ;;  %v385_v42 = vadd.f32 %v370_v13, %v278_v39 }
  0xbc   :  { %410 = vst [vmem:[%s779_s3 + $0x20] sm:$0xf] %v398_v41  ;;  %v399_v43 = vpack.c.bf16 %v385_v42, %v384_v40 }
  0xbe   :  { %411 = vst [vmem:[%s779_s3 + $0x24] sm:$0xff] %v399_v43  ;;  %v259_v52 = vpop.f32.mrf.mxu3 }
  0xbf   :  { %v302_v45 = vpop.f32.mrf.mxu2  ;;  %v390_v56 = vadd.f32 %v369_v12, %v259_v52 }
  0xc0   :  { %v386_v47 = vadd.f32 %v371_v19, %v302_v45 }
  0xc1   :  { %v281_v48 = vpop.f32.mrf.mxu1 }
  0xc2   :  { %v400_v49 = vpack.c.bf16 %v386_v47, %v386_v47  ;;  %v388_v50 = vadd.f32 %v370_v13, %v281_v48 }
  0xc4   :  { %412 = vst [vmem:[%s779_s3 + $0x2c] sm:$0xf] %v400_v49  ;;  %v401_v51 = vpack.c.bf16 %v388_v50, %v387_v46 }
  0xc6   :  { %413 = vst [vmem:[%s779_s3 + $0x30] sm:$0xff] %v401_v51 }
  0xc7   :  { %v305_v53 = vpop.f32.mrf.mxu2 }
  0xc8   :  { %v389_v54 = vadd.f32 %v371_v19, %v305_v53 }
  0xc9   :  { %v283_v55 = vpop.f32.mrf.mxu1 }
  0xca   :  { %v402_v57 = vpack.c.bf16 %v389_v54, %v389_v54  ;;  %v391_v58 = vadd.f32 %v370_v13, %v283_v55 }
  0xcc   :  { %414 = vst [vmem:[%s779_s3 + $0x38] sm:$0xf] %v402_v57  ;;  %v403_v59 = vpack.c.bf16 %v391_v58, %v390_v56 }
  0xce   :  { %415 = vst [vmem:[%s779_s3 + $0x3c] sm:$0xff] %v403_v59 }
  0xcf   :  { %v307_v60 = vpop.f32.mrf.mxu2 }
  0xd0   :  { %v392_v61 = vadd.f32 %v371_v19, %v307_v60 }
  0xd2   :  { %v404_v62 = vpack.c.bf16 %v392_v61, %v392_v61 }
  0xd4   :  { %416 = vst [vmem:[%s779_s3 + $0x44] sm:$0xf] %v404_v62 }

// kernel: visual_encoder_forward.77
= control target key start
LH: loop header
LB: loop body
LE: loop exit
PB: predicated region body
PF: predicated region fallthrough
CT: control target
= control target key end

     0   :  { %s777_s15 = smov 0   ;;  %s779_s16 = smov 0   ;;  %s851_s0 = inlined_call_operand.vmem [shape: bf16[2,4,21,32], index: 0, kind: input, shape index: {}]   ;;  %s852_s1 = inlined_call_operand.vmem [shape: bf16[2,4,21,32], index: 1, kind: input, shape index: {}]   ;;  %s853_s2 = inlined_call_operand.vmem [shape: bf16[2,4,21,32], index: 2, kind: input, shape index: {}]   ;;  %s854_s3 = inlined_call_operand.vmem [shape: f32[2,21,21], index: 3, kind: input, shape index: {}]   ;;  %s855_s4 = inlined_call_operand.vmem [shape: bf16[2,4,21,32], index: 4, kind: output, shape index: {}]  }
   0x1   :  { %s781_s17 = smov 0   ;;  %s783_s18 = smov 0  }
   0x2   :  { %s785_s19 = smov 0  }
   0x3 LB: > { %s23_s20 = sadd.s32 1, %s741_s17  ;;  %s26_s21 = sadd.s32 1, %s745_s18  ;;  %s749_s19 = sphi %s785_s19, %s14_s19   ;;  %s745_s18 = sphi %s783_s18, %s859_s18   ;;  %s741_s17 = sphi %s781_s17, %s858_s17   ;;  %s737_s16 = sphi %s779_s16, %s857_s16   ;;  %s733_s15 = sphi %s777_s15, %s856_s15  }
   0x4   : > { %p24_p0 = scmp.ge.s32.totalorder %s23_s20, 4  ;;  %p624_p1 = scmp.ge.s32.totalorder %s749_s19, 1 }
   0x5   : > { %p224_p2 = scmp.lt.s32.totalorder %s749_s19, 9 }
   0x6   : > { %s861_s20 = smov (%p24_p0, %s23_s20), 0  ;;  %s863_s21 = smov (!%p24_p0, %s26_s21), %s745_s18 }
   0x7   : > { %p225_p3 = pnand %p624_p1, %p224_p2  ;;  %p28_p4 = scmp.ge.s32.totalorder %s863_s21, 2 }
   0x8   : > { %p281_p5 = scmp.lt.s32.totalorder (!%p225_p3), %s737_s16, 1  ;;  %p283_p6 = scmp.lt.s32.totalorder (!%p225_p3), %s733_s15, 3 }
   0x9   : > { %s865_s21 = smov (%p28_p4, %s863_s21), 0  ;;  %228 = sbr.rel (%p225_p3) target bundleno = 585 (0x249), region = 36 }
   0xe   : > { %s867_s16 = smov (!%p281_p5, %s737_s16), 1  ;;  %s869_s15 = smov (!%p283_p6, %s733_s15), 3  ;;  %vm348_vm0 = vcmask 261120   ;;  %vm386_vm1 = vcmask 167936   ;;  %vm379_vm2 = vcmask 171008   ;;  %vm434_vm3 = vcmask 1041408  }
   0xf   : > { %s656_s22 = smul.u32 12, %s867_s16  ;;  %vm435_vm4 = vcmask 1042432   ;;  %v751_v41 = vmov 65535   ;;  %vm465_vm5 = vcmask 256000   ;;  %vm466_vm6 = vsmask.f32 2304 }
  0x10   : > { %s655_s23 = smul.u32 3, %s869_s15  ;;  %v436_v42 = vsel %vm434_vm3, 4294967295, %v751_v41  ;;  %vm467_vm7 = vmand %vm465_vm5, %vm466_vm6  ;;  %vm462_vm8 = vcmask 257024  }
  0x11   : > { %s657_s6 = smul.u32 24, %s867_s16  ;;  %v437_v43 = vsel %vm435_vm4, %v436_v42, 0 }
  0x12   : > { %s287_s24 = sadd.s32 %s656_s22, %s655_s23 }
  0x13   : > { %s807_s25 = sshll.u32 %s287_s24, 2  ;;  %s312_s9 = scalar_lea.vmem %s854_s3, %s657_s6 }
  0x14   : > { %s298_s28 = scalar_lea.vmem %s852_s1, %s807_s25  ;;  %s289_s5 = scalar_lea.vmem %s851_s0, %s807_s25  ;;  %v331_v11 = vld [vmem:[%s312_s9 + $0x10] sm:$0x1f]  ;;  %v330_v13 = vld [vmem:[%s312_s9 + $0x8] sm:$0xff]  ;;  %v329_v15 = vld [vmem:[%s312_s9] sm:$0xff] }
  0x15   : > { %v328_v0 = vld [vmem:[%s298_s28 + $0x8] sm:$0x7]  ;;  %v649_v4 = vld [vmem:[%s298_s28] sm:$0xff]  ;;  %s307_s12 = scalar_lea.vmem %s853_s2, %s807_s25  ;;  %s321_s15 = scalar_lea.vmem %s855_s4, %s807_s25 }
  0x16   : > { %v345_v1 = vunpack.c.l.b16 %v328_v0  ;;  %v325_v5 = vld [vmem:[%s289_s5 + $0x8] sm:$0x7]  ;;  %v356_v6 = vsel %vm348_vm0, %v649_v4, 0  ;;  %v648_v8 = vld [vmem:[%s289_s5] sm:$0xff] }
  0x17   : > { %v337_v7 = vunpack.c.l.b16 %v325_v5  ;;  %v418_v38 = vld [vmem:[%s307_s12 + $0x8] sm:$0x7]  ;;  %v650_v45 = vld [vmem:[%s307_s12] sm:$0xff] }
  0x18   : > { %v347_v2 = vpack.c.b16 %v345_v1, %v345_v1  ;;  %v424_v39 = vunpack.c.l.b16 %v418_v38  ;;  %v468_v58 = vld [vmem:[%s321_s15 + $0x8] sm:$0x7] }
  0x19   : > { %v339_v9 = vpack.c.b16 %v337_v7, %v337_v7 }
  0x1a   : > { %v359_v3 = vsel %vm348_vm0, %v347_v2, 0  ;;  %v426_v40 = vpack.c.b16 %v424_v39, %v424_v39 }
  0x1b   : > { %367 = vmatpush.bf16.xpose.msra.mxu0 %v359_v3  ;;  %651 = vmatpush.bf16.xpose.msra.mxu2 %v359_v3 }
  0x1c   : > { %v439_v44 = vand.u32 %v437_v43, %v426_v40 }
  0x1e   : > { %653 = vmatpush.bf16.msra.mxu3 %v439_v44  ;;  %447 = vmatpush.bf16.msra.mxu1 %v439_v44 }
  0x22   : > { %654 = vmatpush.bf16.msra.mxu3 %v650_v45  ;;  %448 = vmatpush.bf16.msra.mxu1 %v650_v45 }
  0x23   : > { %368 = vmatpush.bf16.xpose.msra.mxu0 %v356_v6  ;;  %652 = vmatpush.bf16.xpose.msra.mxu2 %v356_v6 }
  0x2a   : > { %638 = vmatmul.msk.bf16.vlgmr.msra.gmra.mxu0 %vm348_vm0, %v648_v8  ;;  %639 = vmatmul.msk.bf16.vlgmr.msra.gmra.mxu2 %vm348_vm0, %v339_v9 }
  0xa7   : > { %v370_v10 = vpop.f32.mrf.mxu0 }
  0xa8   : > { %v371_v19 = vadd.f32 %v370_v10, %v329_v15 }
  0xaa   : > { %v380_v22 = vsel %vm379_vm2, %v371_v19, -inf }
  0xad   : > { %v375_v12 = vpop.f32.mrf.mxu2 }
  0xae   : > { %v376_v14 = vadd.f32 %v375_v12, %v331_v11 }
  0xaf   : > { %v372_v16 = vpop.f32.mrf.mxu0 }
  0xb0   : > { %v373_v17 = vadd.f32 %v372_v16, %v330_v13  ;;  %v387_v18 = vsel %vm386_vm1, %v376_v14, -inf }
  0xb1   : > { %388 = vmax.xlane.f32.xlu0 %v387_v18 }
  0xb2   : > { %v383_v20 = vsel %vm379_vm2, %v373_v17, -inf }
  0xb3   : > { %384 = vmax.xlane.f32.xlu1 %v383_v20 }
  0xb5   : > { %v377_v21 = vpop.f32.mrf.mxu2 }
  0xb9   : > { %381 = vmax.xlane.f32.xlu0 %v380_v22 }
 0x124   : > { %v389_v23 = vpop.xlane.xlu0 %388 }
 0x125   : > { %v392_v24 = vsub.f32 %v376_v14, %v389_v23 }
 0x126   : > { %v385_v26 = vpop.xlane.xlu1 %384 }
 0x127   : > { %v397_v25 = vmul.f32 1.442695, %v392_v24  ;;  %v391_v30 = vsub.f32 %v373_v17, %v385_v26 }
 0x129   : > { %699 = vpow2.f32 %v397_v25  ;;  %v395_v33 = vmul.f32 1.442695, %v391_v30 }
 0x12c   : > { %v382_v27 = vpop.xlane.xlu0 %381 }
 0x12d   : > { %v390_v28 = vsub.f32 %v371_v19, %v382_v27 }
 0x12f   : > { %v700_v29 = vpop.eup %699  ;;  %v393_v31 = vmul.f32 1.442695, %v390_v28 }
 0x130   : > { %v405_v32 = vsel %vm386_vm1, %v700_v29, 0.0 }
 0x131   : > { %701 = vpow2.f32 %v393_v31  ;;  %406 = vadd.xlane.f32.xlu1 %v405_v32 }
 0x132   : > { %703 = vpow2.f32 %v395_v33 }
 0x137   : > { %v702_v34 = vpop.eup %701 }
 0x138   : > { %v399_v35 = vsel %vm379_vm2, %v702_v34, 0.0  ;;  %v704_v36 = vpop.eup %703 }
 0x139   : > { %400 = vadd.xlane.f32.xlu2 %v399_v35  ;;  %v402_v37 = vsel %vm379_vm2, %v704_v36, 0.0 }
 0x141   : > { %403 = vadd.xlane.f32.xlu2 %v402_v37 }
 0x1a4   : > { %v407_v46 = vpop.xlane.xlu1 %406 }
 0x1a5   : > { %705 = vrcp.f32 %v407_v46 }
 0x1ab   : > { %v706_v47 = vpop.eup %705 }
 0x1ac   : > { %v401_v48 = vpop.xlane.xlu2 %400  ;;  %v413_v49 = vmul.f32 %v706_v47, %v700_v29 }
 0x1ad   : > { %707 = vrcp.f32 %v401_v48 }
 0x1ae   : > { %v415_v50 = vpack.c.bf16 %v413_v49, %v413_v49 }
 0x1b0   : > { %645 = vmatmul.msk.bf16.vlgmr.msra.gmra.mxu3 %vm379_vm2, %v415_v50 }
 0x1b3   : > { %v708_v52 = vpop.eup %707 }
 0x1b4   : > { %v404_v51 = vpop.xlane.xlu2 %403  ;;  %v411_v54 = vmul.f32 %v708_v52, %v702_v34 }
 0x1b5   : > { %709 = vrcp.f32 %v404_v51 }
 0x1bb   : > { %v710_v53 = vpop.eup %709 }
 0x1bc   : > { %v412_v55 = vmul.f32 %v710_v53, %v704_v36 }
 0x1be   : > { %v414_v56 = vpack.c.bf16 %v412_v55, %v411_v54 }
 0x1c0   : > { %644 = vmatmul.msk.bf16.vlgmr.msra.gmra.mxu1 %vm379_vm2, %v414_v56 }
 0x233   : > { %v455_v57 = vpop.f32.mrf.mxu3 }
 0x234   : > { %v461_v59 = vpack.c.bf16 %v455_v57, %v455_v57 }
 0x236   : > { %v469_v60 = vsel %vm467_vm7, %v461_v59, %v468_v58 }
 0x237   : > { %470 = vst [vmem:[%s321_s15 + $0x8] sm:$0x7] %v469_v60 }
 0x23b   : > { %v457_v61 = vpop.f32.mrf.mxu3 }
 0x23d   : > { %v450_v62 = vpop.f32.mrf.mxu1 }
 0x23e   : > { %v459_v63 = vpack.c.bf16 %v450_v62, %v450_v62 }
 0x240   : > { %463 = vst.msk [vmem:[%s321_s15] sm:$0xf] %vm462_vm8, %v459_v63 }
 0x245   : > { %v452_v0 = vpop.f32.mrf.mxu1 }
 0x246   : > { %v460_v1 = vpack.c.bf16 %v452_v0, %v452_v0 }
 0x248   : > { %464 = vst.msk [vmem:[%s321_s15 + $0x4] sm:$0xf] %vm462_vm8, %v460_v1 }
 0x249 PF: > { %s14_s19 = sadd.s32 1, %s749_s19   ;;  %s856_s15 = smov %s741_s17 }
 0x24a   : > { %p11_p7 = scmp.ge.s32.totalorder %s14_s19, 10   ;;  %s857_s16 = smov %s745_s18 }
 0x24b   : > { %s858_s17 = smov %s861_s20  ;;  %s859_s18 = smov %s865_s21 }
 0x24c   :  { %13 = sbr.rel (!%p11_p7) target bundleno = 3 (0x3), region = 75 }

// kernel: visual_encoder_forward.78
= control target key start
LH: loop header
LB: loop body
LE: loop exit
PB: predicated region body
PF: predicated region fallthrough
CT: control target
= control target key end

     0   :  { %s343_s1 = inlined_call_operand.vmem [shape: bf16[128,128], index: 1, kind: input, shape index: {}]   ;;  %s344_s2 = inlined_call_operand.vmem [shape: f32[1,128], index: 2, kind: input, shape index: {}]   ;;  %s345_s0 = inlined_call_operand.vmem [shape: bf16[48,128], index: 0, kind: input, shape index: {}]   ;;  %s346_s3 = inlined_call_operand.vmem [shape: bf16[48,128], index: 3, kind: output, shape index: {}]  }
   0x1   :  { %v243_v0 = vld [vmem:[%s343_s1 + $0x38] sm:$0xff]  ;;  %v242_v1 = vld [vmem:[%s343_s1 + $0x30] sm:$0xff]  ;;  %v241_v2 = vld [vmem:[%s343_s1 + $0x28] sm:$0xff] }
   0x2   :  { %118 = vmatpush.bf16.msra.mxu0 %v243_v0  ;;  %261 = vmatpush.bf16.msra.mxu1 %v243_v0  ;;  %v240_v3 = vld [vmem:[%s343_s1 + $0x20] sm:$0xff]  ;;  %v239_v4 = vld [vmem:[%s343_s1 + $0x18] sm:$0xff]  ;;  %v238_v5 = vld [vmem:[%s343_s1 + $0x10] sm:$0xff] }
   0x3   :  { %262 = vmatpush.bf16.msra.mxu2 %v243_v0  ;;  %v237_v6 = vld [vmem:[%s343_s1 + $0x8] sm:$0xff]  ;;  %v236_v7 = vld [vmem:[%s343_s1] sm:$0xff]  ;;  %v235_v10 = vld [vmem:[%s345_s0 + $0x10] sm:$0xff] }
   0x4   :  { %v233_v8 = vld [vmem:[%s345_s0] sm:$0xff]  ;;  %v234_v9 = vld [vmem:[%s345_s0 + $0x8] sm:$0xff] }
   0x5   :  { %v277_v13 = vld [vmem:[%s344_s2] ss:$0 sm:$0xff] }
   0x6   :  { %119 = vmatpush.bf16.msra.mxu0 %v242_v1  ;;  %263 = vmatpush.bf16.msra.mxu1 %v242_v1 }
   0x7   :  { %264 = vmatpush.bf16.msra.mxu2 %v242_v1 }
   0xa   :  { %120 = vmatpush.bf16.msra.mxu0 %v241_v2  ;;  %265 = vmatpush.bf16.msra.mxu1 %v241_v2 }
   0xb   :  { %266 = vmatpush.bf16.msra.mxu2 %v241_v2 }
   0xe   :  { %121 = vmatpush.bf16.msra.mxu0 %v240_v3  ;;  %267 = vmatpush.bf16.msra.mxu1 %v240_v3 }
   0xf   :  { %268 = vmatpush.bf16.msra.mxu2 %v240_v3 }
  0x12   :  { %122 = vmatpush.bf16.msra.mxu0 %v239_v4  ;;  %269 = vmatpush.bf16.msra.mxu1 %v239_v4 }
  0x13   :  { %270 = vmatpush.bf16.msra.mxu2 %v239_v4 }
  0x16   :  { %123 = vmatpush.bf16.msra.mxu0 %v238_v5  ;;  %271 = vmatpush.bf16.msra.mxu1 %v238_v5 }
  0x17   :  { %272 = vmatpush.bf16.msra.mxu2 %v238_v5 }
  0x1a   :  { %124 = vmatpush.bf16.msra.mxu0 %v237_v6  ;;  %273 = vmatpush.bf16.msra.mxu1 %v237_v6 }
  0x1b   :  { %274 = vmatpush.bf16.msra.mxu2 %v237_v6 }
  0x1e   :  { %125 = vmatpush.bf16.msra.mxu0 %v236_v7  ;;  %275 = vmatpush.bf16.msra.mxu1 %v236_v7 }
  0x1f   :  { %276 = vmatpush.bf16.msra.mxu2 %v236_v7 }
  0x21   :  { %126 = vmatmul.bf16.vlgmr.msra.gmra.mxu0 %v233_v8  ;;  %131 = vmatmul.bf16.vlgmr.msra.gmra.mxu1 %v234_v9 }
  0x22   :  { %136 = vmatmul.bf16.vlgmr.msra.gmra.mxu2 %v235_v10 }
  0x9e   :  { %v127_v11 = vpop.f32.mrf.mxu0  ;;  %v132_v12 = vpop.f32.mrf.mxu1 }
  0x9f   :  { %v167_v17 = vadd.f32 %v277_v13, %v127_v11  ;;  %v169_v18 = vadd.f32 %v277_v13, %v132_v12 }
  0xa5   :  { %v137_v14 = vpop.f32.mrf.mxu2 }
  0xa6   :  { %v129_v15 = vpop.f32.mrf.mxu0  ;;  %v134_v16 = vpop.f32.mrf.mxu1  ;;  %v171_v24 = vadd.f32 %v277_v13, %v137_v14 }
  0xa7   :  { %v168_v19 = vadd.f32 %v277_v13, %v129_v15  ;;  %v170_v20 = vadd.f32 %v277_v13, %v134_v16 }
  0xa9   :  { %v247_v21 = vpack.c.bf16 %v168_v19, %v167_v17  ;;  %v252_v22 = vpack.c.bf16 %v170_v20, %v169_v18 }
  0xab   :  { %248 = vst [vmem:[%s346_s3] sm:$0xff] %v247_v21  }
  0xac   :  { %259 = vst [vmem:[%s346_s3 + $0x8] sm:$0xff] %v252_v22  }
  0xad   :  { %v139_v23 = vpop.f32.mrf.mxu2 }
  0xae   :  { %v172_v25 = vadd.f32 %v277_v13, %v139_v23 }
  0xb0   :  { %v257_v26 = vpack.c.bf16 %v172_v25, %v171_v24 }
  0xb2   :  { %260 = vst [vmem:[%s346_s3 + $0x10] sm:$0xff] %v257_v26  }

// kernel: visual_encoder_forward.80
= control target key start
LH: loop header
LB: loop body
LE: loop exit
PB: predicated region body
PF: predicated region fallthrough
CT: control target
= control target key end

     0   :  { %s744_s1 = inlined_call_operand.vmem [shape: bf16[128,256], index: 1, kind: input, shape index: {}]   ;;  %s745_s0 = inlined_call_operand.vmem [shape: bf16[48,128], index: 0, kind: input, shape index: {}]   ;;  %s746_s2 = inlined_call_operand.vmem [shape: f32[1,256], index: 2, kind: input, shape index: {}]   ;;  %s747_s3 = inlined_call_operand.vmem [shape: bf16[48,256], index: 3, kind: output, shape index: {}]  }
   0x1   :  { %v461_v0 = vld [vmem:[%s744_s1 + $0x70] sm:$0xf]  ;;  %v485_v1 = vld [vmem:[%s744_s1 + $0x74] sm:$0xf0]  ;;  %v484_v2 = vld [vmem:[%s744_s1 + $0x74] sm:$0xf] }
   0x2   :  { %v462_v3 = vor.u32 %v485_v1, %v461_v0  ;;  %v463_v4 = vld [vmem:[%s744_s1 + $0x78] sm:$0xf0]  ;;  %v453_v5 = vld [vmem:[%s744_s1 + $0x60] sm:$0xf]  ;;  %v483_v6 = vld [vmem:[%s744_s1 + $0x64] sm:$0xf0] }
   0x3   :  { %v466_v7 = vor.u32 %v484_v2, %v463_v4  ;;  %v482_v8 = vld [vmem:[%s744_s1 + $0x64] sm:$0xf]  ;;  %v455_v9 = vld [vmem:[%s744_s1 + $0x68] sm:$0xf0]  ;;  %v454_v10 = vor.u32 %v483_v6, %v453_v5  ;;  %v445_v12 = vld [vmem:[%s744_s1 + $0x50] sm:$0xf] }
   0x4   :  { %162 = vmatpush.bf16.msra.mxu0 %v462_v3  ;;  %486 = vmatpush.bf16.msra.mxu2 %v462_v3  ;;  %v458_v11 = vor.u32 %v482_v8, %v455_v9  ;;  %v481_v13 = vld [vmem:[%s744_s1 + $0x54] sm:$0xf0]  ;;  %v480_v14 = vld [vmem:[%s744_s1 + $0x54] sm:$0xf]  ;;  %v447_v15 = vld [vmem:[%s744_s1 + $0x58] sm:$0xf0] }
   0x5   :  { %186 = vmatpush.bf16.msra.mxu1 %v466_v7  ;;  %494 = vmatpush.bf16.msra.mxu3 %v466_v7  ;;  %v446_v16 = vor.u32 %v481_v13, %v445_v12  ;;  %v450_v17 = vor.u32 %v480_v14, %v447_v15  ;;  %v437_v18 = vld [vmem:[%s744_s1 + $0x40] sm:$0xf]  ;;  %v479_v19 = vld [vmem:[%s744_s1 + $0x44] sm:$0xf0]  ;;  %v478_v20 = vld [vmem:[%s744_s1 + $0x44] sm:$0xf] }
   0x6   :  { %v439_v21 = vld [vmem:[%s744_s1 + $0x48] sm:$0xf0]  ;;  %v438_v22 = vor.u32 %v479_v19, %v437_v18  ;;  %v429_v24 = vld [vmem:[%s744_s1 + $0x30] sm:$0xf]  ;;  %v477_v25 = vld [vmem:[%s744_s1 + $0x34] sm:$0xf0] }
   0x7   :  { %v442_v23 = vor.u32 %v478_v20, %v439_v21  ;;  %v476_v26 = vld [vmem:[%s744_s1 + $0x34] sm:$0xf]  ;;  %v431_v27 = vld [vmem:[%s744_s1 + $0x38] sm:$0xf0]  ;;  %v430_v28 = vor.u32 %v477_v25, %v429_v24  ;;  %v421_v30 = vld [vmem:[%s744_s1 + $0x20] sm:$0xf] }
   0x8   :  { %163 = vmatpush.bf16.msra.mxu0 %v454_v10  ;;  %487 = vmatpush.bf16.msra.mxu2 %v454_v10  ;;  %v434_v29 = vor.u32 %v476_v26, %v431_v27  ;;  %v475_v31 = vld [vmem:[%s744_s1 + $0x24] sm:$0xf0]  ;;  %v474_v32 = vld [vmem:[%s744_s1 + $0x24] sm:$0xf]  ;;  %v423_v33 = vld [vmem:[%s744_s1 + $0x28] sm:$0xf0] }
   0x9   :  { %187 = vmatpush.bf16.msra.mxu1 %v458_v11  ;;  %495 = vmatpush.bf16.msra.mxu3 %v458_v11  ;;  %v422_v34 = vor.u32 %v475_v31, %v421_v30  ;;  %v426_v35 = vor.u32 %v474_v32, %v423_v33  ;;  %v413_v36 = vld [vmem:[%s744_s1 + $0x10] sm:$0xf]  ;;  %v473_v37 = vld [vmem:[%s744_s1 + $0x14] sm:$0xf0]  ;;  %v472_v38 = vld [vmem:[%s744_s1 + $0x14] sm:$0xf] }
   0xa   :  { %v415_v39 = vld [vmem:[%s744_s1 + $0x18] sm:$0xf0]  ;;  %v414_v40 = vor.u32 %v473_v37, %v413_v36  ;;  %v405_v42 = vld [vmem:[%s744_s1] sm:$0xf]  ;;  %v471_v43 = vld [vmem:[%s744_s1 + $0x4] sm:$0xf0] }
   0xb   :  { %v418_v41 = vor.u32 %v472_v38, %v415_v39  ;;  %v470_v44 = vld [vmem:[%s744_s1 + $0x4] sm:$0xf]  ;;  %v407_v45 = vld [vmem:[%s744_s1 + $0x8] sm:$0xf0]  ;;  %v406_v46 = vor.u32 %v471_v43, %v405_v42  ;;  %v469_v50 = vld [vmem:[%s745_s0 + $0x10] sm:$0xff] }
   0xc   :  { %164 = vmatpush.bf16.msra.mxu0 %v446_v16  ;;  %488 = vmatpush.bf16.msra.mxu2 %v446_v16  ;;  %v410_v47 = vor.u32 %v470_v44, %v407_v45  ;;  %v467_v48 = vld [vmem:[%s745_s0] sm:$0xff]  ;;  %v468_v49 = vld [vmem:[%s745_s0 + $0x8] sm:$0xff] }
   0xd   :  { %188 = vmatpush.bf16.msra.mxu1 %v450_v17  ;;  %496 = vmatpush.bf16.msra.mxu3 %v450_v17  ;;  %v249_v51 = vld [vmem:[%s746_s2] sm:$0x3] }
   0xe   :  { %v654_v52 = vperm.slane %v249_v51, 0  ;;  %v656_v53 = vperm.slane %v249_v51, 1 }
  0x10   :  { %165 = vmatpush.bf16.msra.mxu0 %v438_v22  ;;  %489 = vmatpush.bf16.msra.mxu2 %v438_v22 }
  0x11   :  { %189 = vmatpush.bf16.msra.mxu1 %v442_v23  ;;  %497 = vmatpush.bf16.msra.mxu3 %v442_v23 }
  0x14   :  { %166 = vmatpush.bf16.msra.mxu0 %v430_v28  ;;  %490 = vmatpush.bf16.msra.mxu2 %v430_v28 }
  0x15   :  { %190 = vmatpush.bf16.msra.mxu1 %v434_v29  ;;  %498 = vmatpush.bf16.msra.mxu3 %v434_v29 }
  0x18   :  { %167 = vmatpush.bf16.msra.mxu0 %v422_v34  ;;  %491 = vmatpush.bf16.msra.mxu2 %v422_v34 }
  0x19   :  { %191 = vmatpush.bf16.msra.mxu1 %v426_v35  ;;  %499 = vmatpush.bf16.msra.mxu3 %v426_v35 }
  0x1c   :  { %168 = vmatpush.bf16.msra.mxu0 %v414_v40  ;;  %492 = vmatpush.bf16.msra.mxu2 %v414_v40 }
  0x1d   :  { %192 = vmatpush.bf16.msra.mxu1 %v418_v41  ;;  %500 = vmatpush.bf16.msra.mxu3 %v418_v41 }
  0x20   :  { %169 = vmatpush.bf16.msra.mxu0 %v406_v46  ;;  %493 = vmatpush.bf16.msra.mxu2 %v406_v46 }
  0x21   :  { %193 = vmatpush.bf16.msra.mxu1 %v410_v47  ;;  %501 = vmatpush.bf16.msra.mxu3 %v410_v47 }
  0x23   :  { %170 = vmatmul.bf16.vlgmr.msra.gmra.mxu0 %v467_v48  ;;  %175 = vmatmul.bf16.vlgmr.msra.gmra.mxu2 %v468_v49 }
  0x24   :  { %194 = vmatmul.bf16.vlgmr.msra.gmra.mxu1 %v467_v48  ;;  %199 = vmatmul.bf16.vlgmr.msra.gmra.mxu3 %v468_v49 }
  0x33   :  { %180 = vmatmul.bf16.gmra.mxu2 %v469_v50 }
  0x34   :  { %204 = vmatmul.bf16.gmra.mxu3 %v469_v50 }
  0xa0   :  { %v171_v54 = vpop.f32.mrf.mxu0 }
  0xa1   :  { %v255_v55 = vadd.f32 %v654_v52, %v171_v54  ;;  %v195_v56 = vpop.f32.mrf.mxu1 }
  0xa2   :  { %v256_v57 = vadd.f32 %v656_v53, %v195_v56 }
  0xa3   :  { %v279_v58 = vmul.f32 0.044715, %v255_v55  ;;  %v267_v33 = vmul.f32 0.5, %v255_v55 }
  0xa4   :  { %v280_v59 = vmul.f32 0.044715, %v256_v57  ;;  %v268_v38 = vmul.f32 0.5, %v256_v57 }
  0xa5   :  { %v291_v60 = vmul.f32 %v279_v58, %v255_v55 }
  0xa6   :  { %v292_v61 = vmul.f32 %v280_v59, %v256_v57  ;;  %v176_v62 = vpop.f32.mrf.mxu2 }
  0xa7   :  { %v303_v63 = vmul.f32 %v291_v60, %v255_v55  ;;  %v661_v0 = vadd.f32 %v654_v52, %v176_v62  ;;  %v200_v1 = vpop.f32.mrf.mxu3 }
  0xa8   :  { %v304_v2 = vmul.f32 %v292_v61, %v256_v57  ;;  %v664_v3 = vadd.f32 %v656_v53, %v200_v1  ;;  %v173_v4 = vpop.f32.mrf.mxu0 }
  0xa9   :  { %v315_v5 = vadd.f32 %v303_v63, %v255_v55  ;;  %v283_v6 = vmul.f32 0.044715, %v661_v0  ;;  %v668_v7 = vadd.f32 %v654_v52, %v173_v4  ;;  %v197_v8 = vpop.f32.mrf.mxu1  ;;  %v271_v60 = vmul.f32 0.5, %v661_v0 }
  0xaa   :  { %v316_v9 = vadd.f32 %v304_v2, %v256_v57  ;;  %v284_v10 = vmul.f32 0.044715, %v664_v3  ;;  %v672_v11 = vadd.f32 %v656_v53, %v197_v8  ;;  %v272_v2 = vmul.f32 0.5, %v664_v3 }
  0xab   :  { %v327_v12 = vmul.f32 0.7978846, %v315_v5  ;;  %v295_v13 = vmul.f32 %v283_v6, %v661_v0  ;;  %v281_v14 = vmul.f32 0.044715, %v668_v7 }
  0xac   :  { %v328_v15 = vmul.f32 0.7978846, %v316_v9  ;;  %v296_v16 = vmul.f32 %v284_v10, %v664_v3  ;;  %v282_v17 = vmul.f32 0.044715, %v672_v11  ;;  %v269_v9 = vmul.f32 0.5, %v668_v7 }
  0xad   :  { %502 = vtanh.f32 %v327_v12  ;;  %v307_v18 = vmul.f32 %v295_v13, %v661_v0  ;;  %v293_v19 = vmul.f32 %v281_v14, %v668_v7 }
  0xae   :  { %504 = vtanh.f32 %v328_v15  ;;  %v308_v20 = vmul.f32 %v296_v16, %v664_v3  ;;  %v294_v21 = vmul.f32 %v282_v17, %v672_v11  ;;  %v178_v22 = vpop.f32.mrf.mxu2  ;;  %v270_v15 = vmul.f32 0.5, %v672_v11 }
  0xaf   :  { %v319_v23 = vadd.f32 %v307_v18, %v661_v0  ;;  %v305_v24 = vmul.f32 %v293_v19, %v668_v7  ;;  %v685_v25 = vadd.f32 %v654_v52, %v178_v22  ;;  %v202_v26 = vpop.f32.mrf.mxu3 }
  0xb0   :  { %v320_v27 = vadd.f32 %v308_v20, %v664_v3  ;;  %v306_v28 = vmul.f32 %v294_v21, %v672_v11  ;;  %v690_v29 = vadd.f32 %v656_v53, %v202_v26 }
  0xb1   :  { %v331_v30 = vmul.f32 0.7978846, %v319_v23  ;;  %v317_v31 = vadd.f32 %v305_v24, %v668_v7  ;;  %v285_v32 = vmul.f32 0.044715, %v685_v25 }
  0xb2   :  { %v332_v34 = vmul.f32 0.7978846, %v320_v27  ;;  %v318_v35 = vadd.f32 %v306_v28, %v672_v11  ;;  %v286_v36 = vmul.f32 0.044715, %v690_v29 }
  0xb3   :  { %v503_v37 = vpop.eup %502  ;;  %506 = vtanh.f32 %v331_v30  ;;  %v329_v39 = vmul.f32 0.7978846, %v317_v31  ;;  %v297_v40 = vmul.f32 %v285_v32, %v685_v25 }
  0xb4   :  { %v505_v41 = vpop.eup %504  ;;  %v351_v42 = vadd.f32 1.0, %v503_v37  ;;  %508 = vtanh.f32 %v332_v34  ;;  %v330_v43 = vmul.f32 0.7978846, %v318_v35  ;;  %v298_v44 = vmul.f32 %v286_v36, %v690_v29 }
  0xb5   :  { %v352_v45 = vadd.f32 1.0, %v505_v41  ;;  %510 = vtanh.f32 %v329_v39  ;;  %v309_v46 = vmul.f32 %v297_v40, %v685_v25 }
  0xb6   :  { %v363_v47 = vmul.f32 %v351_v42, %v267_v33  ;;  %512 = vtanh.f32 %v330_v43  ;;  %v310_v48 = vmul.f32 %v298_v44, %v690_v29  ;;  %v181_v49 = vpop.f32.mrf.mxu2  ;;  %v273_v33 = vmul.f32 0.5, %v685_v25 }
  0xb7   :  { %v364_v50 = vmul.f32 %v352_v45, %v268_v38  ;;  %v321_v51 = vadd.f32 %v309_v46, %v685_v25  ;;  %v702_v54 = vadd.f32 %v654_v52, %v181_v49  ;;  %v205_v55 = vpop.f32.mrf.mxu3 }
  0xb8   :  { %v322_v56 = vadd.f32 %v310_v48, %v690_v29  ;;  %v706_v57 = vadd.f32 %v656_v53, %v205_v55 }
  0xb9   :  { %v507_v58 = vpop.eup %506  ;;  %v375_v59 = vpack.c.bf16 %v364_v50, %v363_v47  ;;  %v333_v61 = vmul.f32 0.7978846, %v321_v51  ;;  %v287_v62 = vmul.f32 0.044715, %v702_v54 }
  0xba   :  { %v509_v63 = vpop.eup %508  ;;  %v355_v1 = vadd.f32 1.0, %v507_v58  ;;  %v334_v4 = vmul.f32 0.7978846, %v322_v56  ;;  %v288_v5 = vmul.f32 0.044715, %v706_v57  ;;  %v276_v50 = vmul.f32 0.5, %v706_v57 }
  0xbb   :  { %v511_v6 = vpop.eup %510  ;;  %381 = vst [vmem:[%s747_s3] sm:$0xff] %v375_v59  ;;  %v356_v8 = vadd.f32 1.0, %v509_v63  ;;  %514 = vtanh.f32 %v333_v61  ;;  %v299_v0 = vmul.f32 %v287_v62, %v702_v54 }
  0xbc   :  { %v513_v10 = vpop.eup %512  ;;  %v367_v12 = vmul.f32 %v355_v1, %v271_v60  ;;  %v353_v13 = vadd.f32 1.0, %v511_v6  ;;  %516 = vtanh.f32 %v334_v4  ;;  %v300_v3 = vmul.f32 %v288_v5, %v706_v57 }
  0xbd   :  { %v368_v14 = vmul.f32 %v356_v8, %v272_v2  ;;  %v354_v16 = vadd.f32 1.0, %v513_v10  ;;  %v311_v17 = vmul.f32 %v299_v0, %v702_v54 }
  0xbe   :  { %v365_v18 = vmul.f32 %v353_v13, %v269_v9  ;;  %v312_v19 = vmul.f32 %v300_v3, %v706_v57  ;;  %v183_v20 = vpop.f32.mrf.mxu2 }
  0xbf   :  { %v377_v7 = vpack.c.bf16 %v368_v14, %v367_v12  ;;  %v366_v21 = vmul.f32 %v354_v16, %v270_v15  ;;  %v323_v22 = vadd.f32 %v311_v17, %v702_v54  ;;  %v265_v23 = vadd.f32 %v654_v52, %v183_v20  ;;  %v207_v24 = vpop.f32.mrf.mxu3 }
  0xc0   :  { %v324_v26 = vadd.f32 %v312_v19, %v706_v57  ;;  %v266_v27 = vadd.f32 %v656_v53, %v207_v24  ;;  %v274_v52 = vmul.f32 0.5, %v690_v29  ;;  %v275_v29 = vmul.f32 0.5, %v702_v54 }
  0xc1   :  { %v515_v28 = vpop.eup %514  ;;  %383 = vst [vmem:[%s747_s3 + $0x10] sm:$0xff] %v377_v7  ;;  %v376_v11 = vpack.c.bf16 %v366_v21, %v365_v18  ;;  %v335_v30 = vmul.f32 0.7978846, %v323_v22  ;;  %v289_v31 = vmul.f32 0.044715, %v265_v23  ;;  %v277_v61 = vmul.f32 0.5, %v265_v23 }
  0xc2   :  { %v517_v32 = vpop.eup %516  ;;  %v357_v34 = vadd.f32 1.0, %v515_v28  ;;  %v336_v35 = vmul.f32 0.7978846, %v324_v26  ;;  %v290_v36 = vmul.f32 0.044715, %v266_v27  ;;  %v278_v63 = vmul.f32 0.5, %v266_v27 }
  0xc3   :  { %382 = vst [vmem:[%s747_s3 + $0x8] sm:$0xff] %v376_v11  ;;  %v358_v53 = vadd.f32 1.0, %v517_v32  ;;  %518 = vtanh.f32 %v335_v30  ;;  %v301_v37 = vmul.f32 %v289_v31, %v265_v23 }
  0xc4   :  { %v369_v38 = vmul.f32 %v357_v34, %v273_v33  ;;  %520 = vtanh.f32 %v336_v35  ;;  %v302_v39 = vmul.f32 %v290_v36, %v266_v27 }
  0xc5   :  { %v370_v40 = vmul.f32 %v358_v53, %v274_v52  ;;  %v313_v41 = vmul.f32 %v301_v37, %v265_v23 }
  0xc6   :  { %v314_v42 = vmul.f32 %v302_v39, %v266_v27 }
  0xc7   :  { %v378_v43 = vpack.c.bf16 %v370_v40, %v369_v38  ;;  %v325_v25 = vadd.f32 %v313_v41, %v265_v23 }
  0xc8   :  { %v326_v44 = vadd.f32 %v314_v42, %v266_v27 }
  0xc9   :  { %v519_v45 = vpop.eup %518  ;;  %384 = vst [vmem:[%s747_s3 + $0x18] sm:$0xff] %v378_v43  ;;  %v337_v46 = vmul.f32 0.7978846, %v325_v25 }
  0xca   :  { %v521_v47 = vpop.eup %520  ;;  %v359_v48 = vadd.f32 1.0, %v519_v45  ;;  %v338_v49 = vmul.f32 0.7978846, %v326_v44 }
  0xcb   :  { %v360_v51 = vadd.f32 1.0, %v521_v47  ;;  %522 = vtanh.f32 %v337_v46 }
  0xcc   :  { %v371_v55 = vmul.f32 %v359_v48, %v275_v29  ;;  %524 = vtanh.f32 %v338_v49 }
  0xcd   :  { %v372_v56 = vmul.f32 %v360_v51, %v276_v50 }
  0xcf   :  { %v379_v58 = vpack.c.bf16 %v372_v56, %v371_v55 }
  0xd1   :  { %v523_v59 = vpop.eup %522  ;;  %385 = vst [vmem:[%s747_s3 + $0x20] sm:$0xff] %v379_v58 }
  0xd2   :  { %v525_v60 = vpop.eup %524  ;;  %v361_v62 = vadd.f32 1.0, %v523_v59 }
  0xd3   :  { %v362_v54 = vadd.f32 1.0, %v525_v60 }
  0xd4   :  { %v373_v1 = vmul.f32 %v361_v62, %v277_v61 }
  0xd5   :  { %v374_v2 = vmul.f32 %v362_v54, %v278_v63 }
  0xd7   :  { %v380_v4 = vpack.c.bf16 %v374_v2, %v373_v1 }
  0xd9   :  { %386 = vst [vmem:[%s747_s3 + $0x28] sm:$0xff] %v380_v4 }

// kernel: visual_encoder_forward.81
= control target key start
LH: loop header
LB: loop body
LE: loop exit
PB: predicated region body
PF: predicated region fallthrough
CT: control target
= control target key end

     0   :  { %s549_s1 = inlined_call_operand.vmem [shape: bf16[256,128], index: 1, kind: input, shape index: {}]   ;;  %s550_s0 = inlined_call_operand.vmem [shape: bf16[48,256], index: 0, kind: input, shape index: {}]   ;;  %s551_s2 = inlined_call_operand.vmem [shape: f32[1,128], index: 2, kind: input, shape index: {}]   ;;  %s552_s3 = inlined_call_operand.vmem [shape: bf16[48,128], index: 3, kind: output, shape index: {}]  }
   0x1   :  { %v390_v0 = vld [vmem:[%s549_s1 + $0x38] sm:$0xff]  ;;  %v389_v2 = vld [vmem:[%s549_s1 + $0x30] sm:$0xff]  ;;  %v388_v4 = vld [vmem:[%s549_s1 + $0x28] sm:$0xff] }
   0x2   :  { %v398_v1 = vld [vmem:[%s549_s1 + $0x78] sm:$0xff]  ;;  %416 = vmatpush.bf16.msra.mxu2 %v390_v0  ;;  %v397_v3 = vld [vmem:[%s549_s1 + $0x70] sm:$0xff]  ;;  %194 = vmatpush.bf16.msra.mxu0 %v390_v0  ;;  %v396_v5 = vld [vmem:[%s549_s1 + $0x68] sm:$0xff] }
   0x3   :  { %424 = vmatpush.bf16.msra.mxu3 %v398_v1  ;;  %218 = vmatpush.bf16.msra.mxu1 %v398_v1  ;;  %v387_v6 = vld [vmem:[%s549_s1 + $0x20] sm:$0xff]  ;;  %v386_v8 = vld [vmem:[%s549_s1 + $0x18] sm:$0xff]  ;;  %v385_v10 = vld [vmem:[%s549_s1 + $0x10] sm:$0xff] }
   0x4   :  { %v395_v7 = vld [vmem:[%s549_s1 + $0x60] sm:$0xff]  ;;  %v394_v9 = vld [vmem:[%s549_s1 + $0x58] sm:$0xff]  ;;  %v393_v11 = vld [vmem:[%s549_s1 + $0x50] sm:$0xff] }
   0x5   :  { %v384_v12 = vld [vmem:[%s549_s1 + $0x8] sm:$0xff]  ;;  %v383_v14 = vld [vmem:[%s549_s1] sm:$0xff]  ;;  %v299_v16 = vld [vmem:[%s550_s0 + $0x10] sm:$0xf] }
   0x6   :  { %417 = vmatpush.bf16.msra.mxu2 %v389_v2  ;;  %195 = vmatpush.bf16.msra.mxu0 %v389_v2  ;;  %v392_v13 = vld [vmem:[%s549_s1 + $0x48] sm:$0xff]  ;;  %v391_v15 = vld [vmem:[%s549_s1 + $0x40] sm:$0xff]  ;;  %v380_v17 = vld [vmem:[%s550_s0 + $0x14] sm:$0xf0] }
   0x7   :  { %425 = vmatpush.bf16.msra.mxu3 %v397_v3  ;;  %219 = vmatpush.bf16.msra.mxu1 %v397_v3  ;;  %v379_v18 = vld [vmem:[%s550_s0 + $0x14] sm:$0xf]  ;;  %v301_v19 = vld [vmem:[%s550_s0 + $0x18] sm:$0xf0]  ;;  %v291_v20 = vld [vmem:[%s550_s0] sm:$0xf]  ;;  %v300_v24 = vor.u32 %v380_v17, %v299_v16 }
   0x8   :  { %v378_v21 = vld [vmem:[%s550_s0 + $0x4] sm:$0xf0]  ;;  %v377_v22 = vld [vmem:[%s550_s0 + $0x4] sm:$0xf]  ;;  %v293_v23 = vld [vmem:[%s550_s0 + $0x8] sm:$0xf0]  ;;  %v304_v25 = vor.u32 %v379_v18, %v301_v19 }
   0x9   :  { %v292_v26 = vor.u32 %v378_v21, %v291_v20  ;;  %v296_v27 = vor.u32 %v377_v22, %v293_v23  ;;  %v307_v28 = vld [vmem:[%s550_s0 + $0x20] sm:$0xf]  ;;  %v382_v29 = vld [vmem:[%s550_s0 + $0x24] sm:$0xf0]  ;;  %v381_v30 = vld [vmem:[%s550_s0 + $0x24] sm:$0xf] }
   0xa   :  { %418 = vmatpush.bf16.msra.mxu2 %v388_v4  ;;  %196 = vmatpush.bf16.msra.mxu0 %v388_v4  ;;  %v309_v31 = vld [vmem:[%s550_s0 + $0x28] sm:$0xf0]  ;;  %v308_v32 = vor.u32 %v382_v29, %v307_v28  ;;  %v432_v39 = vld [vmem:[%s551_s2] ss:$0 sm:$0xff] }
   0xb   :  { %426 = vmatpush.bf16.msra.mxu3 %v396_v5  ;;  %220 = vmatpush.bf16.msra.mxu1 %v396_v5  ;;  %v312_v33 = vor.u32 %v381_v30, %v309_v31 }
   0xe   :  { %419 = vmatpush.bf16.msra.mxu2 %v387_v6  ;;  %197 = vmatpush.bf16.msra.mxu0 %v387_v6 }
   0xf   :  { %427 = vmatpush.bf16.msra.mxu3 %v395_v7  ;;  %221 = vmatpush.bf16.msra.mxu1 %v395_v7 }
  0x12   :  { %420 = vmatpush.bf16.msra.mxu2 %v386_v8  ;;  %198 = vmatpush.bf16.msra.mxu0 %v386_v8 }
  0x13   :  { %428 = vmatpush.bf16.msra.mxu3 %v394_v9  ;;  %222 = vmatpush.bf16.msra.mxu1 %v394_v9 }
  0x16   :  { %421 = vmatpush.bf16.msra.mxu2 %v385_v10  ;;  %199 = vmatpush.bf16.msra.mxu0 %v385_v10 }
  0x17   :  { %429 = vmatpush.bf16.msra.mxu3 %v393_v11  ;;  %223 = vmatpush.bf16.msra.mxu1 %v393_v11 }
  0x1a   :  { %422 = vmatpush.bf16.msra.mxu2 %v384_v12  ;;  %200 = vmatpush.bf16.msra.mxu0 %v384_v12 }
  0x1b   :  { %430 = vmatpush.bf16.msra.mxu3 %v392_v13  ;;  %224 = vmatpush.bf16.msra.mxu1 %v392_v13 }
  0x1e   :  { %423 = vmatpush.bf16.msra.mxu2 %v383_v14  ;;  %201 = vmatpush.bf16.msra.mxu0 %v383_v14 }
  0x1f   :  { %431 = vmatpush.bf16.msra.mxu3 %v391_v15  ;;  %225 = vmatpush.bf16.msra.mxu1 %v391_v15 }
  0x21   :  { %207 = vmatmul.bf16.vlgmr.msra.gmra.mxu2 %v300_v24  ;;  %202 = vmatmul.bf16.vlgmr.msra.gmra.mxu0 %v292_v26 }
  0x22   :  { %231 = vmatmul.bf16.vlgmr.msra.gmra.mxu3 %v304_v25  ;;  %226 = vmatmul.bf16.vlgmr.msra.gmra.mxu1 %v296_v27 }
  0x31   :  { %212 = vmatmul.bf16.gmra.mxu2 %v308_v32 }
  0x32   :  { %236 = vmatmul.bf16.gmra.mxu3 %v312_v33 }
  0x9e   :  { %v203_v34 = vpop.f32.mrf.mxu0 }
  0x9f   :  { %v227_v35 = vpop.f32.mrf.mxu1 }
  0xa0   :  { %v228_v38 = vadd.f32 %v227_v35, %v203_v34 }
  0xa2   :  { %v267_v42 = vadd.f32 %v432_v39, %v228_v38 }
  0xa4   :  { %v208_v36 = vpop.f32.mrf.mxu2 }
  0xa5   :  { %v232_v37 = vpop.f32.mrf.mxu3 }
  0xa6   :  { %v205_v40 = vpop.f32.mrf.mxu0  ;;  %v233_v45 = vadd.f32 %v232_v37, %v208_v36 }
  0xa7   :  { %v229_v41 = vpop.f32.mrf.mxu1 }
  0xa8   :  { %v230_v43 = vadd.f32 %v229_v41, %v205_v40  ;;  %v269_v50 = vadd.f32 %v432_v39, %v233_v45 }
  0xaa   :  { %v268_v44 = vadd.f32 %v432_v39, %v230_v43 }
  0xac   :  { %v210_v46 = vpop.f32.mrf.mxu2  ;;  %v402_v48 = vpack.c.bf16 %v268_v44, %v267_v42 }
  0xad   :  { %v234_v47 = vpop.f32.mrf.mxu3 }
  0xae   :  { %v235_v49 = vadd.f32 %v234_v47, %v210_v46  ;;  %403 = vst [vmem:[%s552_s3] sm:$0xff] %v402_v48  }
  0xb0   :  { %v270_v51 = vadd.f32 %v432_v39, %v235_v49 }
  0xb2   :  { %v407_v52 = vpack.c.bf16 %v270_v51, %v269_v50 }
  0xb4   :  { %414 = vst [vmem:[%s552_s3 + $0x8] sm:$0xff] %v407_v52   ;;  %v213_v53 = vpop.f32.mrf.mxu2 }
  0xb5   :  { %v237_v54 = vpop.f32.mrf.mxu3 }
  0xb6   :  { %v238_v55 = vadd.f32 %v237_v54, %v213_v53 }
  0xb8   :  { %v271_v59 = vadd.f32 %v432_v39, %v238_v55 }
  0xbc   :  { %v215_v56 = vpop.f32.mrf.mxu2 }
  0xbd   :  { %v239_v57 = vpop.f32.mrf.mxu3 }
  0xbe   :  { %v240_v58 = vadd.f32 %v239_v57, %v215_v56 }
  0xc0   :  { %v272_v60 = vadd.f32 %v432_v39, %v240_v58 }
  0xc2   :  { %v412_v61 = vpack.c.bf16 %v272_v60, %v271_v59 }
  0xc4   :  { %415 = vst [vmem:[%s552_s3 + $0x10] sm:$0xff] %v412_v61  }

// kernel: visual_encoder_forward.79
= control target key start
LH: loop header
LB: loop body
LE: loop exit
PB: predicated region body
PF: predicated region fallthrough
CT: control target
= control target key end

     0   :  { %v272_v24 = vmov 128.0   ;;  %s380_s0 = inlined_call_operand.vmem [shape: bf16[48,128], index: 0, kind: input, shape index: {}]   ;;  %s381_s1 = inlined_call_operand.vmem [shape: bf16[48,128], index: 1, kind: input, shape index: {}]   ;;  %s382_s2 = inlined_call_operand.vmem [shape: f32[1,128], index: 2, kind: input, shape index: {}]   ;;  %s383_s3 = inlined_call_operand.vmem [shape: f32[1,128], index: 3, kind: input, shape index: {}]   ;;  %s384_s4 = inlined_call_operand.vmem [shape: bf16[48,128], index: 4, kind: output, shape index: {}]  }
   0x1   :  { %v250_v0 = vld [vmem:[%s380_s0 + $0x10] sm:$0xff]   ;;  %v249_v2 = vld [vmem:[%s380_s0 + $0x8] sm:$0xff]   ;;  %v211_v7 = vld [vmem:[%s380_s0] sm:$0xff]   ;;  %258 = vrcp.f32 %v272_v24 }
   0x2   :  { %v252_v1 = vld [vmem:[%s381_s1 + $0x10] sm:$0xff]   ;;  %v220_v3 = vunpack.c.l.bf16 %v250_v0  ;;  %v216_v5 = vunpack.c.l.bf16 %v249_v2  ;;  %v251_v6 = vld [vmem:[%s381_s1 + $0x8] sm:$0xff]   ;;  %v223_v8 = vld [vmem:[%s381_s1] sm:$0xff]   ;;  %v212_v10 = vunpack.c.l.bf16 %v211_v7  ;;  %v221_v15 = vunpack.c.h.bf16 %v250_v0 }
   0x3   :  { %v232_v4 = vunpack.c.l.bf16 %v252_v1  ;;  %v228_v9 = vunpack.c.l.bf16 %v251_v6  ;;  %v224_v11 = vunpack.c.l.bf16 %v223_v8  ;;  %v233_v16 = vunpack.c.h.bf16 %v252_v1 }
   0x4   :  { %v217_v17 = vunpack.c.h.bf16 %v249_v2  ;;  %v229_v18 = vunpack.c.h.bf16 %v251_v6  ;;  %v213_v19 = vunpack.c.h.bf16 %v211_v7  ;;  %v225_v20 = vunpack.c.h.bf16 %v223_v8 }
   0x5   :  { %v45_v12 = vadd.f32 %v232_v4, %v220_v3  ;;  %v43_v13 = vadd.f32 %v228_v9, %v216_v5  ;;  %v41_v14 = vadd.f32 %v224_v11, %v212_v10  ;;  %v46_v21 = vadd.f32 %v233_v16, %v221_v15 }
   0x6   :  { %v44_v22 = vadd.f32 %v229_v18, %v217_v17  ;;  %v42_v23 = vadd.f32 %v225_v20, %v213_v19 }
   0x7   :  { %55 = vadd.xlane.f32.xlu2 %v45_v12  ;;  %51 = vadd.xlane.f32.xlu1 %v43_v13  ;;  %v259_v25 = vpop.eup %258 }
   0x8   :  { %47 = vadd.xlane.f32.xlu0 %v41_v14  ;;  %v60_v26 = vmul.f32 128.0, %v259_v25  ;;  %vm64_vm0 = vweird.f32 %v259_v25 }
   0xa   :  { %v61_v27 = vsub.f32 1.0, %v60_v26 }
   0xc   :  { %v62_v28 = vmul.f32 %v259_v25, %v61_v27 }
   0xe   :  { %v63_v29 = vadd.f32 %v259_v25, %v62_v28 }
   0xf   :  { %57 = vadd.xlane.f32.xlu2 %v46_v21  ;;  %53 = vadd.xlane.f32.xlu1 %v44_v22 }
  0x10   :  { %49 = vadd.xlane.f32.xlu0 %v42_v23  ;;  %v65_v30 = vsel %vm64_vm0, %v259_v25, %v63_v29 }
  0x7a   :  { %v56_v31 = vpop.xlane.xlu2 %55  ;;  %v52_v32 = vpop.xlane.xlu1 %51 }
  0x7b   :  { %v48_v33 = vpop.xlane.xlu0 %47  ;;  %v68_v34 = vmul.f32 %v65_v30, %v52_v32  ;;  %v70_v52 = vmul.f32 %v65_v30, %v56_v31 }
  0x7c   :  { %v66_v35 = vmul.f32 %v65_v30, %v48_v33 }
  0x7d   :  { %v316_v36 = vsub.f32 %v43_v13, %v68_v34  ;;  %v336_v53 = vsub.f32 %v45_v12, %v70_v52 }
  0x7e   :  { %v318_v37 = vsub.f32 %v41_v14, %v66_v35 }
  0x7f   :  { %v80_v38 = vmul.f32 %v316_v36, %v316_v36  ;;  %v82_v54 = vmul.f32 %v336_v53, %v336_v53 }
  0x80   :  { %v78_v39 = vmul.f32 %v318_v37, %v318_v37 }
  0x81   :  { %88 = vadd.xlane.f32.xlu2 %v80_v38 }
  0x82   :  { %84 = vadd.xlane.f32.xlu0 %v78_v39  ;;  %v58_v40 = vpop.xlane.xlu2 %57  ;;  %v54_v42 = vpop.xlane.xlu1 %53  ;;  %v256_v39 = vld [vmem:[%s382_s2] ss:$0 sm:$0xff] }
  0x83   :  { %v71_v41 = vmul.f32 %v65_v30, %v58_v40  ;;  %v50_v43 = vpop.xlane.xlu0 %49  ;;  %v69_v44 = vmul.f32 %v65_v30, %v54_v42 }
  0x84   :  { %v67_v45 = vmul.f32 %v65_v30, %v50_v43 }
  0x85   :  { %v324_v46 = vsub.f32 %v46_v21, %v71_v41  ;;  %v326_v47 = vsub.f32 %v44_v22, %v69_v44 }
  0x86   :  { %v328_v48 = vsub.f32 %v42_v23, %v67_v45 }
  0x87   :  { %v83_v49 = vmul.f32 %v324_v46, %v324_v46  ;;  %v81_v50 = vmul.f32 %v326_v47, %v326_v47 }
  0x88   :  { %v79_v51 = vmul.f32 %v328_v48, %v328_v48 }
  0x89   :  { %94 = vadd.xlane.f32.xlu2 %v83_v49 }
  0x8a   :  { %90 = vadd.xlane.f32.xlu0 %v81_v50  ;;  %86 = vadd.xlane.f32.xlu1 %v79_v51 }
  0x92   :  { %92 = vadd.xlane.f32.xlu1 %v82_v54 }
  0xf4   :  { %v89_v55 = vpop.xlane.xlu2 %88 }
  0xf5   :  { %v85_v56 = vpop.xlane.xlu0 %84  ;;  %v98_v57 = vmul.f32 %v89_v55, %v65_v30 }
  0xf6   :  { %v96_v58 = vmul.f32 %v85_v56, %v65_v30 }
  0xf7   :  { %v104_v59 = vadd.f32 1e-12, %v98_v57 }
  0xf8   :  { %v102_v60 = vadd.f32 1e-12, %v96_v58 }
  0xf9   :  { %260 = vrsqrt.f32 %v104_v59  ;;  %vm134_vm1 = vweird.f32 %v104_v59 }
  0xfa   :  { %262 = vrsqrt.f32 %v102_v60  ;;  %vm114_vm4 = vweird.f32 %v102_v60 }
  0xfc   :  { %v95_v61 = vpop.xlane.xlu2 %94 }
  0xfd   :  { %v91_v62 = vpop.xlane.xlu0 %90  ;;  %v101_v63 = vmul.f32 %v95_v61, %v65_v30  ;;  %v87_v0 = vpop.xlane.xlu1 %86 }
  0xfe   :  { %v99_v1 = vmul.f32 %v91_v62, %v65_v30  ;;  %v97_v2 = vmul.f32 %v87_v0, %v65_v30 }
  0xff   :  { %v261_v3 = vpop.eup %260  ;;  %v340_v4 = vadd.f32 1e-12, %v101_v63 }
 0x100   :  { %v105_v5 = vadd.f32 1e-12, %v99_v1  ;;  %v263_v6 = vpop.eup %262  ;;  %v129_v7 = vmul.f32 %v261_v3, %v104_v59  ;;  %v103_v8 = vadd.f32 1e-12, %v97_v2  ;;  %vm135_vm3 = vweird.f32 %v261_v3 }
 0x101   :  { %v109_v9 = vmul.f32 %v263_v6, %v102_v60  ;;  %264 = vrsqrt.f32 %v340_v4  ;;  %vm115_vm2 = vweird.f32 %v263_v6  ;;  %vm136_vm6 = vmor %vm134_vm1, %vm135_vm3  ;;  %vm164_vm10 = vweird.f32 %v340_v4 }
 0x102   :  { %v130_v10 = vmul.f32 %v261_v3, %v129_v7  ;;  %266 = vrsqrt.f32 %v103_v8  ;;  %vm116_vm5 = vmor %vm114_vm4, %vm115_vm2  ;;  %vm144_vm8 = vweird.f32 %v105_v5  ;;  %vm124_vm11 = vweird.f32 %v103_v8 }
 0x103   :  { %v110_v11 = vmul.f32 %v263_v6, %v109_v9  ;;  %268 = vrsqrt.f32 %v105_v5 }
 0x104   :  { %v131_v12 = vmul.f32 0.5, %v130_v10 }
 0x105   :  { %v111_v13 = vmul.f32 0.5, %v110_v11  ;;  %v93_v14 = vpop.xlane.xlu1 %92 }
 0x106   :  { %v132_v15 = vsub.f32 1.5, %v131_v12  ;;  %v100_v16 = vmul.f32 %v93_v14, %v65_v30 }
 0x107   :  { %v343_v17 = vpop.eup %264  ;;  %v112_v18 = vsub.f32 1.5, %v111_v13 }
 0x108   :  { %v267_v19 = vpop.eup %266  ;;  %v159_v20 = vmul.f32 %v343_v17, %v340_v4  ;;  %v347_v21 = vadd.f32 1e-12, %v100_v16  ;;  %v133_v25 = vmul.f32 %v261_v3, %v132_v15  ;;  %vm165_vm12 = vweird.f32 %v343_v17 }
 0x109   :  { %v269_v22 = vpop.eup %268  ;;  %v113_v23 = vmul.f32 %v263_v6, %v112_v18  ;;  %v119_v24 = vmul.f32 %v267_v19, %v103_v8  ;;  %vm125_vm7 = vweird.f32 %v267_v19  ;;  %vm166_vm15 = vmor %vm164_vm10, %vm165_vm12 }
 0x10a   :  { %v160_v26 = vmul.f32 %v343_v17, %v159_v20  ;;  %v139_v27 = vmul.f32 %v269_v22, %v105_v5  ;;  %270 = vrsqrt.f32 %v347_v21  ;;  %v137_v33 = vsel %vm136_vm6, %v261_v3, %v133_v25  ;;  %vm126_vm13 = vmor %vm124_vm11, %vm125_vm7 }
 0x10b   :  { %v120_v28 = vmul.f32 %v267_v19, %v119_v24  ;;  %v117_v31 = vsel %vm116_vm5, %v263_v6, %v113_v23  ;;  %vm145_vm9 = vweird.f32 %v269_v22  ;;  %v170_v43 = vmul.f32 %v137_v33, %v316_v36 }
 0x10c   :  { %v161_v29 = vmul.f32 0.5, %v160_v26  ;;  %v140_v30 = vmul.f32 %v269_v22, %v139_v27  ;;  %v168_v40 = vmul.f32 %v117_v31, %v318_v37  ;;  %vm146_vm14 = vmor %vm144_vm8, %vm145_vm9  ;;  %v257_v37 = vld [vmem:[%s383_s3] ss:$0 sm:$0xff]  ;;  %vm154_vm1 = vweird.f32 %v347_v21 }
 0x10d   :  { %v121_v32 = vmul.f32 0.5, %v120_v28  ;;  %v180_v56 = vmul.f32 %v256_v39, %v170_v43 }
 0x10e   :  { %v162_v34 = vsub.f32 1.5, %v161_v29  ;;  %v141_v35 = vmul.f32 0.5, %v140_v30  ;;  %v178_v52 = vmul.f32 %v256_v39, %v168_v40 }
 0x10f   :  { %v122_v38 = vsub.f32 1.5, %v121_v32  ;;  %v190_v1 = vadd.f32 %v257_v37, %v180_v56 }
 0x110   :  { %v142_v41 = vsub.f32 1.5, %v141_v35  ;;  %v271_v42 = vpop.eup %270  ;;  %v163_v45 = vmul.f32 %v343_v17, %v162_v34  ;;  %v188_v62 = vadd.f32 %v257_v37, %v178_v52 }
 0x111   :  { %v123_v44 = vmul.f32 %v267_v19, %v122_v38  ;;  %v149_v50 = vmul.f32 %v271_v42, %v347_v21  ;;  %vm155_vm0 = vweird.f32 %v271_v42 }
 0x112   :  { %v143_v49 = vmul.f32 %v269_v22, %v142_v41  ;;  %v167_v58 = vsel %vm166_vm15, %v343_v17, %v163_v45  ;;  %vm156_vm2 = vmor %vm154_vm1, %vm155_vm0 }
 0x113   :  { %v127_v51 = vsel %vm126_vm13, %v267_v19, %v123_v44  ;;  %v150_v55 = vmul.f32 %v271_v42, %v149_v50 }
 0x114   :  { %v169_v36 = vmul.f32 %v127_v51, %v328_v48  ;;  %v147_v54 = vsel %vm146_vm14, %v269_v22, %v143_v49  ;;  %v173_v48 = vmul.f32 %v167_v58, %v324_v46 }
 0x115   :  { %v171_v57 = vmul.f32 %v147_v54, %v326_v47  ;;  %v151_v60 = vmul.f32 0.5, %v150_v55 }
 0x116   :  { %v179_v59 = vmul.f32 %v256_v39, %v169_v36  ;;  %v183_v6 = vmul.f32 %v256_v39, %v173_v48 }
 0x117   :  { %v181_v61 = vmul.f32 %v256_v39, %v171_v57  ;;  %v152_v0 = vsub.f32 1.5, %v151_v60 }
 0x118   :  { %v189_v63 = vadd.f32 %v257_v37, %v179_v59  ;;  %v193_v8 = vadd.f32 %v257_v37, %v183_v6 }
 0x119   :  { %v191_v2 = vadd.f32 %v257_v37, %v181_v61  ;;  %v153_v5 = vmul.f32 %v271_v42, %v152_v0 }
 0x11a   :  { %v237_v3 = vpack.c.bf16 %v189_v63, %v188_v62 }
 0x11b   :  { %v242_v4 = vpack.c.bf16 %v191_v2, %v190_v1  ;;  %v157_v47 = vsel %vm156_vm2, %v271_v42, %v153_v5 }
 0x11c   :  { %238 = vst [vmem:[%s384_s4] sm:$0xff] %v237_v3   ;;  %v172_v7 = vmul.f32 %v157_v47, %v336_v53 }
 0x11d   :  { %253 = vst [vmem:[%s384_s4 + $0x8] sm:$0xff] %v242_v4  }
 0x11e   :  { %v182_v46 = vmul.f32 %v256_v39, %v172_v7 }
 0x120   :  { %v192_v9 = vadd.f32 %v257_v37, %v182_v46 }
 0x122   :  { %v247_v10 = vpack.c.bf16 %v193_v8, %v192_v9 }
 0x124   :  { %254 = vst [vmem:[%s384_s4 + $0x10] sm:$0xff] %v247_v10  }

</bundles_post_ra>
